<compile_context>
chip_gen: v7x
topology: tpu7x:2x2x1
jax: 0.10.0
libtpu: 0.0.40
codegen_flags: <defaults>
</compile_context>

<pallas_src>
import functools

import jax
import jax.numpy as jnp
from jax import lax
from jax.experimental import pallas as pl
from jax.experimental.pallas import tpu as pltpu

_BLK = 16     # time steps per flush: one full (16, 128) bf16 packed tile -> unmasked stores
_LANE = 128


def _round_up(n, m):
    return ((n + m - 1) // m) * m


def _vmem_limit(nbytes, slack=4 << 20, floor=16 << 20, cap=128 << 20):
    """Explicit VMEM budget from the actual resident footprint (+ slack), capped at physical."""
    return int(min(max(int(nbytes) + slack, floor), cap))


# ---------------------------------------------------------------------------------------------
# Kernel A: multi-layer LSTM recurrence over the whole (padded) sequence.
# ---------------------------------------------------------------------------------------------
def _lstm_kernel(num_layers, seq_len_pad, hidden_pad, *refs):
    """refs = [x (T_pad, D_pad) f32,
               (w_ih (Din_pad, 4H_pad) bf16, w_hh (H_pad, 4H_pad) bf16, b (1, 4H_pad) f32)*L,
               out (T_pad, H_pad) bf16,           # final layer hidden-state sequence
               zx_scr (T_pad, 4H_pad) bf16]       # hoisted x @ W_ih (+b) projection
    Gate order in all 4H_pad-wide tensors is (i, f, o, g) (permuted offline from torch's i,f,g,o).
    """
    H = hidden_pad
    x_ref = refs[0]
    layer_refs = refs[1:1 + 3 * num_layers]
    out_ref = refs[1 + 3 * num_layers]
    zx_scr = refs[2 + 3 * num_layers]

    num_blocks = seq_len_pad // _BLK

    def run_layer(w_ih_ref, w_hh_ref, b_ref, in_ref):
        # Hoisted full-sequence input projection: ONE (T_pad, Din) x (Din, 4H_pad) MXU matmul,
        # materialized into zx_scr BEFORE the recurrence overwrites out_ref (in-place chaining).
        zx_scr[...] = (jnp.dot(in_ref[...].astype(jnp.bfloat16), w_ih_ref[...],
                               preferred_element_type=jnp.float32)
                       + b_ref[...]).astype(jnp.bfloat16)

        def block_step(blk, carry):
            h, c = carry                                      # (1, H_pad) f32 vreg carries
            base = pl.multiple_of(blk * _BLK, _BLK)
            # Tile-aligned unmasked load of 16 pre-activation rows at once.
            zx_blk = zx_scr[pl.ds(base, _BLK), :].astype(jnp.float32)
            rows = []
            for s in range(_BLK):                             # static unroll; serial in h
                z = zx_blk[s:s + 1, :] + jnp.dot(h.astype(jnp.bfloat16), w_hh_ref[...],
                                                 preferred_element_type=jnp.float32)
                # Permuted gate layout (i, f, o, g): 3H sigmoid + H tanh, lane-aligned slices.
                sg = jax.nn.sigmoid(z[:, :3 * H])
                g = jnp.tanh(z[:, 3 * H:])
                c = sg[:, H:2 * H] * c + sg[:, :H] * g        # c' = f*c + i*g
                h = sg[:, 2 * H:3 * H] * jnp.tanh(c)          # h' = o*tanh(c')
                rows.append(h.astype(jnp.bfloat16))
            # One unmasked, packed-tile-aligned (16, H_pad) bf16 flush per block.
            out_ref[pl.ds(base, _BLK), :] = jnp.concatenate(rows, axis=0)
            return (h, c)

        h0 = jnp.zeros((1, H), jnp.float32)                   # nn.LSTM default zero init state
        c0 = jnp.zeros((1, H), jnp.float32)
        lax.fori_loop(0, num_blocks, block_step, (h0, c0))

    # Layer 0 reads the concatenated input; layers >= 1 read the previous layer's hidden
    # sequence (projected into zx_scr before out_ref is overwritten with the new layer's h).
    run_layer(layer_refs[0], layer_refs[1], layer_refs[2], x_ref)
    for l in range(1, num_layers):
        run_layer(layer_refs[3 * l], layer_refs[3 * l + 1], layer_refs[3 * l + 2], out_ref)


# ---------------------------------------------------------------------------------------------
# Kernel B: tiled final vocab projection (lane-dense, grid over T and vocab).
# ---------------------------------------------------------------------------------------------
def _proj_kernel(h_ref, w_ref, b_ref, o_ref):
    o_ref[...] = (jnp.dot(h_ref[...], w_ref[...], preferred_element_type=jnp.float32)
                  + b_ref[...])


# ---------------------------------------------------------------------------------------------
# Parameter init (kernel-ready: gate-permuted, zero-padded to lane multiples, bf16 matmul weights)
# ---------------------------------------------------------------------------------------------
def init_params(key, vocab_size, num_layers, embed_size, hidden_size, lstm_input_size):
    H = hidden_size
    H_pad = _round_up(H, _LANE)
    V_pad = _round_up(vocab_size, _LANE)
    D_pad = _round_up(lstm_input_size, _LANE)

    keys = iter(jax.random.split(key, 1 + 4 * num_layers + 2))
    bound = 1.0 / jnp.sqrt(hidden_size)

    embedding = jax.random.normal(next(keys), (vocab_size, embed_size), dtype=jnp.float32)

    def perm_pad_gates(w_t):
        # w_t: (rows, 4H), torch gate order (i, f, g, o) -> kernel order (i, f, o, g),
        # each H-wide gate block zero-padded to H_pad columns (lane-aligned slices in-kernel).
        i, f, g, o = (w_t[:, k * H:(k + 1) * H] for k in range(4))
        padc = lambda a: jnp.pad(a, ((0, 0), (0, H_pad - H)))
        return jnp.concatenate([padc(i), padc(f), padc(o), padc(g)], axis=1)

    lstm = []
    in_dim, in_pad = lstm_input_size, D_pad
    for _ in range(num_layers):
        w_ih = jax.random.uniform(next(keys), (4 * H, in_dim), jnp.float32, -bound, bound)
        w_hh = jax.random.uniform(next(keys), (4 * H, H), jnp.float32, -bound, bound)
        b_ih = jax.random.uniform(next(keys), (4 * H,), jnp.float32, -bound, bound)
        b_hh = jax.random.uniform(next(keys), (4 * H,), jnp.float32, -bound, bound)
        w_ih_k = perm_pad_gates(w_ih.T)                                   # (in_dim, 4H_pad)
        w_ih_k = jnp.pad(w_ih_k, ((0, in_pad - in_dim), (0, 0)))          # (in_pad, 4H_pad)
        w_hh_k = perm_pad_gates(w_hh.T)                                   # (H, 4H_pad)
        w_hh_k = jnp.pad(w_hh_k, ((0, H_pad - H), (0, 0)))                # (H_pad, 4H_pad)
        b_k = perm_pad_gates((b_ih + b_hh).reshape(1, -1))                # fused bias, f32
        lstm.append((w_ih_k.astype(jnp.bfloat16), w_hh_k.astype(jnp.bfloat16), b_k))
        in_dim, in_pad = H, H_pad

    w_lin = jax.random.uniform(next(keys), (vocab_size, H), jnp.float32, -bound, bound)
    b_lin = jax.random.uniform(next(keys), (vocab_size,), jnp.float32, -bound, bound)
    w_lin_k = jnp.pad(w_lin.T, ((0, H_pad - H), (0, V_pad - vocab_size))).astype(jnp.bfloat16)
    b_lin_k = jnp.pad(b_lin.reshape(1, -1), ((0, 0), (0, V_pad - vocab_size)))  # (1, V_pad) f32

    return {
        "embedding": embedding,
        "lstm": lstm,
        "w_lin": w_lin_k, "b_lin": b_lin_k,
        "hidden_size": H, "hidden_pad": H_pad,
        "vocab_size": vocab_size, "vocab_pad": V_pad,
        "input_size": lstm_input_size, "input_pad": D_pad,
    }


# ---------------------------------------------------------------------------------------------
# Forward wrapper
# ---------------------------------------------------------------------------------------------
def decoder_forward(features, caption, params):
    # --- glue (plain JAX): embedding gather, Dropout(identity, eval), flatten, concat ---
    emb = jnp.take(params["embedding"], caption, axis=0)                     # (B, L, E)
    B = caption.shape[0]
    x = jnp.concatenate([features.astype(jnp.float32), emb.reshape(B, -1)], axis=1)  # (T, D)

    T, D = x.shape
    H_pad = params["hidden_pad"]
    V, V_pad = params["vocab_size"], params["vocab_pad"]
    D_pad = params["input_pad"]
    num_layers = len(params["lstm"])
    T_pad = _round_up(T, _BLK)

    # Pad to lane/tile multiples (zero rows/cols -> padded lanes provably stay zero in h).
    x_pad = jnp.pad(x, ((0, T_pad - T), (0, D_pad - D)))

    # ---------------- Kernel A: multi-layer LSTM ----------------
    lstm_inputs = [x_pad]
    for (w_ih, w_hh, b) in params["lstm"]:
        lstm_inputs += [w_ih, w_hh, b]

    lstm_bytes = sum(a.size * a.dtype.itemsize for a in lstm_inputs)
    lstm_bytes += T_pad * H_pad * 2              # bf16 hidden-sequence output
    lstm_bytes += T_pad * 4 * H_pad * 2          # bf16 zx scratch

    hseq = pl.pallas_call(
        functools.partial(_lstm_kernel, num_layers, T_pad, H_pad),
        out_shape=jax.ShapeDtypeStruct((T_pad, H_pad), jnp.bfloat16),
        in_specs=[pl.BlockSpec(memory_space=pltpu.MemorySpace.VMEM)] * len(lstm_inputs),
        out_specs=pl.BlockSpec(memory_space=pltpu.MemorySpace.VMEM),
        scratch_shapes=[pltpu.VMEM((T_pad, 4 * H_pad), jnp.bfloat16)],
        compiler_params=pltpu.CompilerParams(vmem_limit_bytes=_vmem_limit(lstm_bytes)),
    )(*lstm_inputs)

    # ---------------- Kernel B: tiled vocab projection ----------------
    w_lin, b_lin = params["w_lin"], params["b_lin"]
    tm = 128 if T_pad % 128 == 0 else T_pad
    tn = next(t for t in (512, 256, 128) if V_pad % t == 0)
    proj_bytes = 2 * (tm * H_pad * 2 + H_pad * tn * 2 + tn * 4 + tm * tn * 4)  # double-buffered

    out_pad = pl.pallas_call(
        _proj_kernel,
        out_shape=jax.ShapeDtypeStruct((T_pad, V_pad), jnp.float32),
        grid=(T_pad // tm, V_pad // tn),
        in_specs=[pl.BlockSpec((tm, H_pad), lambda i, j: (i, 0)),
                  pl.BlockSpec((H_pad, tn), lambda i, j: (0, j)),
                  pl.BlockSpec((1, tn), lambda i, j: (0, j))],
        out_specs=pl.BlockSpec((tm, tn), lambda i, j: (i, j)),
        compiler_params=pltpu.CompilerParams(
            dimension_semantics=("parallel", "parallel"),
            vmem_limit_bytes=_vmem_limit(proj_bytes)),
    )(hseq, w_lin, b_lin)

    return out_pad[:T, :V]


if __name__ == "__main__":
    # module hyper-params
    vocab_size = 64
    num_layers = 2
    embed_size = 8
    hidden_size = 32
    dec_dropout = 0.5   # identity at inference (TODO(synk) above)

    # input shapes
    B = 2    # batch rows -> LSTM time steps under nn.LSTM 2-D input semantics
    L = 4    # caption length
    F = 16   # feature width

    key = jax.random.PRNGKey(0)
    k_feat, k_cap, k_param = jax.random.split(key, 3)
    features = jax.random.normal(k_feat, (B, F), dtype=jnp.float32)
    caption = jax.random.randint(k_cap, (B, L), 0, vocab_size, dtype=jnp.int32)

    lstm_input_size = F + L * embed_size   # actual concatenated width fed to the LSTM
    params = init_params(k_param, vocab_size, num_layers, embed_size, hidden_size,
                         lstm_input_size)

    out = decoder_forward(features, caption, params)
    jax.block_until_ready(out)
    assert out.shape == (B, vocab_size) and out.dtype == jnp.float32
    assert bool(jnp.all(jnp.isfinite(out)))
    print("KERNEL_OK")
</pallas_src>

<mosaic_0001>
module attributes {stable_mosaic.version = 11 : i64} {
  func.func @_lstm_kernel(%arg0: memref<16x128xf32, #tpu.memory_space<vmem>>, %arg1: memref<128x512xbf16, #tpu.memory_space<vmem>>, %arg2: memref<128x512xbf16, #tpu.memory_space<vmem>>, %arg3: memref<1x512xf32, #tpu.memory_space<vmem>>, %arg4: memref<128x512xbf16, #tpu.memory_space<vmem>>, %arg5: memref<128x512xbf16, #tpu.memory_space<vmem>>, %arg6: memref<1x512xf32, #tpu.memory_space<vmem>>, %arg7: memref<16x128xbf16, #tpu.memory_space<vmem>>, %arg8: memref<16x512xbf16, #tpu.memory_space<vmem>>) attributes {dimension_semantics = [], scalar_prefetch = 0 : i64, scratch_operands = 1 : i64, tpu.core_type = #tpu.core_type<tc>} {
    %c0 = arith.constant 0 : index
    %c0_0 = arith.constant 0 : index
    %0 = vector.load %arg0[%c0, %c0_0] : memref<16x128xf32, #tpu.memory_space<vmem>>, vector<16x128xf32>
    %1 = arith.truncf %0 : vector<16x128xf32> to vector<16x128xbf16>
    %c0_1 = arith.constant 0 : index
    %c0_2 = arith.constant 0 : index
    %2 = vector.load %arg1[%c0_1, %c0_2] : memref<128x512xbf16, #tpu.memory_space<vmem>>, vector<128x512xbf16>
    %cst = arith.constant dense<0.000000e+00> : vector<16x512xf32>
    %3 = tpu.matmul %1, %2, %cst {dimension_numbers = #tpu.dot_dimension_numbers<[1], [0], [0], [1], [0, 0, 1, 1], [], []>} : vector<16x128xbf16>, vector<128x512xbf16>, vector<16x512xf32> -> vector<16x512xf32>
    %c0_3 = arith.constant 0 : index
    %c0_4 = arith.constant 0 : index
    %4 = vector.load %arg3[%c0_3, %c0_4] : memref<1x512xf32, #tpu.memory_space<vmem>>, vector<1x512xf32>
    %5 = vector.broadcast %4 : vector<1x512xf32> to vector<16x512xf32>
    %6 = arith.addf %3, %5 : vector<16x512xf32>
    %7 = arith.truncf %6 : vector<16x512xf32> to vector<16x512xbf16>
    %c0_5 = arith.constant 0 : index
    %c0_6 = arith.constant 0 : index
    %8 = vector.load %arg8[%c0_5, %c0_6] : memref<16x512xbf16, #tpu.memory_space<vmem>>, vector<16x512xbf16>
    tpu.vector_store %arg8[%c0_5, %c0_6], %7 {strides = array<i32>} : memref<16x512xbf16, #tpu.memory_space<vmem>>, vector<16x512xbf16>,
    %cst_7 = arith.constant 0.000000e+00 : f32
    %9 = vector.broadcast %cst_7 : f32 to vector<1x128xf32>
    %cst_8 = arith.constant 0.000000e+00 : f32
    %10 = vector.broadcast %cst_8 : f32 to vector<1x128xf32>
    %c0_i32 = arith.constant 0 : i32
    %c16_i32 = arith.constant 16 : i32
    %11 = arith.muli %c0_i32, %c16_i32 : i32
    %12 = tpu.assume_multiple %11, 16 : i32
    %13 = arith.index_cast %12 : i32 to index
    %c0_9 = arith.constant 0 : index
    %14 = vector.load %arg8[%13, %c0_9] : memref<16x512xbf16, #tpu.memory_space<vmem>>, vector<16x512xbf16>
    %15 = arith.extf %14 : vector<16x512xbf16> to vector<16x512xf32>
    %16 = vector.extract_strided_slice %15 {offsets = [0, 0], sizes = [1, 512], strides = [1, 1]} : vector<16x512xf32> to vector<1x512xf32>
    %17 = arith.truncf %9 : vector<1x128xf32> to vector<1x128xbf16>
    %c0_10 = arith.constant 0 : index
    %c0_11 = arith.constant 0 : index
    %18 = vector.load %arg2[%c0_10, %c0_11] : memref<128x512xbf16, #tpu.memory_space<vmem>>, vector<128x512xbf16>
    %cst_12 = arith.constant dense<0.000000e+00> : vector<1x512xf32>
    %19 = tpu.matmul %17, %18, %cst_12 {dimension_numbers = #tpu.dot_dimension_numbers<[1], [0], [0], [1], [0, 0, 1, 1], [], []>} : vector<1x128xbf16>, vector<128x512xbf16>, vector<1x512xf32> -> vector<1x512xf32>
    %20 = arith.addf %16, %19 : vector<1x512xf32>
    %21 = vector.extract_strided_slice %20 {offsets = [0, 0], sizes = [1, 384], strides = [1, 1]} : vector<1x512xf32> to vector<1x384xf32>
    %22 = arith.negf %21 : vector<1x384xf32>
    %23 = math.exp %22 : vector<1x384xf32>
    %cst_13 = arith.constant 1.000000e+00 : f32
    %24 = vector.broadcast %cst_13 : f32 to vector<1x384xf32>
    %25 = arith.addf %24, %23 : vector<1x384xf32>
    %26 = arith.divf %24, %25 : vector<1x384xf32>
    %27 = vector.extract_strided_slice %20 {offsets = [0, 384], sizes = [1, 128], strides = [1, 1]} : vector<1x512xf32> to vector<1x128xf32>
    %28 = math.tanh %27 : vector<1x128xf32>
    %29 = vector.extract_strided_slice %26 {offsets = [0, 128], sizes = [1, 128], strides = [1, 1]} : vector<1x384xf32> to vector<1x128xf32>
    %30 = arith.mulf %29, %10 : vector<1x128xf32>
    %31 = vector.extract_strided_slice %26 {offsets = [0, 0], sizes = [1, 128], strides = [1, 1]} : vector<1x384xf32> to vector<1x128xf32>
    %32 = arith.mulf %31, %28 : vector<1x128xf32>
    %33 = arith.addf %30, %32 : vector<1x128xf32>
    %34 = vector.extract_strided_slice %26 {offsets = [0, 256], sizes = [1, 128], strides = [1, 1]} : vector<1x384xf32> to vector<1x128xf32>
    %35 = math.tanh %33 : vector<1x128xf32>
    %36 = arith.mulf %34, %35 : vector<1x128xf32>
    %37 = arith.truncf %36 : vector<1x128xf32> to vector<1x128xbf16>
    %38 = vector.extract_strided_slice %15 {offsets = [1, 0], sizes = [1, 512], strides = [1, 1]} : vector<16x512xf32> to vector<1x512xf32>
    %39 = arith.truncf %36 : vector<1x128xf32> to vector<1x128xbf16>
    %c0_14 = arith.constant 0 : index
    %c0_15 = arith.constant 0 : index
    %40 = vector.load %arg2[%c0_14, %c0_15] : memref<128x512xbf16, #tpu.memory_space<vmem>>, vector<128x512xbf16>
    %cst_16 = arith.constant dense<0.000000e+00> : vector<1x512xf32>
    %41 = tpu.matmul %39, %40, %cst_16 {dimension_numbers = #tpu.dot_dimension_numbers<[1], [0], [0], [1], [0, 0, 1, 1], [], []>} : vector<1x128xbf16>, vector<128x512xbf16>, vector<1x512xf32> -> vector<1x512xf32>
    %42 = arith.addf %38, %41 : vector<1x512xf32>
    %43 = vector.extract_strided_slice %42 {offsets = [0, 0], sizes = [1, 384], strides = [1, 1]} : vector<1x512xf32> to vector<1x384xf32>
    %44 = arith.negf %43 : vector<1x384xf32>
    %45 = math.exp %44 : vector<1x384xf32>
    %cst_17 = arith.constant 1.000000e+00 : f32
    %46 = vector.broadcast %cst_17 : f32 to vector<1x384xf32>
    %47 = arith.addf %46, %45 : vector<1x384xf32>
    %48 = arith.divf %46, %47 : vector<1x384xf32>
    %49 = vector.extract_strided_slice %42 {offsets = [0, 384], sizes = [1, 128], strides = [1, 1]} : vector<1x512xf32> to vector<1x128xf32>
    %50 = math.tanh %49 : vector<1x128xf32>
    %51 = vector.extract_strided_slice %48 {offsets = [0, 128], sizes = [1, 128], strides = [1, 1]} : vector<1x384xf32> to vector<1x128xf32>
    %52 = arith.mulf %51, %33 : vector<1x128xf32>
    %53 = vector.extract_strided_slice %48 {offsets = [0, 0], sizes = [1, 128], strides = [1, 1]} : vector<1x384xf32> to vector<1x128xf32>
    %54 = arith.mulf %53, %50 : vector<1x128xf32>
    %55 = arith.addf %52, %54 : vector<1x128xf32>
    %56 = vector.extract_strided_slice %48 {offsets = [0, 256], sizes = [1, 128], strides = [1, 1]} : vector<1x384xf32> to vector<1x128xf32>
    %57 = math.tanh %55 : vector<1x128xf32>
    %58 = arith.mulf %56, %57 : vector<1x128xf32>
    %59 = arith.truncf %58 : vector<1x128xf32> to vector<1x128xbf16>
    %60 = vector.extract_strided_slice %15 {offsets = [2, 0], sizes = [1, 512], strides = [1, 1]} : vector<16x512xf32> to vector<1x512xf32>
    %61 = arith.truncf %58 : vector<1x128xf32> to vector<1x128xbf16>
    %c0_18 = arith.constant 0 : index
    %c0_19 = arith.constant 0 : index
    %62 = vector.load %arg2[%c0_18, %c0_19] : memref<128x512xbf16, #tpu.memory_space<vmem>>, vector<128x512xbf16>
    %cst_20 = arith.constant dense<0.000000e+00> : vector<1x512xf32>
    %63 = tpu.matmul %61, %62, %cst_20 {dimension_numbers = #tpu.dot_dimension_numbers<[1], [0], [0], [1], [0, 0, 1, 1], [], []>} : vector<1x128xbf16>, vector<128x512xbf16>, vector<1x512xf32> -> vector<1x512xf32>
    %64 = arith.addf %60, %63 : vector<1x512xf32>
    %65 = vector.extract_strided_slice %64 {offsets = [0, 0], sizes = [1, 384], strides = [1, 1]} : vector<1x512xf32> to vector<1x384xf32>
    %66 = arith.negf %65 : vector<1x384xf32>
    %67 = math.exp %66 : vector<1x384xf32>
    %cst_21 = arith.constant 1.000000e+00 : f32
    %68 = vector.broadcast %cst_21 : f32 to vector<1x384xf32>
    %69 = arith.addf %68, %67 : vector<1x384xf32>
    %70 = arith.divf %68, %69 : vector<1x384xf32>
    %71 = vector.extract_strided_slice %64 {offsets = [0, 384], sizes = [1, 128], strides = [1, 1]} : vector<1x512xf32> to vector<1x128xf32>
    %72 = math.tanh %71 : vector<1x128xf32>
    %73 = vector.extract_strided_slice %70 {offsets = [0, 128], sizes = [1, 128], strides = [1, 1]} : vector<1x384xf32> to vector<1x128xf32>
    %74 = arith.mulf %73, %55 : vector<1x128xf32>
    %75 = vector.extract_strided_slice %70 {offsets = [0, 0], sizes = [1, 128], strides = [1, 1]} : vector<1x384xf32> to vector<1x128xf32>
    %76 = arith.mulf %75, %72 : vector<1x128xf32>
    %77 = arith.addf %74, %76 : vector<1x128xf32>
    %78 = vector.extract_strided_slice %70 {offsets = [0, 256], sizes = [1, 128], strides = [1, 1]} : vector<1x384xf32> to vector<1x128xf32>
    %79 = math.tanh %77 : vector<1x128xf32>
    %80 = arith.mulf %78, %79 : vector<1x128xf32>
    %81 = arith.truncf %80 : vector<1x128xf32> to vector<1x128xbf16>
    %82 = vector.extract_strided_slice %15 {offsets = [3, 0], sizes = [1, 512], strides = [1, 1]} : vector<16x512xf32> to vector<1x512xf32>
    %83 = arith.truncf %80 : vector<1x128xf32> to vector<1x128xbf16>
    %c0_22 = arith.constant 0 : index
    %c0_23 = arith.constant 0 : index
    %84 = vector.load %arg2[%c0_22, %c0_23] : memref<128x512xbf16, #tpu.memory_space<vmem>>, vector<128x512xbf16>
    %cst_24 = arith.constant dense<0.000000e+00> : vector<1x512xf32>
    %85 = tpu.matmul %83, %84, %cst_24 {dimension_numbers = #tpu.dot_dimension_numbers<[1], [0], [0], [1], [0, 0, 1, 1], [], []>} : vector<1x128xbf16>, vector<128x512xbf16>, vector<1x512xf32> -> vector<1x512xf32>
    %86 = arith.addf %82, %85 : vector<1x512xf32>
    %87 = vector.extract_strided_slice %86 {offsets = [0, 0], sizes = [1, 384], strides = [1, 1]} : vector<1x512xf32> to vector<1x384xf32>
    %88 = arith.negf %87 : vector<1x384xf32>
    %89 = math.exp %88 : vector<1x384xf32>
    %cst_25 = arith.constant 1.000000e+00 : f32
    %90 = vector.broadcast %cst_25 : f32 to vector<1x384xf32>
    %91 = arith.addf %90, %89 : vector<1x384xf32>
    %92 = arith.divf %90, %91 : vector<1x384xf32>
    %93 = vector.extract_strided_slice %86 {offsets = [0, 384], sizes = [1, 128], strides = [1, 1]} : vector<1x512xf32> to vector<1x128xf32>
    %94 = math.tanh %93 : vector<1x128xf32>
    %95 = vector.extract_strided_slice %92 {offsets = [0, 128], sizes = [1, 128], strides = [1, 1]} : vector<1x384xf32> to vector<1x128xf32>
    %96 = arith.mulf %95, %77 : vector<1x128xf32>
    %97 = vector.extract_strided_slice %92 {offsets = [0, 0], sizes = [1, 128], strides = [1, 1]} : vector<1x384xf32> to vector<1x128xf32>
    %98 = arith.mulf %97, %94 : vector<1x128xf32>
    %99 = arith.addf %96, %98 : vector<1x128xf32>
    %100 = vector.extract_strided_slice %92 {offsets = [0, 256], sizes = [1, 128], strides = [1, 1]} : vector<1x384xf32> to vector<1x128xf32>
    %101 = math.tanh %99 : vector<1x128xf32>
    %102 = arith.mulf %100, %101 : vector<1x128xf32>
    %103 = arith.truncf %102 : vector<1x128xf32> to vector<1x128xbf16>
    %104 = vector.extract_strided_slice %15 {offsets = [4, 0], sizes = [1, 512], strides = [1, 1]} : vector<16x512xf32> to vector<1x512xf32>
    %105 = arith.truncf %102 : vector<1x128xf32> to vector<1x128xbf16>
    %c0_26 = arith.constant 0 : index
    %c0_27 = arith.constant 0 : index
    %106 = vector.load %arg2[%c0_26, %c0_27] : memref<128x512xbf16, #tpu.memory_space<vmem>>, vector<128x512xbf16>
    %cst_28 = arith.constant dense<0.000000e+00> : vector<1x512xf32>
    %107 = tpu.matmul %105, %106, %cst_28 {dimension_numbers = #tpu.dot_dimension_numbers<[1], [0], [0], [1], [0, 0, 1, 1], [], []>} : vector<1x128xbf16>, vector<128x512xbf16>, vector<1x512xf32> -> vector<1x512xf32>
    %108 = arith.addf %104, %107 : vector<1x512xf32>
    %109 = vector.extract_strided_slice %108 {offsets = [0, 0], sizes = [1, 384], strides = [1, 1]} : vector<1x512xf32> to vector<1x384xf32>
    %110 = arith.negf %109 : vector<1x384xf32>
    %111 = math.exp %110 : vector<1x384xf32>
    %cst_29 = arith.constant 1.000000e+00 : f32
    %112 = vector.broadcast %cst_29 : f32 to vector<1x384xf32>
    %113 = arith.addf %112, %111 : vector<1x384xf32>
    %114 = arith.divf %112, %113 : vector<1x384xf32>
    %115 = vector.extract_strided_slice %108 {offsets = [0, 384], sizes = [1, 128], strides = [1, 1]} : vector<1x512xf32> to vector<1x128xf32>
    %116 = math.tanh %115 : vector<1x128xf32>
    %117 = vector.extract_strided_slice %114 {offsets = [0, 128], sizes = [1, 128], strides = [1, 1]} : vector<1x384xf32> to vector<1x128xf32>
    %118 = arith.mulf %117, %99 : vector<1x128xf32>
    %119 = vector.extract_strided_slice %114 {offsets = [0, 0], sizes = [1, 128], strides = [1, 1]} : vector<1x384xf32> to vector<1x128xf32>
    %120 = arith.mulf %119, %116 : vector<1x128xf32>
    %121 = arith.addf %118, %120 : vector<1x128xf32>
    %122 = vector.extract_strided_slice %114 {offsets = [0, 256], sizes = [1, 128], strides = [1, 1]} : vector<1x384xf32> to vector<1x128xf32>
    %123 = math.tanh %121 : vector<1x128xf32>
    %124 = arith.mulf %122, %123 : vector<1x128xf32>
    %125 = arith.truncf %124 : vector<1x128xf32> to vector<1x128xbf16>
    %126 = vector.extract_strided_slice %15 {offsets = [5, 0], sizes = [1, 512], strides = [1, 1]} : vector<16x512xf32> to vector<1x512xf32>
    %127 = arith.truncf %124 : vector<1x128xf32> to vector<1x128xbf16>
    %c0_30 = arith.constant 0 : index
    %c0_31 = arith.constant 0 : index
    %128 = vector.load %arg2[%c0_30, %c0_31] : memref<128x512xbf16, #tpu.memory_space<vmem>>, vector<128x512xbf16>
    %cst_32 = arith.constant dense<0.000000e+00> : vector<1x512xf32>
    %129 = tpu.matmul %127, %128, %cst_32 {dimension_numbers = #tpu.dot_dimension_numbers<[1], [0], [0], [1], [0, 0, 1, 1], [], []>} : vector<1x128xbf16>, vector<128x512xbf16>, vector<1x512xf32> -> vector<1x512xf32>
    %130 = arith.addf %126, %129 : vector<1x512xf32>
    %131 = vector.extract_strided_slice %130 {offsets = [0, 0], sizes = [1, 384], strides = [1, 1]} : vector<1x512xf32> to vector<1x384xf32>
    %132 = arith.negf %131 : vector<1x384xf32>
    %133 = math.exp %132 : vector<1x384xf32>
    %cst_33 = arith.constant 1.000000e+00 : f32
    %134 = vector.broadcast %cst_33 : f32 to vector<1x384xf32>
    %135 = arith.addf %134, %133 : vector<1x384xf32>
    %136 = arith.divf %134, %135 : vector<1x384xf32>
    %137 = vector.extract_strided_slice %130 {offsets = [0, 384], sizes = [1, 128], strides = [1, 1]} : vector<1x512xf32> to vector<1x128xf32>
    %138 = math.tanh %137 : vector<1x128xf32>
    %139 = vector.extract_strided_slice %136 {offsets = [0, 128], sizes = [1, 128], strides = [1, 1]} : vector<1x384xf32> to vector<1x128xf32>
    %140 = arith.mulf %139, %121 : vector<1x128xf32>
    %141 = vector.extract_strided_slice %136 {offsets = [0, 0], sizes = [1, 128], strides = [1, 1]} : vector<1x384xf32> to vector<1x128xf32>
    %142 = arith.mulf %141, %138 : vector<1x128xf32>
    %143 = arith.addf %140, %142 : vector<1x128xf32>
    %144 = vector.extract_strided_slice %136 {offsets = [0, 256], sizes = [1, 128], strides = [1, 1]} : vector<1x384xf32> to vector<1x128xf32>
    %145 = math.tanh %143 : vector<1x128xf32>
    %146 = arith.mulf %144, %145 : vector<1x128xf32>
    %147 = arith.truncf %146 : vector<1x128xf32> to vector<1x128xbf16>
    %148 = vector.extract_strided_slice %15 {offsets = [6, 0], sizes = [1, 512], strides = [1, 1]} : vector<16x512xf32> to vector<1x512xf32>
    %149 = arith.truncf %146 : vector<1x128xf32> to vector<1x128xbf16>
    %c0_34 = arith.constant 0 : index
    %c0_35 = arith.constant 0 : index
    %150 = vector.load %arg2[%c0_34, %c0_35] : memref<128x512xbf16, #tpu.memory_space<vmem>>, vector<128x512xbf16>
    %cst_36 = arith.constant dense<0.000000e+00> : vector<1x512xf32>
    %151 = tpu.matmul %149, %150, %cst_36 {dimension_numbers = #tpu.dot_dimension_numbers<[1], [0], [0], [1], [0, 0, 1, 1], [], []>} : vector<1x128xbf16>, vector<128x512xbf16>, vector<1x512xf32> -> vector<1x512xf32>
    %152 = arith.addf %148, %151 : vector<1x512xf32>
    %153 = vector.extract_strided_slice %152 {offsets = [0, 0], sizes = [1, 384], strides = [1, 1]} : vector<1x512xf32> to vector<1x384xf32>
    %154 = arith.negf %153 : vector<1x384xf32>
    %155 = math.exp %154 : vector<1x384xf32>
    %cst_37 = arith.constant 1.000000e+00 : f32
    %156 = vector.broadcast %cst_37 : f32 to vector<1x384xf32>
    %157 = arith.addf %156, %155 : vector<1x384xf32>
    %158 = arith.divf %156, %157 : vector<1x384xf32>
    %159 = vector.extract_strided_slice %152 {offsets = [0, 384], sizes = [1, 128], strides = [1, 1]} : vector<1x512xf32> to vector<1x128xf32>
    %160 = math.tanh %159 : vector<1x128xf32>
    %161 = vector.extract_strided_slice %158 {offsets = [0, 128], sizes = [1, 128], strides = [1, 1]} : vector<1x384xf32> to vector<1x128xf32>
    %162 = arith.mulf %161, %143 : vector<1x128xf32>
    %163 = vector.extract_strided_slice %158 {offsets = [0, 0], sizes = [1, 128], strides = [1, 1]} : vector<1x384xf32> to vector<1x128xf32>
    %164 = arith.mulf %163, %160 : vector<1x128xf32>
    %165 = arith.addf %162, %164 : vector<1x128xf32>
    %166 = vector.extract_strided_slice %158 {offsets = [0, 256], sizes = [1, 128], strides = [1, 1]} : vector<1x384xf32> to vector<1x128xf32>
    %167 = math.tanh %165 : vector<1x128xf32>
    %168 = arith.mulf %166, %167 : vector<1x128xf32>
    %169 = arith.truncf %168 : vector<1x128xf32> to vector<1x128xbf16>
    %170 = vector.extract_strided_slice %15 {offsets = [7, 0], sizes = [1, 512], strides = [1, 1]} : vector<16x512xf32> to vector<1x512xf32>
    %171 = arith.truncf %168 : vector<1x128xf32> to vector<1x128xbf16>
    %c0_38 = arith.constant 0 : index
    %c0_39 = arith.constant 0 : index
    %172 = vector.load %arg2[%c0_38, %c0_39] : memref<128x512xbf16, #tpu.memory_space<vmem>>, vector<128x512xbf16>
    %cst_40 = arith.constant dense<0.000000e+00> : vector<1x512xf32>
    %173 = tpu.matmul %171, %172, %cst_40 {dimension_numbers = #tpu.dot_dimension_numbers<[1], [0], [0], [1], [0, 0, 1, 1], [], []>} : vector<1x128xbf16>, vector<128x512xbf16>, vector<1x512xf32> -> vector<1x512xf32>
    %174 = arith.addf %170, %173 : vector<1x512xf32>
    %175 = vector.extract_strided_slice %174 {offsets = [0, 0], sizes = [1, 384], strides = [1, 1]} : vector<1x512xf32> to vector<1x384xf32>
    %176 = arith.negf %175 : vector<1x384xf32>
    %177 = math.exp %176 : vector<1x384xf32>
    %cst_41 = arith.constant 1.000000e+00 : f32
    %178 = vector.broadcast %cst_41 : f32 to vector<1x384xf32>
    %179 = arith.addf %178, %177 : vector<1x384xf32>
    %180 = arith.divf %178, %179 : vector<1x384xf32>
    %181 = vector.extract_strided_slice %174 {offsets = [0, 384], sizes = [1, 128], strides = [1, 1]} : vector<1x512xf32> to vector<1x128xf32>
    %182 = math.tanh %181 : vector<1x128xf32>
    %183 = vector.extract_strided_slice %180 {offsets = [0, 128], sizes = [1, 128], strides = [1, 1]} : vector<1x384xf32> to vector<1x128xf32>
    %184 = arith.mulf %183, %165 : vector<1x128xf32>
    %185 = vector.extract_strided_slice %180 {offsets = [0, 0], sizes = [1, 128], strides = [1, 1]} : vector<1x384xf32> to vector<1x128xf32>
    %186 = arith.mulf %185, %182 : vector<1x128xf32>
    %187 = arith.addf %184, %186 : vector<1x128xf32>
    %188 = vector.extract_strided_slice %180 {offsets = [0, 256], sizes = [1, 128], strides = [1, 1]} : vector<1x384xf32> to vector<1x128xf32>
    %189 = math.tanh %187 : vector<1x128xf32>
    %190 = arith.mulf %188, %189 : vector<1x128xf32>
    %191 = arith.truncf %190 : vector<1x128xf32> to vector<1x128xbf16>
    %192 = vector.extract_strided_slice %15 {offsets = [8, 0], sizes = [1, 512], strides = [1, 1]} : vector<16x512xf32> to vector<1x512xf32>
    %193 = arith.truncf %190 : vector<1x128xf32> to vector<1x128xbf16>
    %c0_42 = arith.constant 0 : index
    %c0_43 = arith.constant 0 : index
    %194 = vector.load %arg2[%c0_42, %c0_43] : memref<128x512xbf16, #tpu.memory_space<vmem>>, vector<128x512xbf16>
    %cst_44 = arith.constant dense<0.000000e+00> : vector<1x512xf32>
    %195 = tpu.matmul %193, %194, %cst_44 {dimension_numbers = #tpu.dot_dimension_numbers<[1], [0], [0], [1], [0, 0, 1, 1], [], []>} : vector<1x128xbf16>, vector<128x512xbf16>, vector<1x512xf32> -> vector<1x512xf32>
    %196 = arith.addf %192, %195 : vector<1x512xf32>
    %197 = vector.extract_strided_slice %196 {offsets = [0, 0], sizes = [1, 384], strides = [1, 1]} : vector<1x512xf32> to vector<1x384xf32>
    %198 = arith.negf %197 : vector<1x384xf32>
    %199 = math.exp %198 : vector<1x384xf32>
    %cst_45 = arith.constant 1.000000e+00 : f32
    %200 = vector.broadcast %cst_45 : f32 to vector<1x384xf32>
    %201 = arith.addf %200, %199 : vector<1x384xf32>
    %202 = arith.divf %200, %201 : vector<1x384xf32>
    %203 = vector.extract_strided_slice %196 {offsets = [0, 384], sizes = [1, 128], strides = [1, 1]} : vector<1x512xf32> to vector<1x128xf32>
    %204 = math.tanh %203 : vector<1x128xf32>
    %205 = vector.extract_strided_slice %202 {offsets = [0, 128], sizes = [1, 128], strides = [1, 1]} : vector<1x384xf32> to vector<1x128xf32>
    %206 = arith.mulf %205, %187 : vector<1x128xf32>
    %207 = vector.extract_strided_slice %202 {offsets = [0, 0], sizes = [1, 128], strides = [1, 1]} : vector<1x384xf32> to vector<1x128xf32>
    %208 = arith.mulf %207, %204 : vector<1x128xf32>
    %209 = arith.addf %206, %208 : vector<1x128xf32>
    %210 = vector.extract_strided_slice %202 {offsets = [0, 256], sizes = [1, 128], strides = [1, 1]} : vector<1x384xf32> to vector<1x128xf32>
    %211 = math.tanh %209 : vector<1x128xf32>
    %212 = arith.mulf %210, %211 : vector<1x128xf32>
    %213 = arith.truncf %212 : vector<1x128xf32> to vector<1x128xbf16>
    %214 = vector.extract_strided_slice %15 {offsets = [9, 0], sizes = [1, 512], strides = [1, 1]} : vector<16x512xf32> to vector<1x512xf32>
    %215 = arith.truncf %212 : vector<1x128xf32> to vector<1x128xbf16>
    %c0_46 = arith.constant 0 : index
    %c0_47 = arith.constant 0 : index
    %216 = vector.load %arg2[%c0_46, %c0_47] : memref<128x512xbf16, #tpu.memory_space<vmem>>, vector<128x512xbf16>
    %cst_48 = arith.constant dense<0.000000e+00> : vector<1x512xf32>
    %217 = tpu.matmul %215, %216, %cst_48 {dimension_numbers = #tpu.dot_dimension_numbers<[1], [0], [0], [1], [0, 0, 1, 1], [], []>} : vector<1x128xbf16>, vector<128x512xbf16>, vector<1x512xf32> -> vector<1x512xf32>
    %218 = arith.addf %214, %217 : vector<1x512xf32>
    %219 = vector.extract_strided_slice %218 {offsets = [0, 0], sizes = [1, 384], strides = [1, 1]} : vector<1x512xf32> to vector<1x384xf32>
    %220 = arith.negf %219 : vector<1x384xf32>
    %221 = math.exp %220 : vector<1x384xf32>
    %cst_49 = arith.constant 1.000000e+00 : f32
    %222 = vector.broadcast %cst_49 : f32 to vector<1x384xf32>
    %223 = arith.addf %222, %221 : vector<1x384xf32>
    %224 = arith.divf %222, %223 : vector<1x384xf32>
    %225 = vector.extract_strided_slice %218 {offsets = [0, 384], sizes = [1, 128], strides = [1, 1]} : vector<1x512xf32> to vector<1x128xf32>
    %226 = math.tanh %225 : vector<1x128xf32>
    %227 = vector.extract_strided_slice %224 {offsets = [0, 128], sizes = [1, 128], strides = [1, 1]} : vector<1x384xf32> to vector<1x128xf32>
    %228 = arith.mulf %227, %209 : vector<1x128xf32>
    %229 = vector.extract_strided_slice %224 {offsets = [0, 0], sizes = [1, 128], strides = [1, 1]} : vector<1x384xf32> to vector<1x128xf32>
    %230 = arith.mulf %229, %226 : vector<1x128xf32>
    %231 = arith.addf %228, %230 : vector<1x128xf32>
    %232 = vector.extract_strided_slice %224 {offsets = [0, 256], sizes = [1, 128], strides = [1, 1]} : vector<1x384xf32> to vector<1x128xf32>
    %233 = math.tanh %231 : vector<1x128xf32>
    %234 = arith.mulf %232, %233 : vector<1x128xf32>
    %235 = arith.truncf %234 : vector<1x128xf32> to vector<1x128xbf16>
    %236 = vector.extract_strided_slice %15 {offsets = [10, 0], sizes = [1, 512], strides = [1, 1]} : vector<16x512xf32> to vector<1x512xf32>
    %237 = arith.truncf %234 : vector<1x128xf32> to vector<1x128xbf16>
    %c0_50 = arith.constant 0 : index
    %c0_51 = arith.constant 0 : index
    %238 = vector.load %arg2[%c0_50, %c0_51] : memref<128x512xbf16, #tpu.memory_space<vmem>>, vector<128x512xbf16>
    %cst_52 = arith.constant dense<0.000000e+00> : vector<1x512xf32>
    %239 = tpu.matmul %237, %238, %cst_52 {dimension_numbers = #tpu.dot_dimension_numbers<[1], [0], [0], [1], [0, 0, 1, 1], [], []>} : vector<1x128xbf16>, vector<128x512xbf16>, vector<1x512xf32> -> vector<1x512xf32>
    %240 = arith.addf %236, %239 : vector<1x512xf32>
    %241 = vector.extract_strided_slice %240 {offsets = [0, 0], sizes = [1, 384], strides = [1, 1]} : vector<1x512xf32> to vector<1x384xf32>
    %242 = arith.negf %241 : vector<1x384xf32>
    %243 = math.exp %242 : vector<1x384xf32>
    %cst_53 = arith.constant 1.000000e+00 : f32
    %244 = vector.broadcast %cst_53 : f32 to vector<1x384xf32>
    %245 = arith.addf %244, %243 : vector<1x384xf32>
    %246 = arith.divf %244, %245 : vector<1x384xf32>
    %247 = vector.extract_strided_slice %240 {offsets = [0, 384], sizes = [1, 128], strides = [1, 1]} : vector<1x512xf32> to vector<1x128xf32>
    %248 = math.tanh %247 : vector<1x128xf32>
    %249 = vector.extract_strided_slice %246 {offsets = [0, 128], sizes = [1, 128], strides = [1, 1]} : vector<1x384xf32> to vector<1x128xf32>
    %250 = arith.mulf %249, %231 : vector<1x128xf32>
    %251 = vector.extract_strided_slice %246 {offsets = [0, 0], sizes = [1, 128], strides = [1, 1]} : vector<1x384xf32> to vector<1x128xf32>
    %252 = arith.mulf %251, %248 : vector<1x128xf32>
    %253 = arith.addf %250, %252 : vector<1x128xf32>
    %254 = vector.extract_strided_slice %246 {offsets = [0, 256], sizes = [1, 128], strides = [1, 1]} : vector<1x384xf32> to vector<1x128xf32>
    %255 = math.tanh %253 : vector<1x128xf32>
    %256 = arith.mulf %254, %255 : vector<1x128xf32>
    %257 = arith.truncf %256 : vector<1x128xf32> to vector<1x128xbf16>
    %258 = vector.extract_strided_slice %15 {offsets = [11, 0], sizes = [1, 512], strides = [1, 1]} : vector<16x512xf32> to vector<1x512xf32>
    %259 = arith.truncf %256 : vector<1x128xf32> to vector<1x128xbf16>
    %c0_54 = arith.constant 0 : index
    %c0_55 = arith.constant 0 : index
    %260 = vector.load %arg2[%c0_54, %c0_55] : memref<128x512xbf16, #tpu.memory_space<vmem>>, vector<128x512xbf16>
    %cst_56 = arith.constant dense<0.000000e+00> : vector<1x512xf32>
    %261 = tpu.matmul %259, %260, %cst_56 {dimension_numbers = #tpu.dot_dimension_numbers<[1], [0], [0], [1], [0, 0, 1, 1], [], []>} : vector<1x128xbf16>, vector<128x512xbf16>, vector<1x512xf32> -> vector<1x512xf32>
    %262 = arith.addf %258, %261 : vector<1x512xf32>
    %263 = vector.extract_strided_slice %262 {offsets = [0, 0], sizes = [1, 384], strides = [1, 1]} : vector<1x512xf32> to vector<1x384xf32>
    %264 = arith.negf %263 : vector<1x384xf32>
    %265 = math.exp %264 : vector<1x384xf32>
    %cst_57 = arith.constant 1.000000e+00 : f32
    %266 = vector.broadcast %cst_57 : f32 to vector<1x384xf32>
    %267 = arith.addf %266, %265 : vector<1x384xf32>
    %268 = arith.divf %266, %267 : vector<1x384xf32>
    %269 = vector.extract_strided_slice %262 {offsets = [0, 384], sizes = [1, 128], strides = [1, 1]} : vector<1x512xf32> to vector<1x128xf32>
    %270 = math.tanh %269 : vector<1x128xf32>
    %271 = vector.extract_strided_slice %268 {offsets = [0, 128], sizes = [1, 128], strides = [1, 1]} : vector<1x384xf32> to vector<1x128xf32>
    %272 = arith.mulf %271, %253 : vector<1x128xf32>
    %273 = vector.extract_strided_slice %268 {offsets = [0, 0], sizes = [1, 128], strides = [1, 1]} : vector<1x384xf32> to vector<1x128xf32>
    %274 = arith.mulf %273, %270 : vector<1x128xf32>
    %275 = arith.addf %272, %274 : vector<1x128xf32>
    %276 = vector.extract_strided_slice %268 {offsets = [0, 256], sizes = [1, 128], strides = [1, 1]} : vector<1x384xf32> to vector<1x128xf32>
    %277 = math.tanh %275 : vector<1x128xf32>
    %278 = arith.mulf %276, %277 : vector<1x128xf32>
    %279 = arith.truncf %278 : vector<1x128xf32> to vector<1x128xbf16>
    %280 = vector.extract_strided_slice %15 {offsets = [12, 0], sizes = [1, 512], strides = [1, 1]} : vector<16x512xf32> to vector<1x512xf32>
    %281 = arith.truncf %278 : vector<1x128xf32> to vector<1x128xbf16>
    %c0_58 = arith.constant 0 : index
    %c0_59 = arith.constant 0 : index
    %282 = vector.load %arg2[%c0_58, %c0_59] : memref<128x512xbf16, #tpu.memory_space<vmem>>, vector<128x512xbf16>
    %cst_60 = arith.constant dense<0.000000e+00> : vector<1x512xf32>
    %283 = tpu.matmul %281, %282, %cst_60 {dimension_numbers = #tpu.dot_dimension_numbers<[1], [0], [0], [1], [0, 0, 1, 1], [], []>} : vector<1x128xbf16>, vector<128x512xbf16>, vector<1x512xf32> -> vector<1x512xf32>
    %284 = arith.addf %280, %283 : vector<1x512xf32>
    %285 = vector.extract_strided_slice %284 {offsets = [0, 0], sizes = [1, 384], strides = [1, 1]} : vector<1x512xf32> to vector<1x384xf32>
    %286 = arith.negf %285 : vector<1x384xf32>
    %287 = math.exp %286 : vector<1x384xf32>
    %cst_61 = arith.constant 1.000000e+00 : f32
    %288 = vector.broadcast %cst_61 : f32 to vector<1x384xf32>
    %289 = arith.addf %288, %287 : vector<1x384xf32>
    %290 = arith.divf %288, %289 : vector<1x384xf32>
    %291 = vector.extract_strided_slice %284 {offsets = [0, 384], sizes = [1, 128], strides = [1, 1]} : vector<1x512xf32> to vector<1x128xf32>
    %292 = math.tanh %291 : vector<1x128xf32>
    %293 = vector.extract_strided_slice %290 {offsets = [0, 128], sizes = [1, 128], strides = [1, 1]} : vector<1x384xf32> to vector<1x128xf32>
    %294 = arith.mulf %293, %275 : vector<1x128xf32>
    %295 = vector.extract_strided_slice %290 {offsets = [0, 0], sizes = [1, 128], strides = [1, 1]} : vector<1x384xf32> to vector<1x128xf32>
    %296 = arith.mulf %295, %292 : vector<1x128xf32>
    %297 = arith.addf %294, %296 : vector<1x128xf32>
    %298 = vector.extract_strided_slice %290 {offsets = [0, 256], sizes = [1, 128], strides = [1, 1]} : vector<1x384xf32> to vector<1x128xf32>
    %299 = math.tanh %297 : vector<1x128xf32>
    %300 = arith.mulf %298, %299 : vector<1x128xf32>
    %301 = arith.truncf %300 : vector<1x128xf32> to vector<1x128xbf16>
    %302 = vector.extract_strided_slice %15 {offsets = [13, 0], sizes = [1, 512], strides = [1, 1]} : vector<16x512xf32> to vector<1x512xf32>
    %303 = arith.truncf %300 : vector<1x128xf32> to vector<1x128xbf16>
    %c0_62 = arith.constant 0 : index
    %c0_63 = arith.constant 0 : index
    %304 = vector.load %arg2[%c0_62, %c0_63] : memref<128x512xbf16, #tpu.memory_space<vmem>>, vector<128x512xbf16>
    %cst_64 = arith.constant dense<0.000000e+00> : vector<1x512xf32>
    %305 = tpu.matmul %303, %304, %cst_64 {dimension_numbers = #tpu.dot_dimension_numbers<[1], [0], [0], [1], [0, 0, 1, 1], [], []>} : vector<1x128xbf16>, vector<128x512xbf16>, vector<1x512xf32> -> vector<1x512xf32>
    %306 = arith.addf %302, %305 : vector<1x512xf32>
    %307 = vector.extract_strided_slice %306 {offsets = [0, 0], sizes = [1, 384], strides = [1, 1]} : vector<1x512xf32> to vector<1x384xf32>
    %308 = arith.negf %307 : vector<1x384xf32>
    %309 = math.exp %308 : vector<1x384xf32>
    %cst_65 = arith.constant 1.000000e+00 : f32
    %310 = vector.broadcast %cst_65 : f32 to vector<1x384xf32>
    %311 = arith.addf %310, %309 : vector<1x384xf32>
    %312 = arith.divf %310, %311 : vector<1x384xf32>
    %313 = vector.extract_strided_slice %306 {offsets = [0, 384], sizes = [1, 128], strides = [1, 1]} : vector<1x512xf32> to vector<1x128xf32>
    %314 = math.tanh %313 : vector<1x128xf32>
    %315 = vector.extract_strided_slice %312 {offsets = [0, 128], sizes = [1, 128], strides = [1, 1]} : vector<1x384xf32> to vector<1x128xf32>
    %316 = arith.mulf %315, %297 : vector<1x128xf32>
    %317 = vector.extract_strided_slice %312 {offsets = [0, 0], sizes = [1, 128], strides = [1, 1]} : vector<1x384xf32> to vector<1x128xf32>
    %318 = arith.mulf %317, %314 : vector<1x128xf32>
    %319 = arith.addf %316, %318 : vector<1x128xf32>
    %320 = vector.extract_strided_slice %312 {offsets = [0, 256], sizes = [1, 128], strides = [1, 1]} : vector<1x384xf32> to vector<1x128xf32>
    %321 = math.tanh %319 : vector<1x128xf32>
    %322 = arith.mulf %320, %321 : vector<1x128xf32>
    %323 = arith.truncf %322 : vector<1x128xf32> to vector<1x128xbf16>
    %324 = vector.extract_strided_slice %15 {offsets = [14, 0], sizes = [1, 512], strides = [1, 1]} : vector<16x512xf32> to vector<1x512xf32>
    %325 = arith.truncf %322 : vector<1x128xf32> to vector<1x128xbf16>
    %c0_66 = arith.constant 0 : index
    %c0_67 = arith.constant 0 : index
    %326 = vector.load %arg2[%c0_66, %c0_67] : memref<128x512xbf16, #tpu.memory_space<vmem>>, vector<128x512xbf16>
    %cst_68 = arith.constant dense<0.000000e+00> : vector<1x512xf32>
    %327 = tpu.matmul %325, %326, %cst_68 {dimension_numbers = #tpu.dot_dimension_numbers<[1], [0], [0], [1], [0, 0, 1, 1], [], []>} : vector<1x128xbf16>, vector<128x512xbf16>, vector<1x512xf32> -> vector<1x512xf32>
    %328 = arith.addf %324, %327 : vector<1x512xf32>
    %329 = vector.extract_strided_slice %328 {offsets = [0, 0], sizes = [1, 384], strides = [1, 1]} : vector<1x512xf32> to vector<1x384xf32>
    %330 = arith.negf %329 : vector<1x384xf32>
    %331 = math.exp %330 : vector<1x384xf32>
    %cst_69 = arith.constant 1.000000e+00 : f32
    %332 = vector.broadcast %cst_69 : f32 to vector<1x384xf32>
    %333 = arith.addf %332, %331 : vector<1x384xf32>
    %334 = arith.divf %332, %333 : vector<1x384xf32>
    %335 = vector.extract_strided_slice %328 {offsets = [0, 384], sizes = [1, 128], strides = [1, 1]} : vector<1x512xf32> to vector<1x128xf32>
    %336 = math.tanh %335 : vector<1x128xf32>
    %337 = vector.extract_strided_slice %334 {offsets = [0, 128], sizes = [1, 128], strides = [1, 1]} : vector<1x384xf32> to vector<1x128xf32>
    %338 = arith.mulf %337, %319 : vector<1x128xf32>
    %339 = vector.extract_strided_slice %334 {offsets = [0, 0], sizes = [1, 128], strides = [1, 1]} : vector<1x384xf32> to vector<1x128xf32>
    %340 = arith.mulf %339, %336 : vector<1x128xf32>
    %341 = arith.addf %338, %340 : vector<1x128xf32>
    %342 = vector.extract_strided_slice %334 {offsets = [0, 256], sizes = [1, 128], strides = [1, 1]} : vector<1x384xf32> to vector<1x128xf32>
    %343 = math.tanh %341 : vector<1x128xf32>
    %344 = arith.mulf %342, %343 : vector<1x128xf32>
    %345 = arith.truncf %344 : vector<1x128xf32> to vector<1x128xbf16>
    %346 = vector.extract_strided_slice %15 {offsets = [15, 0], sizes = [1, 512], strides = [1, 1]} : vector<16x512xf32> to vector<1x512xf32>
    %347 = arith.truncf %344 : vector<1x128xf32> to vector<1x128xbf16>
    %c0_70 = arith.constant 0 : index
    %c0_71 = arith.constant 0 : index
    %348 = vector.load %arg2[%c0_70, %c0_71] : memref<128x512xbf16, #tpu.memory_space<vmem>>, vector<128x512xbf16>
    %cst_72 = arith.constant dense<0.000000e+00> : vector<1x512xf32>
    %349 = tpu.matmul %347, %348, %cst_72 {dimension_numbers = #tpu.dot_dimension_numbers<[1], [0], [0], [1], [0, 0, 1, 1], [], []>} : vector<1x128xbf16>, vector<128x512xbf16>, vector<1x512xf32> -> vector<1x512xf32>
    %350 = arith.addf %346, %349 : vector<1x512xf32>
    %351 = vector.extract_strided_slice %350 {offsets = [0, 0], sizes = [1, 384], strides = [1, 1]} : vector<1x512xf32> to vector<1x384xf32>
    %352 = arith.negf %351 : vector<1x384xf32>
    %353 = math.exp %352 : vector<1x384xf32>
    %cst_73 = arith.constant 1.000000e+00 : f32
    %354 = vector.broadcast %cst_73 : f32 to vector<1x384xf32>
    %355 = arith.addf %354, %353 : vector<1x384xf32>
    %356 = arith.divf %354, %355 : vector<1x384xf32>
    %357 = vector.extract_strided_slice %350 {offsets = [0, 384], sizes = [1, 128], strides = [1, 1]} : vector<1x512xf32> to vector<1x128xf32>
    %358 = math.tanh %357 : vector<1x128xf32>
    %359 = vector.extract_strided_slice %356 {offsets = [0, 128], sizes = [1, 128], strides = [1, 1]} : vector<1x384xf32> to vector<1x128xf32>
    %360 = arith.mulf %359, %341 : vector<1x128xf32>
    %361 = vector.extract_strided_slice %356 {offsets = [0, 0], sizes = [1, 128], strides = [1, 1]} : vector<1x384xf32> to vector<1x128xf32>
    %362 = arith.mulf %361, %358 : vector<1x128xf32>
    %363 = arith.addf %360, %362 : vector<1x128xf32>
    %364 = vector.extract_strided_slice %356 {offsets = [0, 256], sizes = [1, 128], strides = [1, 1]} : vector<1x384xf32> to vector<1x128xf32>
    %365 = math.tanh %363 : vector<1x128xf32>
    %366 = arith.mulf %364, %365 : vector<1x128xf32>
    %367 = arith.truncf %366 : vector<1x128xf32> to vector<1x128xbf16>
    %368 = tpu.concatenate %37, %59, %81, %103, %125, %147, %169, %191, %213, %235, %257, %279, %301, %323, %345, %367 in 0 : vector<1x128xbf16>, vector<1x128xbf16>, vector<1x128xbf16>, vector<1x128xbf16>, vector<1x128xbf16>, vector<1x128xbf16>, vector<1x128xbf16>, vector<1x128xbf16>, vector<1x128xbf16>, vector<1x128xbf16>, vector<1x128xbf16>, vector<1x128xbf16>, vector<1x128xbf16>, vector<1x128xbf16>, vector<1x128xbf16>, vector<1x128xbf16> -> vector<16x128xbf16>
    %369 = arith.index_cast %12 : i32 to index
    %c0_74 = arith.constant 0 : index
    %370 = vector.load %arg7[%369, %c0_74] : memref<16x128xbf16, #tpu.memory_space<vmem>>, vector<16x128xbf16>
    tpu.vector_store %arg7[%369, %c0_74], %368 {strides = array<i32>} : memref<16x128xbf16, #tpu.memory_space<vmem>>, vector<16x128xbf16>,
    %c1_i32 = arith.constant 1 : i32
    %c0_75 = arith.constant 0 : index
    %c0_76 = arith.constant 0 : index
    %371 = vector.load %arg7[%c0_75, %c0_76] : memref<16x128xbf16, #tpu.memory_space<vmem>>, vector<16x128xbf16>
    %c0_77 = arith.constant 0 : index
    %c0_78 = arith.constant 0 : index
    %372 = vector.load %arg4[%c0_77, %c0_78] : memref<128x512xbf16, #tpu.memory_space<vmem>>, vector<128x512xbf16>
    %cst_79 = arith.constant dense<0.000000e+00> : vector<16x512xf32>
    %373 = tpu.matmul %371, %372, %cst_79 {dimension_numbers = #tpu.dot_dimension_numbers<[1], [0], [0], [1], [0, 0, 1, 1], [], []>} : vector<16x128xbf16>, vector<128x512xbf16>, vector<16x512xf32> -> vector<16x512xf32>
    %c0_80 = arith.constant 0 : index
    %c0_81 = arith.constant 0 : index
    %374 = vector.load %arg6[%c0_80, %c0_81] : memref<1x512xf32, #tpu.memory_space<vmem>>, vector<1x512xf32>
    %375 = vector.broadcast %374 : vector<1x512xf32> to vector<16x512xf32>
    %376 = arith.addf %373, %375 : vector<16x512xf32>
    %377 = arith.truncf %376 : vector<16x512xf32> to vector<16x512xbf16>
    %c0_82 = arith.constant 0 : index
    %c0_83 = arith.constant 0 : index
    %378 = vector.load %arg8[%c0_82, %c0_83] : memref<16x512xbf16, #tpu.memory_space<vmem>>, vector<16x512xbf16>
    tpu.vector_store %arg8[%c0_82, %c0_83], %377 {strides = array<i32>} : memref<16x512xbf16, #tpu.memory_space<vmem>>, vector<16x512xbf16>,
    %cst_84 = arith.constant 0.000000e+00 : f32
    %379 = vector.broadcast %cst_84 : f32 to vector<1x128xf32>
    %cst_85 = arith.constant 0.000000e+00 : f32
    %380 = vector.broadcast %cst_85 : f32 to vector<1x128xf32>
    %c0_i32_86 = arith.constant 0 : i32
    %c16_i32_87 = arith.constant 16 : i32
    %381 = arith.muli %c0_i32_86, %c16_i32_87 : i32
    %382 = tpu.assume_multiple %381, 16 : i32
    %383 = arith.index_cast %382 : i32 to index
    %c0_88 = arith.constant 0 : index
    %384 = vector.load %arg8[%383, %c0_88] : memref<16x512xbf16, #tpu.memory_space<vmem>>, vector<16x512xbf16>
    %385 = arith.extf %384 : vector<16x512xbf16> to vector<16x512xf32>
    %386 = vector.extract_strided_slice %385 {offsets = [0, 0], sizes = [1, 512], strides = [1, 1]} : vector<16x512xf32> to vector<1x512xf32>
    %387 = arith.truncf %379 : vector<1x128xf32> to vector<1x128xbf16>
    %c0_89 = arith.constant 0 : index
    %c0_90 = arith.constant 0 : index
    %388 = vector.load %arg5[%c0_89, %c0_90] : memref<128x512xbf16, #tpu.memory_space<vmem>>, vector<128x512xbf16>
    %cst_91 = arith.constant dense<0.000000e+00> : vector<1x512xf32>
    %389 = tpu.matmul %387, %388, %cst_91 {dimension_numbers = #tpu.dot_dimension_numbers<[1], [0], [0], [1], [0, 0, 1, 1], [], []>} : vector<1x128xbf16>, vector<128x512xbf16>, vector<1x512xf32> -> vector<1x512xf32>
    %390 = arith.addf %386, %389 : vector<1x512xf32>
    %391 = vector.extract_strided_slice %390 {offsets = [0, 0], sizes = [1, 384], strides = [1, 1]} : vector<1x512xf32> to vector<1x384xf32>
    %392 = arith.negf %391 : vector<1x384xf32>
    %393 = math.exp %392 : vector<1x384xf32>
    %cst_92 = arith.constant 1.000000e+00 : f32
    %394 = vector.broadcast %cst_92 : f32 to vector<1x384xf32>
    %395 = arith.addf %394, %393 : vector<1x384xf32>
    %396 = arith.divf %394, %395 : vector<1x384xf32>
    %397 = vector.extract_strided_slice %390 {offsets = [0, 384], sizes = [1, 128], strides = [1, 1]} : vector<1x512xf32> to vector<1x128xf32>
    %398 = math.tanh %397 : vector<1x128xf32>
    %399 = vector.extract_strided_slice %396 {offsets = [0, 128], sizes = [1, 128], strides = [1, 1]} : vector<1x384xf32> to vector<1x128xf32>
    %400 = arith.mulf %399, %380 : vector<1x128xf32>
    %401 = vector.extract_strided_slice %396 {offsets = [0, 0], sizes = [1, 128], strides = [1, 1]} : vector<1x384xf32> to vector<1x128xf32>
    %402 = arith.mulf %401, %398 : vector<1x128xf32>
    %403 = arith.addf %400, %402 : vector<1x128xf32>
    %404 = vector.extract_strided_slice %396 {offsets = [0, 256], sizes = [1, 128], strides = [1, 1]} : vector<1x384xf32> to vector<1x128xf32>
    %405 = math.tanh %403 : vector<1x128xf32>
    %406 = arith.mulf %404, %405 : vector<1x128xf32>
    %407 = arith.truncf %406 : vector<1x128xf32> to vector<1x128xbf16>
    %408 = vector.extract_strided_slice %385 {offsets = [1, 0], sizes = [1, 512], strides = [1, 1]} : vector<16x512xf32> to vector<1x512xf32>
    %409 = arith.truncf %406 : vector<1x128xf32> to vector<1x128xbf16>
    %c0_93 = arith.constant 0 : index
    %c0_94 = arith.constant 0 : index
    %410 = vector.load %arg5[%c0_93, %c0_94] : memref<128x512xbf16, #tpu.memory_space<vmem>>, vector<128x512xbf16>
    %cst_95 = arith.constant dense<0.000000e+00> : vector<1x512xf32>
    %411 = tpu.matmul %409, %410, %cst_95 {dimension_numbers = #tpu.dot_dimension_numbers<[1], [0], [0], [1], [0, 0, 1, 1], [], []>} : vector<1x128xbf16>, vector<128x512xbf16>, vector<1x512xf32> -> vector<1x512xf32>
    %412 = arith.addf %408, %411 : vector<1x512xf32>
    %413 = vector.extract_strided_slice %412 {offsets = [0, 0], sizes = [1, 384], strides = [1, 1]} : vector<1x512xf32> to vector<1x384xf32>
    %414 = arith.negf %413 : vector<1x384xf32>
    %415 = math.exp %414 : vector<1x384xf32>
    %cst_96 = arith.constant 1.000000e+00 : f32
    %416 = vector.broadcast %cst_96 : f32 to vector<1x384xf32>
    %417 = arith.addf %416, %415 : vector<1x384xf32>
    %418 = arith.divf %416, %417 : vector<1x384xf32>
    %419 = vector.extract_strided_slice %412 {offsets = [0, 384], sizes = [1, 128], strides = [1, 1]} : vector<1x512xf32> to vector<1x128xf32>
    %420 = math.tanh %419 : vector<1x128xf32>
    %421 = vector.extract_strided_slice %418 {offsets = [0, 128], sizes = [1, 128], strides = [1, 1]} : vector<1x384xf32> to vector<1x128xf32>
    %422 = arith.mulf %421, %403 : vector<1x128xf32>
    %423 = vector.extract_strided_slice %418 {offsets = [0, 0], sizes = [1, 128], strides = [1, 1]} : vector<1x384xf32> to vector<1x128xf32>
    %424 = arith.mulf %423, %420 : vector<1x128xf32>
    %425 = arith.addf %422, %424 : vector<1x128xf32>
    %426 = vector.extract_strided_slice %418 {offsets = [0, 256], sizes = [1, 128], strides = [1, 1]} : vector<1x384xf32> to vector<1x128xf32>
    %427 = math.tanh %425 : vector<1x128xf32>
    %428 = arith.mulf %426, %427 : vector<1x128xf32>
    %429 = arith.truncf %428 : vector<1x128xf32> to vector<1x128xbf16>
    %430 = vector.extract_strided_slice %385 {offsets = [2, 0], sizes = [1, 512], strides = [1, 1]} : vector<16x512xf32> to vector<1x512xf32>
    %431 = arith.truncf %428 : vector<1x128xf32> to vector<1x128xbf16>
    %c0_97 = arith.constant 0 : index
    %c0_98 = arith.constant 0 : index
    %432 = vector.load %arg5[%c0_97, %c0_98] : memref<128x512xbf16, #tpu.memory_space<vmem>>, vector<128x512xbf16>
    %cst_99 = arith.constant dense<0.000000e+00> : vector<1x512xf32>
    %433 = tpu.matmul %431, %432, %cst_99 {dimension_numbers = #tpu.dot_dimension_numbers<[1], [0], [0], [1], [0, 0, 1, 1], [], []>} : vector<1x128xbf16>, vector<128x512xbf16>, vector<1x512xf32> -> vector<1x512xf32>
    %434 = arith.addf %430, %433 : vector<1x512xf32>
    %435 = vector.extract_strided_slice %434 {offsets = [0, 0], sizes = [1, 384], strides = [1, 1]} : vector<1x512xf32> to vector<1x384xf32>
    %436 = arith.negf %435 : vector<1x384xf32>
    %437 = math.exp %436 : vector<1x384xf32>
    %cst_100 = arith.constant 1.000000e+00 : f32
    %438 = vector.broadcast %cst_100 : f32 to vector<1x384xf32>
    %439 = arith.addf %438, %437 : vector<1x384xf32>
    %440 = arith.divf %438, %439 : vector<1x384xf32>
    %441 = vector.extract_strided_slice %434 {offsets = [0, 384], sizes = [1, 128], strides = [1, 1]} : vector<1x512xf32> to vector<1x128xf32>
    %442 = math.tanh %441 : vector<1x128xf32>
    %443 = vector.extract_strided_slice %440 {offsets = [0, 128], sizes = [1, 128], strides = [1, 1]} : vector<1x384xf32> to vector<1x128xf32>
    %444 = arith.mulf %443, %425 : vector<1x128xf32>
    %445 = vector.extract_strided_slice %440 {offsets = [0, 0], sizes = [1, 128], strides = [1, 1]} : vector<1x384xf32> to vector<1x128xf32>
    %446 = arith.mulf %445, %442 : vector<1x128xf32>
    %447 = arith.addf %444, %446 : vector<1x128xf32>
    %448 = vector.extract_strided_slice %440 {offsets = [0, 256], sizes = [1, 128], strides = [1, 1]} : vector<1x384xf32> to vector<1x128xf32>
    %449 = math.tanh %447 : vector<1x128xf32>
    %450 = arith.mulf %448, %449 : vector<1x128xf32>
    %451 = arith.truncf %450 : vector<1x128xf32> to vector<1x128xbf16>
    %452 = vector.extract_strided_slice %385 {offsets = [3, 0], sizes = [1, 512], strides = [1, 1]} : vector<16x512xf32> to vector<1x512xf32>
    %453 = arith.truncf %450 : vector<1x128xf32> to vector<1x128xbf16>
    %c0_101 = arith.constant 0 : index
    %c0_102 = arith.constant 0 : index
    %454 = vector.load %arg5[%c0_101, %c0_102] : memref<128x512xbf16, #tpu.memory_space<vmem>>, vector<128x512xbf16>
    %cst_103 = arith.constant dense<0.000000e+00> : vector<1x512xf32>
    %455 = tpu.matmul %453, %454, %cst_103 {dimension_numbers = #tpu.dot_dimension_numbers<[1], [0], [0], [1], [0, 0, 1, 1], [], []>} : vector<1x128xbf16>, vector<128x512xbf16>, vector<1x512xf32> -> vector<1x512xf32>
    %456 = arith.addf %452, %455 : vector<1x512xf32>
    %457 = vector.extract_strided_slice %456 {offsets = [0, 0], sizes = [1, 384], strides = [1, 1]} : vector<1x512xf32> to vector<1x384xf32>
    %458 = arith.negf %457 : vector<1x384xf32>
    %459 = math.exp %458 : vector<1x384xf32>
    %cst_104 = arith.constant 1.000000e+00 : f32
    %460 = vector.broadcast %cst_104 : f32 to vector<1x384xf32>
    %461 = arith.addf %460, %459 : vector<1x384xf32>
    %462 = arith.divf %460, %461 : vector<1x384xf32>
    %463 = vector.extract_strided_slice %456 {offsets = [0, 384], sizes = [1, 128], strides = [1, 1]} : vector<1x512xf32> to vector<1x128xf32>
    %464 = math.tanh %463 : vector<1x128xf32>
    %465 = vector.extract_strided_slice %462 {offsets = [0, 128], sizes = [1, 128], strides = [1, 1]} : vector<1x384xf32> to vector<1x128xf32>
    %466 = arith.mulf %465, %447 : vector<1x128xf32>
    %467 = vector.extract_strided_slice %462 {offsets = [0, 0], sizes = [1, 128], strides = [1, 1]} : vector<1x384xf32> to vector<1x128xf32>
    %468 = arith.mulf %467, %464 : vector<1x128xf32>
    %469 = arith.addf %466, %468 : vector<1x128xf32>
    %470 = vector.extract_strided_slice %462 {offsets = [0, 256], sizes = [1, 128], strides = [1, 1]} : vector<1x384xf32> to vector<1x128xf32>
    %471 = math.tanh %469 : vector<1x128xf32>
    %472 = arith.mulf %470, %471 : vector<1x128xf32>
    %473 = arith.truncf %472 : vector<1x128xf32> to vector<1x128xbf16>
    %474 = vector.extract_strided_slice %385 {offsets = [4, 0], sizes = [1, 512], strides = [1, 1]} : vector<16x512xf32> to vector<1x512xf32>
    %475 = arith.truncf %472 : vector<1x128xf32> to vector<1x128xbf16>
    %c0_105 = arith.constant 0 : index
    %c0_106 = arith.constant 0 : index
    %476 = vector.load %arg5[%c0_105, %c0_106] : memref<128x512xbf16, #tpu.memory_space<vmem>>, vector<128x512xbf16>
    %cst_107 = arith.constant dense<0.000000e+00> : vector<1x512xf32>
    %477 = tpu.matmul %475, %476, %cst_107 {dimension_numbers = #tpu.dot_dimension_numbers<[1], [0], [0], [1], [0, 0, 1, 1], [], []>} : vector<1x128xbf16>, vector<128x512xbf16>, vector<1x512xf32> -> vector<1x512xf32>
    %478 = arith.addf %474, %477 : vector<1x512xf32>
    %479 = vector.extract_strided_slice %478 {offsets = [0, 0], sizes = [1, 384], strides = [1, 1]} : vector<1x512xf32> to vector<1x384xf32>
    %480 = arith.negf %479 : vector<1x384xf32>
    %481 = math.exp %480 : vector<1x384xf32>
    %cst_108 = arith.constant 1.000000e+00 : f32
    %482 = vector.broadcast %cst_108 : f32 to vector<1x384xf32>
    %483 = arith.addf %482, %481 : vector<1x384xf32>
    %484 = arith.divf %482, %483 : vector<1x384xf32>
    %485 = vector.extract_strided_slice %478 {offsets = [0, 384], sizes = [1, 128], strides = [1, 1]} : vector<1x512xf32> to vector<1x128xf32>
    %486 = math.tanh %485 : vector<1x128xf32>
    %487 = vector.extract_strided_slice %484 {offsets = [0, 128], sizes = [1, 128], strides = [1, 1]} : vector<1x384xf32> to vector<1x128xf32>
    %488 = arith.mulf %487, %469 : vector<1x128xf32>
    %489 = vector.extract_strided_slice %484 {offsets = [0, 0], sizes = [1, 128], strides = [1, 1]} : vector<1x384xf32> to vector<1x128xf32>
    %490 = arith.mulf %489, %486 : vector<1x128xf32>
    %491 = arith.addf %488, %490 : vector<1x128xf32>
    %492 = vector.extract_strided_slice %484 {offsets = [0, 256], sizes = [1, 128], strides = [1, 1]} : vector<1x384xf32> to vector<1x128xf32>
    %493 = math.tanh %491 : vector<1x128xf32>
    %494 = arith.mulf %492, %493 : vector<1x128xf32>
    %495 = arith.truncf %494 : vector<1x128xf32> to vector<1x128xbf16>
    %496 = vector.extract_strided_slice %385 {offsets = [5, 0], sizes = [1, 512], strides = [1, 1]} : vector<16x512xf32> to vector<1x512xf32>
    %497 = arith.truncf %494 : vector<1x128xf32> to vector<1x128xbf16>
    %c0_109 = arith.constant 0 : index
    %c0_110 = arith.constant 0 : index
    %498 = vector.load %arg5[%c0_109, %c0_110] : memref<128x512xbf16, #tpu.memory_space<vmem>>, vector<128x512xbf16>
    %cst_111 = arith.constant dense<0.000000e+00> : vector<1x512xf32>
    %499 = tpu.matmul %497, %498, %cst_111 {dimension_numbers = #tpu.dot_dimension_numbers<[1], [0], [0], [1], [0, 0, 1, 1], [], []>} : vector<1x128xbf16>, vector<128x512xbf16>, vector<1x512xf32> -> vector<1x512xf32>
    %500 = arith.addf %496, %499 : vector<1x512xf32>
    %501 = vector.extract_strided_slice %500 {offsets = [0, 0], sizes = [1, 384], strides = [1, 1]} : vector<1x512xf32> to vector<1x384xf32>
    %502 = arith.negf %501 : vector<1x384xf32>
    %503 = math.exp %502 : vector<1x384xf32>
    %cst_112 = arith.constant 1.000000e+00 : f32
    %504 = vector.broadcast %cst_112 : f32 to vector<1x384xf32>
    %505 = arith.addf %504, %503 : vector<1x384xf32>
    %506 = arith.divf %504, %505 : vector<1x384xf32>
    %507 = vector.extract_strided_slice %500 {offsets = [0, 384], sizes = [1, 128], strides = [1, 1]} : vector<1x512xf32> to vector<1x128xf32>
    %508 = math.tanh %507 : vector<1x128xf32>
    %509 = vector.extract_strided_slice %506 {offsets = [0, 128], sizes = [1, 128], strides = [1, 1]} : vector<1x384xf32> to vector<1x128xf32>
    %510 = arith.mulf %509, %491 : vector<1x128xf32>
    %511 = vector.extract_strided_slice %506 {offsets = [0, 0], sizes = [1, 128], strides = [1, 1]} : vector<1x384xf32> to vector<1x128xf32>
    %512 = arith.mulf %511, %508 : vector<1x128xf32>
    %513 = arith.addf %510, %512 : vector<1x128xf32>
    %514 = vector.extract_strided_slice %506 {offsets = [0, 256], sizes = [1, 128], strides = [1, 1]} : vector<1x384xf32> to vector<1x128xf32>
    %515 = math.tanh %513 : vector<1x128xf32>
    %516 = arith.mulf %514, %515 : vector<1x128xf32>
    %517 = arith.truncf %516 : vector<1x128xf32> to vector<1x128xbf16>
    %518 = vector.extract_strided_slice %385 {offsets = [6, 0], sizes = [1, 512], strides = [1, 1]} : vector<16x512xf32> to vector<1x512xf32>
    %519 = arith.truncf %516 : vector<1x128xf32> to vector<1x128xbf16>
    %c0_113 = arith.constant 0 : index
    %c0_114 = arith.constant 0 : index
    %520 = vector.load %arg5[%c0_113, %c0_114] : memref<128x512xbf16, #tpu.memory_space<vmem>>, vector<128x512xbf16>
    %cst_115 = arith.constant dense<0.000000e+00> : vector<1x512xf32>
    %521 = tpu.matmul %519, %520, %cst_115 {dimension_numbers = #tpu.dot_dimension_numbers<[1], [0], [0], [1], [0, 0, 1, 1], [], []>} : vector<1x128xbf16>, vector<128x512xbf16>, vector<1x512xf32> -> vector<1x512xf32>
    %522 = arith.addf %518, %521 : vector<1x512xf32>
    %523 = vector.extract_strided_slice %522 {offsets = [0, 0], sizes = [1, 384], strides = [1, 1]} : vector<1x512xf32> to vector<1x384xf32>
    %524 = arith.negf %523 : vector<1x384xf32>
    %525 = math.exp %524 : vector<1x384xf32>
    %cst_116 = arith.constant 1.000000e+00 : f32
    %526 = vector.broadcast %cst_116 : f32 to vector<1x384xf32>
    %527 = arith.addf %526, %525 : vector<1x384xf32>
    %528 = arith.divf %526, %527 : vector<1x384xf32>
    %529 = vector.extract_strided_slice %522 {offsets = [0, 384], sizes = [1, 128], strides = [1, 1]} : vector<1x512xf32> to vector<1x128xf32>
    %530 = math.tanh %529 : vector<1x128xf32>
    %531 = vector.extract_strided_slice %528 {offsets = [0, 128], sizes = [1, 128], strides = [1, 1]} : vector<1x384xf32> to vector<1x128xf32>
    %532 = arith.mulf %531, %513 : vector<1x128xf32>
    %533 = vector.extract_strided_slice %528 {offsets = [0, 0], sizes = [1, 128], strides = [1, 1]} : vector<1x384xf32> to vector<1x128xf32>
    %534 = arith.mulf %533, %530 : vector<1x128xf32>
    %535 = arith.addf %532, %534 : vector<1x128xf32>
    %536 = vector.extract_strided_slice %528 {offsets = [0, 256], sizes = [1, 128], strides = [1, 1]} : vector<1x384xf32> to vector<1x128xf32>
    %537 = math.tanh %535 : vector<1x128xf32>
    %538 = arith.mulf %536, %537 : vector<1x128xf32>
    %539 = arith.truncf %538 : vector<1x128xf32> to vector<1x128xbf16>
    %540 = vector.extract_strided_slice %385 {offsets = [7, 0], sizes = [1, 512], strides = [1, 1]} : vector<16x512xf32> to vector<1x512xf32>
    %541 = arith.truncf %538 : vector<1x128xf32> to vector<1x128xbf16>
    %c0_117 = arith.constant 0 : index
    %c0_118 = arith.constant 0 : index
    %542 = vector.load %arg5[%c0_117, %c0_118] : memref<128x512xbf16, #tpu.memory_space<vmem>>, vector<128x512xbf16>
    %cst_119 = arith.constant dense<0.000000e+00> : vector<1x512xf32>
    %543 = tpu.matmul %541, %542, %cst_119 {dimension_numbers = #tpu.dot_dimension_numbers<[1], [0], [0], [1], [0, 0, 1, 1], [], []>} : vector<1x128xbf16>, vector<128x512xbf16>, vector<1x512xf32> -> vector<1x512xf32>
    %544 = arith.addf %540, %543 : vector<1x512xf32>
    %545 = vector.extract_strided_slice %544 {offsets = [0, 0], sizes = [1, 384], strides = [1, 1]} : vector<1x512xf32> to vector<1x384xf32>
    %546 = arith.negf %545 : vector<1x384xf32>
    %547 = math.exp %546 : vector<1x384xf32>
    %cst_120 = arith.constant 1.000000e+00 : f32
    %548 = vector.broadcast %cst_120 : f32 to vector<1x384xf32>
    %549 = arith.addf %548, %547 : vector<1x384xf32>
    %550 = arith.divf %548, %549 : vector<1x384xf32>
    %551 = vector.extract_strided_slice %544 {offsets = [0, 384], sizes = [1, 128], strides = [1, 1]} : vector<1x512xf32> to vector<1x128xf32>
    %552 = math.tanh %551 : vector<1x128xf32>
    %553 = vector.extract_strided_slice %550 {offsets = [0, 128], sizes = [1, 128], strides = [1, 1]} : vector<1x384xf32> to vector<1x128xf32>
    %554 = arith.mulf %553, %535 : vector<1x128xf32>
    %555 = vector.extract_strided_slice %550 {offsets = [0, 0], sizes = [1, 128], strides = [1, 1]} : vector<1x384xf32> to vector<1x128xf32>
    %556 = arith.mulf %555, %552 : vector<1x128xf32>
    %557 = arith.addf %554, %556 : vector<1x128xf32>
    %558 = vector.extract_strided_slice %550 {offsets = [0, 256], sizes = [1, 128], strides = [1, 1]} : vector<1x384xf32> to vector<1x128xf32>
    %559 = math.tanh %557 : vector<1x128xf32>
    %560 = arith.mulf %558, %559 : vector<1x128xf32>
    %561 = arith.truncf %560 : vector<1x128xf32> to vector<1x128xbf16>
    %562 = vector.extract_strided_slice %385 {offsets = [8, 0], sizes = [1, 512], strides = [1, 1]} : vector<16x512xf32> to vector<1x512xf32>
    %563 = arith.truncf %560 : vector<1x128xf32> to vector<1x128xbf16>
    %c0_121 = arith.constant 0 : index
    %c0_122 = arith.constant 0 : index
    %564 = vector.load %arg5[%c0_121, %c0_122] : memref<128x512xbf16, #tpu.memory_space<vmem>>, vector<128x512xbf16>
    %cst_123 = arith.constant dense<0.000000e+00> : vector<1x512xf32>
    %565 = tpu.matmul %563, %564, %cst_123 {dimension_numbers = #tpu.dot_dimension_numbers<[1], [0], [0], [1], [0, 0, 1, 1], [], []>} : vector<1x128xbf16>, vector<128x512xbf16>, vector<1x512xf32> -> vector<1x512xf32>
    %566 = arith.addf %562, %565 : vector<1x512xf32>
    %567 = vector.extract_strided_slice %566 {offsets = [0, 0], sizes = [1, 384], strides = [1, 1]} : vector<1x512xf32> to vector<1x384xf32>
    %568 = arith.negf %567 : vector<1x384xf32>
    %569 = math.exp %568 : vector<1x384xf32>
    %cst_124 = arith.constant 1.000000e+00 : f32
    %570 = vector.broadcast %cst_124 : f32 to vector<1x384xf32>
    %571 = arith.addf %570, %569 : vector<1x384xf32>
    %572 = arith.divf %570, %571 : vector<1x384xf32>
    %573 = vector.extract_strided_slice %566 {offsets = [0, 384], sizes = [1, 128], strides = [1, 1]} : vector<1x512xf32> to vector<1x128xf32>
    %574 = math.tanh %573 : vector<1x128xf32>
    %575 = vector.extract_strided_slice %572 {offsets = [0, 128], sizes = [1, 128], strides = [1, 1]} : vector<1x384xf32> to vector<1x128xf32>
    %576 = arith.mulf %575, %557 : vector<1x128xf32>
    %577 = vector.extract_strided_slice %572 {offsets = [0, 0], sizes = [1, 128], strides = [1, 1]} : vector<1x384xf32> to vector<1x128xf32>
    %578 = arith.mulf %577, %574 : vector<1x128xf32>
    %579 = arith.addf %576, %578 : vector<1x128xf32>
    %580 = vector.extract_strided_slice %572 {offsets = [0, 256], sizes = [1, 128], strides = [1, 1]} : vector<1x384xf32> to vector<1x128xf32>
    %581 = math.tanh %579 : vector<1x128xf32>
    %582 = arith.mulf %580, %581 : vector<1x128xf32>
    %583 = arith.truncf %582 : vector<1x128xf32> to vector<1x128xbf16>
    %584 = vector.extract_strided_slice %385 {offsets = [9, 0], sizes = [1, 512], strides = [1, 1]} : vector<16x512xf32> to vector<1x512xf32>
    %585 = arith.truncf %582 : vector<1x128xf32> to vector<1x128xbf16>
    %c0_125 = arith.constant 0 : index
    %c0_126 = arith.constant 0 : index
    %586 = vector.load %arg5[%c0_125, %c0_126] : memref<128x512xbf16, #tpu.memory_space<vmem>>, vector<128x512xbf16>
    %cst_127 = arith.constant dense<0.000000e+00> : vector<1x512xf32>
    %587 = tpu.matmul %585, %586, %cst_127 {dimension_numbers = #tpu.dot_dimension_numbers<[1], [0], [0], [1], [0, 0, 1, 1], [], []>} : vector<1x128xbf16>, vector<128x512xbf16>, vector<1x512xf32> -> vector<1x512xf32>
    %588 = arith.addf %584, %587 : vector<1x512xf32>
    %589 = vector.extract_strided_slice %588 {offsets = [0, 0], sizes = [1, 384], strides = [1, 1]} : vector<1x512xf32> to vector<1x384xf32>
    %590 = arith.negf %589 : vector<1x384xf32>
    %591 = math.exp %590 : vector<1x384xf32>
    %cst_128 = arith.constant 1.000000e+00 : f32
    %592 = vector.broadcast %cst_128 : f32 to vector<1x384xf32>
    %593 = arith.addf %592, %591 : vector<1x384xf32>
    %594 = arith.divf %592, %593 : vector<1x384xf32>
    %595 = vector.extract_strided_slice %588 {offsets = [0, 384], sizes = [1, 128], strides = [1, 1]} : vector<1x512xf32> to vector<1x128xf32>
    %596 = math.tanh %595 : vector<1x128xf32>
    %597 = vector.extract_strided_slice %594 {offsets = [0, 128], sizes = [1, 128], strides = [1, 1]} : vector<1x384xf32> to vector<1x128xf32>
    %598 = arith.mulf %597, %579 : vector<1x128xf32>
    %599 = vector.extract_strided_slice %594 {offsets = [0, 0], sizes = [1, 128], strides = [1, 1]} : vector<1x384xf32> to vector<1x128xf32>
    %600 = arith.mulf %599, %596 : vector<1x128xf32>
    %601 = arith.addf %598, %600 : vector<1x128xf32>
    %602 = vector.extract_strided_slice %594 {offsets = [0, 256], sizes = [1, 128], strides = [1, 1]} : vector<1x384xf32> to vector<1x128xf32>
    %603 = math.tanh %601 : vector<1x128xf32>
    %604 = arith.mulf %602, %603 : vector<1x128xf32>
    %605 = arith.truncf %604 : vector<1x128xf32> to vector<1x128xbf16>
    %606 = vector.extract_strided_slice %385 {offsets = [10, 0], sizes = [1, 512], strides = [1, 1]} : vector<16x512xf32> to vector<1x512xf32>
    %607 = arith.truncf %604 : vector<1x128xf32> to vector<1x128xbf16>
    %c0_129 = arith.constant 0 : index
    %c0_130 = arith.constant 0 : index
    %608 = vector.load %arg5[%c0_129, %c0_130] : memref<128x512xbf16, #tpu.memory_space<vmem>>, vector<128x512xbf16>
    %cst_131 = arith.constant dense<0.000000e+00> : vector<1x512xf32>
    %609 = tpu.matmul %607, %608, %cst_131 {dimension_numbers = #tpu.dot_dimension_numbers<[1], [0], [0], [1], [0, 0, 1, 1], [], []>} : vector<1x128xbf16>, vector<128x512xbf16>, vector<1x512xf32> -> vector<1x512xf32>
    %610 = arith.addf %606, %609 : vector<1x512xf32>
    %611 = vector.extract_strided_slice %610 {offsets = [0, 0], sizes = [1, 384], strides = [1, 1]} : vector<1x512xf32> to vector<1x384xf32>
    %612 = arith.negf %611 : vector<1x384xf32>
    %613 = math.exp %612 : vector<1x384xf32>
    %cst_132 = arith.constant 1.000000e+00 : f32
    %614 = vector.broadcast %cst_132 : f32 to vector<1x384xf32>
    %615 = arith.addf %614, %613 : vector<1x384xf32>
    %616 = arith.divf %614, %615 : vector<1x384xf32>
    %617 = vector.extract_strided_slice %610 {offsets = [0, 384], sizes = [1, 128], strides = [1, 1]} : vector<1x512xf32> to vector<1x128xf32>
    %618 = math.tanh %617 : vector<1x128xf32>
    %619 = vector.extract_strided_slice %616 {offsets = [0, 128], sizes = [1, 128], strides = [1, 1]} : vector<1x384xf32> to vector<1x128xf32>
    %620 = arith.mulf %619, %601 : vector<1x128xf32>
    %621 = vector.extract_strided_slice %616 {offsets = [0, 0], sizes = [1, 128], strides = [1, 1]} : vector<1x384xf32> to vector<1x128xf32>
    %622 = arith.mulf %621, %618 : vector<1x128xf32>
    %623 = arith.addf %620, %622 : vector<1x128xf32>
    %624 = vector.extract_strided_slice %616 {offsets = [0, 256], sizes = [1, 128], strides = [1, 1]} : vector<1x384xf32> to vector<1x128xf32>
    %625 = math.tanh %623 : vector<1x128xf32>
    %626 = arith.mulf %624, %625 : vector<1x128xf32>
    %627 = arith.truncf %626 : vector<1x128xf32> to vector<1x128xbf16>
    %628 = vector.extract_strided_slice %385 {offsets = [11, 0], sizes = [1, 512], strides = [1, 1]} : vector<16x512xf32> to vector<1x512xf32>
    %629 = arith.truncf %626 : vector<1x128xf32> to vector<1x128xbf16>
    %c0_133 = arith.constant 0 : index
    %c0_134 = arith.constant 0 : index
    %630 = vector.load %arg5[%c0_133, %c0_134] : memref<128x512xbf16, #tpu.memory_space<vmem>>, vector<128x512xbf16>
    %cst_135 = arith.constant dense<0.000000e+00> : vector<1x512xf32>
    %631 = tpu.matmul %629, %630, %cst_135 {dimension_numbers = #tpu.dot_dimension_numbers<[1], [0], [0], [1], [0, 0, 1, 1], [], []>} : vector<1x128xbf16>, vector<128x512xbf16>, vector<1x512xf32> -> vector<1x512xf32>
    %632 = arith.addf %628, %631 : vector<1x512xf32>
    %633 = vector.extract_strided_slice %632 {offsets = [0, 0], sizes = [1, 384], strides = [1, 1]} : vector<1x512xf32> to vector<1x384xf32>
    %634 = arith.negf %633 : vector<1x384xf32>
    %635 = math.exp %634 : vector<1x384xf32>
    %cst_136 = arith.constant 1.000000e+00 : f32
    %636 = vector.broadcast %cst_136 : f32 to vector<1x384xf32>
    %637 = arith.addf %636, %635 : vector<1x384xf32>
    %638 = arith.divf %636, %637 : vector<1x384xf32>
    %639 = vector.extract_strided_slice %632 {offsets = [0, 384], sizes = [1, 128], strides = [1, 1]} : vector<1x512xf32> to vector<1x128xf32>
    %640 = math.tanh %639 : vector<1x128xf32>
    %641 = vector.extract_strided_slice %638 {offsets = [0, 128], sizes = [1, 128], strides = [1, 1]} : vector<1x384xf32> to vector<1x128xf32>
    %642 = arith.mulf %641, %623 : vector<1x128xf32>
    %643 = vector.extract_strided_slice %638 {offsets = [0, 0], sizes = [1, 128], strides = [1, 1]} : vector<1x384xf32> to vector<1x128xf32>
    %644 = arith.mulf %643, %640 : vector<1x128xf32>
    %645 = arith.addf %642, %644 : vector<1x128xf32>
    %646 = vector.extract_strided_slice %638 {offsets = [0, 256], sizes = [1, 128], strides = [1, 1]} : vector<1x384xf32> to vector<1x128xf32>
    %647 = math.tanh %645 : vector<1x128xf32>
    %648 = arith.mulf %646, %647 : vector<1x128xf32>
    %649 = arith.truncf %648 : vector<1x128xf32> to vector<1x128xbf16>
    %650 = vector.extract_strided_slice %385 {offsets = [12, 0], sizes = [1, 512], strides = [1, 1]} : vector<16x512xf32> to vector<1x512xf32>
    %651 = arith.truncf %648 : vector<1x128xf32> to vector<1x128xbf16>
    %c0_137 = arith.constant 0 : index
    %c0_138 = arith.constant 0 : index
    %652 = vector.load %arg5[%c0_137, %c0_138] : memref<128x512xbf16, #tpu.memory_space<vmem>>, vector<128x512xbf16>
    %cst_139 = arith.constant dense<0.000000e+00> : vector<1x512xf32>
    %653 = tpu.matmul %651, %652, %cst_139 {dimension_numbers = #tpu.dot_dimension_numbers<[1], [0], [0], [1], [0, 0, 1, 1], [], []>} : vector<1x128xbf16>, vector<128x512xbf16>, vector<1x512xf32> -> vector<1x512xf32>
    %654 = arith.addf %650, %653 : vector<1x512xf32>
    %655 = vector.extract_strided_slice %654 {offsets = [0, 0], sizes = [1, 384], strides = [1, 1]} : vector<1x512xf32> to vector<1x384xf32>
    %656 = arith.negf %655 : vector<1x384xf32>
    %657 = math.exp %656 : vector<1x384xf32>
    %cst_140 = arith.constant 1.000000e+00 : f32
    %658 = vector.broadcast %cst_140 : f32 to vector<1x384xf32>
    %659 = arith.addf %658, %657 : vector<1x384xf32>
    %660 = arith.divf %658, %659 : vector<1x384xf32>
    %661 = vector.extract_strided_slice %654 {offsets = [0, 384], sizes = [1, 128], strides = [1, 1]} : vector<1x512xf32> to vector<1x128xf32>
    %662 = math.tanh %661 : vector<1x128xf32>
    %663 = vector.extract_strided_slice %660 {offsets = [0, 128], sizes = [1, 128], strides = [1, 1]} : vector<1x384xf32> to vector<1x128xf32>
    %664 = arith.mulf %663, %645 : vector<1x128xf32>
    %665 = vector.extract_strided_slice %660 {offsets = [0, 0], sizes = [1, 128], strides = [1, 1]} : vector<1x384xf32> to vector<1x128xf32>
    %666 = arith.mulf %665, %662 : vector<1x128xf32>
    %667 = arith.addf %664, %666 : vector<1x128xf32>
    %668 = vector.extract_strided_slice %660 {offsets = [0, 256], sizes = [1, 128], strides = [1, 1]} : vector<1x384xf32> to vector<1x128xf32>
    %669 = math.tanh %667 : vector<1x128xf32>
    %670 = arith.mulf %668, %669 : vector<1x128xf32>
    %671 = arith.truncf %670 : vector<1x128xf32> to vector<1x128xbf16>
    %672 = vector.extract_strided_slice %385 {offsets = [13, 0], sizes = [1, 512], strides = [1, 1]} : vector<16x512xf32> to vector<1x512xf32>
    %673 = arith.truncf %670 : vector<1x128xf32> to vector<1x128xbf16>
    %c0_141 = arith.constant 0 : index
    %c0_142 = arith.constant 0 : index
    %674 = vector.load %arg5[%c0_141, %c0_142] : memref<128x512xbf16, #tpu.memory_space<vmem>>, vector<128x512xbf16>
    %cst_143 = arith.constant dense<0.000000e+00> : vector<1x512xf32>
    %675 = tpu.matmul %673, %674, %cst_143 {dimension_numbers = #tpu.dot_dimension_numbers<[1], [0], [0], [1], [0, 0, 1, 1], [], []>} : vector<1x128xbf16>, vector<128x512xbf16>, vector<1x512xf32> -> vector<1x512xf32>
    %676 = arith.addf %672, %675 : vector<1x512xf32>
    %677 = vector.extract_strided_slice %676 {offsets = [0, 0], sizes = [1, 384], strides = [1, 1]} : vector<1x512xf32> to vector<1x384xf32>
    %678 = arith.negf %677 : vector<1x384xf32>
    %679 = math.exp %678 : vector<1x384xf32>
    %cst_144 = arith.constant 1.000000e+00 : f32
    %680 = vector.broadcast %cst_144 : f32 to vector<1x384xf32>
    %681 = arith.addf %680, %679 : vector<1x384xf32>
    %682 = arith.divf %680, %681 : vector<1x384xf32>
    %683 = vector.extract_strided_slice %676 {offsets = [0, 384], sizes = [1, 128], strides = [1, 1]} : vector<1x512xf32> to vector<1x128xf32>
    %684 = math.tanh %683 : vector<1x128xf32>
    %685 = vector.extract_strided_slice %682 {offsets = [0, 128], sizes = [1, 128], strides = [1, 1]} : vector<1x384xf32> to vector<1x128xf32>
    %686 = arith.mulf %685, %667 : vector<1x128xf32>
    %687 = vector.extract_strided_slice %682 {offsets = [0, 0], sizes = [1, 128], strides = [1, 1]} : vector<1x384xf32> to vector<1x128xf32>
    %688 = arith.mulf %687, %684 : vector<1x128xf32>
    %689 = arith.addf %686, %688 : vector<1x128xf32>
    %690 = vector.extract_strided_slice %682 {offsets = [0, 256], sizes = [1, 128], strides = [1, 1]} : vector<1x384xf32> to vector<1x128xf32>
    %691 = math.tanh %689 : vector<1x128xf32>
    %692 = arith.mulf %690, %691 : vector<1x128xf32>
    %693 = arith.truncf %692 : vector<1x128xf32> to vector<1x128xbf16>
    %694 = vector.extract_strided_slice %385 {offsets = [14, 0], sizes = [1, 512], strides = [1, 1]} : vector<16x512xf32> to vector<1x512xf32>
    %695 = arith.truncf %692 : vector<1x128xf32> to vector<1x128xbf16>
    %c0_145 = arith.constant 0 : index
    %c0_146 = arith.constant 0 : index
    %696 = vector.load %arg5[%c0_145, %c0_146] : memref<128x512xbf16, #tpu.memory_space<vmem>>, vector<128x512xbf16>
    %cst_147 = arith.constant dense<0.000000e+00> : vector<1x512xf32>
    %697 = tpu.matmul %695, %696, %cst_147 {dimension_numbers = #tpu.dot_dimension_numbers<[1], [0], [0], [1], [0, 0, 1, 1], [], []>} : vector<1x128xbf16>, vector<128x512xbf16>, vector<1x512xf32> -> vector<1x512xf32>
    %698 = arith.addf %694, %697 : vector<1x512xf32>
    %699 = vector.extract_strided_slice %698 {offsets = [0, 0], sizes = [1, 384], strides = [1, 1]} : vector<1x512xf32> to vector<1x384xf32>
    %700 = arith.negf %699 : vector<1x384xf32>
    %701 = math.exp %700 : vector<1x384xf32>
    %cst_148 = arith.constant 1.000000e+00 : f32
    %702 = vector.broadcast %cst_148 : f32 to vector<1x384xf32>
    %703 = arith.addf %702, %701 : vector<1x384xf32>
    %704 = arith.divf %702, %703 : vector<1x384xf32>
    %705 = vector.extract_strided_slice %698 {offsets = [0, 384], sizes = [1, 128], strides = [1, 1]} : vector<1x512xf32> to vector<1x128xf32>
    %706 = math.tanh %705 : vector<1x128xf32>
    %707 = vector.extract_strided_slice %704 {offsets = [0, 128], sizes = [1, 128], strides = [1, 1]} : vector<1x384xf32> to vector<1x128xf32>
    %708 = arith.mulf %707, %689 : vector<1x128xf32>
    %709 = vector.extract_strided_slice %704 {offsets = [0, 0], sizes = [1, 128], strides = [1, 1]} : vector<1x384xf32> to vector<1x128xf32>
    %710 = arith.mulf %709, %706 : vector<1x128xf32>
    %711 = arith.addf %708, %710 : vector<1x128xf32>
    %712 = vector.extract_strided_slice %704 {offsets = [0, 256], sizes = [1, 128], strides = [1, 1]} : vector<1x384xf32> to vector<1x128xf32>
    %713 = math.tanh %711 : vector<1x128xf32>
    %714 = arith.mulf %712, %713 : vector<1x128xf32>
    %715 = arith.truncf %714 : vector<1x128xf32> to vector<1x128xbf16>
    %716 = vector.extract_strided_slice %385 {offsets = [15, 0], sizes = [1, 512], strides = [1, 1]} : vector<16x512xf32> to vector<1x512xf32>
    %717 = arith.truncf %714 : vector<1x128xf32> to vector<1x128xbf16>
    %c0_149 = arith.constant 0 : index
    %c0_150 = arith.constant 0 : index
    %718 = vector.load %arg5[%c0_149, %c0_150] : memref<128x512xbf16, #tpu.memory_space<vmem>>, vector<128x512xbf16>
    %cst_151 = arith.constant dense<0.000000e+00> : vector<1x512xf32>
    %719 = tpu.matmul %717, %718, %cst_151 {dimension_numbers = #tpu.dot_dimension_numbers<[1], [0], [0], [1], [0, 0, 1, 1], [], []>} : vector<1x128xbf16>, vector<128x512xbf16>, vector<1x512xf32> -> vector<1x512xf32>
    %720 = arith.addf %716, %719 : vector<1x512xf32>
    %721 = vector.extract_strided_slice %720 {offsets = [0, 0], sizes = [1, 384], strides = [1, 1]} : vector<1x512xf32> to vector<1x384xf32>
    %722 = arith.negf %721 : vector<1x384xf32>
    %723 = math.exp %722 : vector<1x384xf32>
    %cst_152 = arith.constant 1.000000e+00 : f32
    %724 = vector.broadcast %cst_152 : f32 to vector<1x384xf32>
    %725 = arith.addf %724, %723 : vector<1x384xf32>
    %726 = arith.divf %724, %725 : vector<1x384xf32>
    %727 = vector.extract_strided_slice %720 {offsets = [0, 384], sizes = [1, 128], strides = [1, 1]} : vector<1x512xf32> to vector<1x128xf32>
    %728 = math.tanh %727 : vector<1x128xf32>
    %729 = vector.extract_strided_slice %726 {offsets = [0, 128], sizes = [1, 128], strides = [1, 1]} : vector<1x384xf32> to vector<1x128xf32>
    %730 = arith.mulf %729, %711 : vector<1x128xf32>
    %731 = vector.extract_strided_slice %726 {offsets = [0, 0], sizes = [1, 128], strides = [1, 1]} : vector<1x384xf32> to vector<1x128xf32>
    %732 = arith.mulf %731, %728 : vector<1x128xf32>
    %733 = arith.addf %730, %732 : vector<1x128xf32>
    %734 = vector.extract_strided_slice %726 {offsets = [0, 256], sizes = [1, 128], strides = [1, 1]} : vector<1x384xf32> to vector<1x128xf32>
    %735 = math.tanh %733 : vector<1x128xf32>
    %736 = arith.mulf %734, %735 : vector<1x128xf32>
    %737 = arith.truncf %736 : vector<1x128xf32> to vector<1x128xbf16>
    %738 = tpu.concatenate %407, %429, %451, %473, %495, %517, %539, %561, %583, %605, %627, %649, %671, %693, %715, %737 in 0 : vector<1x128xbf16>, vector<1x128xbf16>, vector<1x128xbf16>, vector<1x128xbf16>, vector<1x128xbf16>, vector<1x128xbf16>, vector<1x128xbf16>, vector<1x128xbf16>, vector<1x128xbf16>, vector<1x128xbf16>, vector<1x128xbf16>, vector<1x128xbf16>, vector<1x128xbf16>, vector<1x128xbf16>, vector<1x128xbf16>, vector<1x128xbf16> -> vector<16x128xbf16>
    %739 = arith.index_cast %382 : i32 to index
    %c0_153 = arith.constant 0 : index
    %740 = vector.load %arg7[%739, %c0_153] : memref<16x128xbf16, #tpu.memory_space<vmem>>, vector<16x128xbf16>
    tpu.vector_store %arg7[%739, %c0_153], %738 {strides = array<i32>} : memref<16x128xbf16, #tpu.memory_space<vmem>>, vector<16x128xbf16>,
    %c1_i32_154 = arith.constant 1 : i32
    return
  }
}

</mosaic_0001>

<bundles_post_ra>
// kernel: tpu_custom_call.1
= control target key start
LH: loop header
LB: loop body
LE: loop exit
PB: predicated region body
PF: predicated region fallthrough
CT: control target
= control target key end

     0   :  { %12 = vsyncpa [#allocation4], 0  ;;  %s8770_s0 = inlined_call_operand.hbm [shape: f32[16,128], index: 0, kind: input, shape index: {}]   ;;  %s8771_s1 = inlined_call_operand.hbm [shape: bf16[128,512], index: 1, kind: input, shape index: {}]   ;;  %s8772_s2 = inlined_call_operand.hbm [shape: bf16[128,512], index: 2, kind: input, shape index: {}]   ;;  %s8773_s3 = inlined_call_operand.vmem [shape: f32[1,512], index: 3, kind: input, shape index: {}]   ;;  %s8774_s4 = inlined_call_operand.hbm [shape: bf16[128,512], index: 4, kind: input, shape index: {}]   ;;  %s8775_s5 = inlined_call_operand.hbm [shape: bf16[128,512], index: 5, kind: input, shape index: {}]   ;;  %s8776_s6 = inlined_call_operand.vmem [shape: f32[1,512], index: 6, kind: input, shape index: {}]   ;;  %s8777_s7 = inlined_call_operand.hbm [shape: bf16[16,128], index: 7, kind: output, shape index: {}]  }
   0x1   :  { %13 = vsyncpa [#allocation7], 0 }
   0x2   :  { %14 = vsyncpa [#allocation10], 0 }
   0x3   :  { %15 = vsyncpa [#allocation5], 0  ;;  %s6603_s24 = smov [#allocation6]   ;;  %s6463_s28 = scalar_lea.hbm %s8771_s1, 4096 }
   0x4   :  { %s33_s25 = sshll.u32 %s6603_s24, 4  ;;  %p6464_p0 = scmp.ne.s32.totalorder %s8771_s1, %s6463_s28  ;;  %s34_s25 = int_to_ptr.vmem [resolvable:$true] %s33_s25 }
   0x5   :  { %p6467_p1 = scmp.lt.u32.totalorder %s6463_s28, %s8771_s1 }
   0x7   :  { %p6469_p2 = pnand %p6467_p1, %p6464_p0 }
   0x9   :  { %6472 = shalt.err (!%p6469_p2)
}
   0xa   :  { %s6473_s10 = scalar_lea.vmem %s34_s25, 4096  ;;  %p6478_p4 = scmp.lt.s32.totalorder %s34_s25, %s34_s25 }
   0xb   :  { %p6474_p3 = scmp.ne.s32.totalorder %s34_s25, %s6473_s10  ;;  %p6479_p5 = scmp.lt.s32.totalorder %s6473_s10, %s6473_s10 }
   0xd   :  { %p6480_p6 = por %p6479_p5, %p6478_p4 }
   0xf   :  { %p6481_p7 = pnand %p6480_p6, %p6474_p3 }
  0x11   :  { %6484 = shalt.err (!%p6481_p7)
}
  0x12   :  { %s6604_s11 = smov 256   ;;  %s6605_s12 = smov 16  }
  0x13   :  { %39 = dma.hbm_to_vmem [thread:$0]  %s8771_s1, 4096, %s34_s25, [#allocation7], %s6604_s11, %s6604_s11, %s6605_s12  }
  0x14   :  { %s6606_s15 = smov [#allocation9]   ;;  %s6607_s17 = smov [#allocation3]  }
  0x15   :  { %s59_s16 = sshll.u32 %s6606_s15, 4  ;;  %s21_s18 = sshll.u32 %s6607_s17, 4  ;;  %s60_s16 = int_to_ptr.vmem [resolvable:$true] %s59_s16  ;;  %s22_s18 = int_to_ptr.vmem [resolvable:$true] %s21_s18 }
  0x16   :  { %s6485_s21 = scalar_lea.hbm %s8774_s4, 4096 }
  0x17   :  { %p6486_p8 = scmp.ne.s32.totalorder %s8774_s4, %s6485_s21  ;;  %p6489_p9 = scmp.lt.u32.totalorder %s6485_s21, %s8774_s4 }
  0x19   :  { %p6491_p10 = pnand %p6489_p9, %p6486_p8 }
  0x1b   :  { %6494 = shalt.err (!%p6491_p10)
}
  0x1c   :  { %s6495_s1 = scalar_lea.vmem %s60_s16, 4096  ;;  %p6500_p12 = scmp.lt.s32.totalorder %s60_s16, %s60_s16 }
  0x1d   :  { %p6496_p11 = scmp.ne.s32.totalorder %s60_s16, %s6495_s1  ;;  %p6501_p13 = scmp.lt.s32.totalorder %s6495_s1, %s6495_s1 }
  0x1f   :  { %p6502_p0 = por %p6501_p13, %p6500_p12 }
  0x21   :  { %p6503_p1 = pnand %p6502_p0, %p6496_p11 }
  0x23   :  { %6506 = shalt.err (!%p6503_p1)
}
  0x24   :  { %65 = dma.hbm_to_vmem [thread:$0]  %s8774_s4, 4096, %s60_s16, [#allocation10], %s6604_s11, %s6604_s11, %s6605_s12  }
  0x25   :  { %s6507_s30 = scalar_lea.hbm %s8770_s0, 256 }
  0x26   :  { %p6508_p2 = scmp.ne.s32.totalorder %s8770_s0, %s6507_s30  ;;  %p6511_p3 = scmp.lt.u32.totalorder %s6507_s30, %s8770_s0 }
  0x28   :  { %p6513_p4 = pnand %p6511_p3, %p6508_p2 }
  0x2a   :  { %6516 = shalt.err (!%p6513_p4)
}
  0x2b   :  { %s6517_s14 = scalar_lea.vmem %s22_s18, 256  ;;  %p6522_p6 = scmp.lt.s32.totalorder %s22_s18, %s22_s18 }
  0x2c   :  { %p6518_p5 = scmp.ne.s32.totalorder %s22_s18, %s6517_s14  ;;  %p6523_p7 = scmp.lt.s32.totalorder %s6517_s14, %s6517_s14 }
  0x2e   :  { %p6524_p8 = por %p6523_p7, %p6522_p6 }
  0x30   :  { %p6525_p9 = pnand %p6524_p8, %p6518_p5 }
  0x32   :  { %6528 = shalt.err (!%p6525_p9)
}
  0x33   :  { %s6608_s4 = smov 128   ;;  %s6609_s15 = smov 8  }
  0x34   :  { %27 = dma.hbm_to_vmem [thread:$0]  %s8770_s0, 256, %s22_s18, [#allocation4], %s6608_s4, %s6608_s4, %s6609_s15  }
  0x35   :  { %s6610_s19 = smov [#allocation8]   ;;  %s6611_s21 = smov [#allocation11]  }
  0x36   :  { %s45_s20 = sshll.u32 %s6610_s19, 4  ;;  %s71_s22 = sshll.u32 %s6611_s21, 4  ;;  %s46_s20 = int_to_ptr.vmem [resolvable:$true] %s45_s20  ;;  %s72_s22 = int_to_ptr.vmem [resolvable:$true] %s71_s22 }
  0x37   :  { %s6529_s26 = scalar_lea.hbm %s8772_s2, 4096 }
  0x38   :  { %p6530_p10 = scmp.ne.s32.totalorder %s8772_s2, %s6529_s26  ;;  %p6533_p11 = scmp.lt.u32.totalorder %s6529_s26, %s8772_s2 }
  0x3a   :  { %p6535_p12 = pnand %p6533_p11, %p6530_p10 }
  0x3c   :  { %6538 = shalt.err (!%p6535_p12)
}
  0x3d   :  { %s6539_s0 = scalar_lea.vmem %s46_s20, 4096  ;;  %p6544_p0 = scmp.lt.s32.totalorder %s46_s20, %s46_s20 }
  0x3e   :  { %p6540_p13 = scmp.ne.s32.totalorder %s46_s20, %s6539_s0  ;;  %p6545_p1 = scmp.lt.s32.totalorder %s6539_s0, %s6539_s0 }
  0x40   :  { %p6546_p2 = por %p6545_p1, %p6544_p0 }
  0x42   :  { %p6547_p3 = pnand %p6546_p2, %p6540_p13 }
  0x44   :  { %6550 = shalt.err (!%p6547_p3)
}
  0x45   :  { %51 = dma.hbm_to_vmem [thread:$0]  %s8772_s2, 4096, %s46_s20, [#allocation7], %s6604_s11, %s6604_s11, %s6605_s12  }
  0x46   :  { %s6551_s9 = scalar_lea.hbm %s8775_s5, 4096 }
  0x47   :  { %p6552_p4 = scmp.ne.s32.totalorder %s8775_s5, %s6551_s9  ;;  %p6555_p5 = scmp.lt.u32.totalorder %s6551_s9, %s8775_s5 }
  0x49   :  { %p6557_p6 = pnand %p6555_p5, %p6552_p4 }
  0x4b   :  { %6560 = shalt.err (!%p6557_p6)
}
  0x4c   :  { %s6561_s15 = scalar_lea.vmem %s72_s22, 4096  ;;  %p6566_p8 = scmp.lt.s32.totalorder %s72_s22, %s72_s22 }
  0x4d   :  { %p6562_p7 = scmp.ne.s32.totalorder %s72_s22, %s6561_s15  ;;  %p6567_p9 = scmp.lt.s32.totalorder %s6561_s15, %s6561_s15 }
  0x4f   :  { %p6568_p10 = por %p6567_p9, %p6566_p8 }
  0x51   :  { %p6569_p11 = pnand %p6568_p10, %p6562_p7 }
  0x53   :  { %6572 = shalt.err (!%p6569_p11)
}
  0x54   :  { %77 = dma.hbm_to_vmem [thread:$0]  %s8775_s5, 4096, %s72_s22, [#allocation10], %s6604_s11, %s6604_s11, %s6605_s12  }
  0x55   :  { %6595 = dma.done.wait [#allocation4], 256  }
  0x56   :  { %6596 = vsyncadd [#allocation4], 4294967040 }
  0x57   :  { %6597 = dma.done.wait [#allocation7], 8192  }
  0x58   :  { %6598 = vsyncadd [#allocation7], 4294959104 }
  0x59   :  { %6599 = dma.done.wait [#allocation10], 8192  }
  0x5a   :  { %6600 = vsyncadd [#allocation10], 4294959104  ;;  %v8782_v0 = vmov 0   ;;  %v5630_v1 = vld [vmem:[#allocation6 + $0x4] ss:$16 sps:$4 sm:$0xff]   ;;  %v97_v34 = vld [vmem:[#allocation3 + $0x8] sm:$0xff] }
  0x5b   :  { %345 = vmatprep.mubr.bf16.mxu0 %v8782_v0  ;;  %388 = vmatprep.mubr.bf16.mxu1 %v8782_v0  ;;  %v5632_v2 = vld [vmem:[#allocation6 + $0xc] ss:$16 sps:$4 sm:$0xff]   ;;  %v5634_v3 = vld [vmem:[#allocation6] ss:$16 sps:$4 sm:$0xff]   ;;  %v5635_v4 = vld [vmem:[#allocation6 + $0x8] ss:$16 sps:$4 sm:$0xff]  }
  0x5c   :  { %313 = vmatprep.subr.bf16.mxu0 %v5630_v1  ;;  %356 = vmatprep.subr.bf16.mxu1 %v5632_v2  ;;  %v5636_v5 = vld [vmem:[#allocation6 + $0x24] ss:$16 sps:$4 sm:$0xff]   ;;  %v5638_v6 = vld [vmem:[#allocation6 + $0x2c] ss:$16 sps:$4 sm:$0xff]   ;;  %v5640_v7 = vld [vmem:[#allocation6 + $0x20] ss:$16 sps:$4 sm:$0xff]  }
  0x5d   :  { %314 = vmatpush1.bf16.msra.mxu0 %v5634_v3  ;;  %357 = vmatpush1.bf16.msra.mxu1 %v5635_v4  ;;  %v5641_v8 = vld [vmem:[#allocation6 + $0x28] ss:$16 sps:$4 sm:$0xff]   ;;  %v5642_v9 = vld [vmem:[#allocation6 + $0x44] ss:$16 sps:$4 sm:$0xff]   ;;  %v5644_v10 = vld [vmem:[#allocation6 + $0x4c] ss:$16 sps:$4 sm:$0xff]  }
  0x5e   :  { %315 = vmatprep.subr.bf16.mxu0 %v5636_v5  ;;  %358 = vmatprep.subr.bf16.mxu1 %v5638_v6  ;;  %v5646_v11 = vld [vmem:[#allocation6 + $0x40] ss:$16 sps:$4 sm:$0xff]   ;;  %v5647_v12 = vld [vmem:[#allocation6 + $0x48] ss:$16 sps:$4 sm:$0xff]   ;;  %v5648_v13 = vld [vmem:[#allocation6 + $0x64] ss:$16 sps:$4 sm:$0xff]   ;;  %v133_v5 = vlaneseq }
  0x5f   :  { %v5650_v14 = vld [vmem:[#allocation6 + $0x6c] ss:$16 sps:$4 sm:$0xff]   ;;  %v5652_v15 = vld [vmem:[#allocation6 + $0x60] ss:$16 sps:$4 sm:$0xff]   ;;  %v5653_v16 = vld [vmem:[#allocation6 + $0x68] ss:$16 sps:$4 sm:$0xff]  }
  0x60   :  { %v5654_v17 = vld [vmem:[#allocation6 + $0x84] ss:$16 sps:$4 sm:$0xff]   ;;  %v5656_v18 = vld [vmem:[#allocation6 + $0x8c] ss:$16 sps:$4 sm:$0xff]   ;;  %v5658_v19 = vld [vmem:[#allocation6 + $0x80] ss:$16 sps:$4 sm:$0xff]  }
  0x61   :  { %316 = vmatpush1.bf16.msra.mxu0 %v5640_v7  ;;  %359 = vmatpush1.bf16.msra.mxu1 %v5641_v8  ;;  %v5659_v20 = vld [vmem:[#allocation6 + $0x88] ss:$16 sps:$4 sm:$0xff]   ;;  %v5660_v21 = vld [vmem:[#allocation6 + $0xa4] ss:$16 sps:$4 sm:$0xff]   ;;  %v5662_v22 = vld [vmem:[#allocation6 + $0xac] ss:$16 sps:$4 sm:$0xff]  }
  0x62   :  { %317 = vmatprep.subr.bf16.mxu0 %v5642_v9  ;;  %360 = vmatprep.subr.bf16.mxu1 %v5644_v10  ;;  %v5664_v23 = vld [vmem:[#allocation6 + $0xa0] ss:$16 sps:$4 sm:$0xff]   ;;  %v5665_v24 = vld [vmem:[#allocation6 + $0xa8] ss:$16 sps:$4 sm:$0xff]   ;;  %v5666_v25 = vld [vmem:[#allocation6 + $0xc4] ss:$16 sps:$4 sm:$0xff]  }
  0x63   :  { %v5668_v26 = vld [vmem:[#allocation6 + $0xcc] ss:$16 sps:$4 sm:$0xff]   ;;  %v5670_v27 = vld [vmem:[#allocation6 + $0xc0] ss:$16 sps:$4 sm:$0xff]   ;;  %v5671_v28 = vld [vmem:[#allocation6 + $0xc8] ss:$16 sps:$4 sm:$0xff]  }
  0x64   :  { %v5672_v29 = vld [vmem:[#allocation6 + $0xe4] ss:$16 sps:$4 sm:$0xff]   ;;  %v5674_v30 = vld [vmem:[#allocation6 + $0xec] ss:$16 sps:$4 sm:$0xff]   ;;  %v5676_v31 = vld [vmem:[#allocation6 + $0xe0] ss:$16 sps:$4 sm:$0xff]  }
  0x65   :  { %318 = vmatpush1.bf16.msra.mxu0 %v5646_v11  ;;  %361 = vmatpush1.bf16.msra.mxu1 %v5647_v12  ;;  %v5677_v32 = vld [vmem:[#allocation6 + $0xe8] ss:$16 sps:$4 sm:$0xff]   ;;  %v96_v33 = vld [vmem:[#allocation3] sm:$0xff]  ;;  %v6732_v36 = vld [vmem:[#allocation8 + $0xc] ss:$16 sps:$4 sm:$0xff]   ;;  %v6866_v6 = vshrl.u32 %v133_v5, 7 }
  0x66   :  { %319 = vmatprep.subr.bf16.mxu0 %v5648_v13  ;;  %362 = vmatprep.subr.bf16.mxu1 %v5650_v14  ;;  %v6730_v35 = vld [vmem:[#allocation8 + $0x4] ss:$16 sps:$4 sm:$0xff]   ;;  %v98_v37 = vpack.c.bf16 %v97_v34, %v96_v33  ;;  %v6734_v38 = vld [vmem:[#allocation8] ss:$16 sps:$4 sm:$0xff]   ;;  %v6736_v39 = vld [vmem:[#allocation8 + $0x8] ss:$16 sps:$4 sm:$0xff]  }
  0x67   :  { %v6738_v40 = vld [vmem:[#allocation8 + $0x24] ss:$16 sps:$4 sm:$0xff]   ;;  %v6742_v41 = vld [vmem:[#allocation8 + $0x2c] ss:$16 sps:$4 sm:$0xff]   ;;  %v6744_v42 = vld [vmem:[#allocation8 + $0x20] ss:$16 sps:$4 sm:$0xff]  }
  0x68   :  { %v6748_v43 = vld [vmem:[#allocation8 + $0x28] ss:$16 sps:$4 sm:$0xff]   ;;  %v6752_v44 = vld [vmem:[#allocation8 + $0x44] ss:$16 sps:$4 sm:$0xff]   ;;  %v6754_v45 = vld [vmem:[#allocation8 + $0x4c] ss:$16 sps:$4 sm:$0xff]  }
  0x69   :  { %320 = vmatpush1.bf16.msra.mxu0 %v5652_v15  ;;  %363 = vmatpush1.bf16.msra.mxu1 %v5653_v16  ;;  %v6758_v46 = vld [vmem:[#allocation8 + $0x40] ss:$16 sps:$4 sm:$0xff]   ;;  %v6762_v47 = vld [vmem:[#allocation8 + $0x48] ss:$16 sps:$4 sm:$0xff]   ;;  %v6764_v48 = vld [vmem:[#allocation8 + $0x64] ss:$16 sps:$4 sm:$0xff]  }
  0x6a   :  { %321 = vmatprep.subr.bf16.mxu0 %v5654_v17  ;;  %364 = vmatprep.subr.bf16.mxu1 %v5656_v18  ;;  %v6768_v49 = vld [vmem:[#allocation8 + $0x6c] ss:$16 sps:$4 sm:$0xff]   ;;  %v6770_v50 = vld [vmem:[#allocation8 + $0x60] ss:$16 sps:$4 sm:$0xff]   ;;  %v6772_v51 = vld [vmem:[#allocation8 + $0x68] ss:$16 sps:$4 sm:$0xff]  }
  0x6b   :  { %v6774_v52 = vld [vmem:[#allocation8 + $0x84] ss:$16 sps:$4 sm:$0xff]   ;;  %v6776_v53 = vld [vmem:[#allocation8 + $0x8c] ss:$16 sps:$4 sm:$0xff]   ;;  %v6782_v54 = vld [vmem:[#allocation8 + $0x80] ss:$16 sps:$4 sm:$0xff]  }
  0x6c   :  { %v6784_v55 = vld [vmem:[#allocation8 + $0x88] ss:$16 sps:$4 sm:$0xff]   ;;  %v6786_v56 = vld [vmem:[#allocation8 + $0xa4] ss:$16 sps:$4 sm:$0xff]   ;;  %v6788_v57 = vld [vmem:[#allocation8 + $0xac] ss:$16 sps:$4 sm:$0xff]  }
  0x6d   :  { %322 = vmatpush1.bf16.msra.mxu0 %v5658_v19  ;;  %365 = vmatpush1.bf16.msra.mxu1 %v5659_v20  ;;  %v6794_v58 = vld [vmem:[#allocation8 + $0xa0] ss:$16 sps:$4 sm:$0xff]   ;;  %v6796_v59 = vld [vmem:[#allocation8 + $0xa8] ss:$16 sps:$4 sm:$0xff]   ;;  %v6798_v60 = vld [vmem:[#allocation8 + $0xc4] ss:$16 sps:$4 sm:$0xff]  }
  0x6e   :  { %323 = vmatprep.subr.bf16.mxu0 %v5660_v21  ;;  %366 = vmatprep.subr.bf16.mxu1 %v5662_v22  ;;  %v6800_v61 = vld [vmem:[#allocation8 + $0xcc] ss:$16 sps:$4 sm:$0xff]   ;;  %v6806_v62 = vld [vmem:[#allocation8 + $0xc0] ss:$16 sps:$4 sm:$0xff]   ;;  %v6808_v63 = vld [vmem:[#allocation8 + $0xc8] ss:$16 sps:$4 sm:$0xff]  }
  0x6f   :  { %v6810_v1 = vld [vmem:[#allocation8 + $0xe4] ss:$16 sps:$4 sm:$0xff]   ;;  %v6812_v2 = vld [vmem:[#allocation8 + $0xec] ss:$16 sps:$4 sm:$0xff]   ;;  %v6818_v3 = vld [vmem:[#allocation8 + $0xe0] ss:$16 sps:$4 sm:$0xff]  }
  0x70   :  { %v6820_v4 = vld [vmem:[#allocation8 + $0xe8] ss:$16 sps:$4 sm:$0xff]   ;;  %v8781_v7 = vsub.s32 0, %v6866_v6  ;;  %v8780_v8 = vsub.s32 2, %v6866_v6  ;;  %v131_v9 = vld [vmem:[%s8773_s3] sm:$0xf] }
  0x71   :  { %324 = vmatpush1.bf16.msra.mxu0 %v5664_v23  ;;  %367 = vmatpush1.bf16.msra.mxu1 %v5665_v24  ;;  %v8778_v10 = vsub.s32 3, %v6866_v6  ;;  %v8779_v11 = vsub.s32 1, %v6866_v6  ;;  %vm2671_vm0 = vcmask 1040384   ;;  %vm2672_vm1 = vsmask.f32 256 }
  0x72   :  { %325 = vmatprep.subr.bf16.mxu0 %v5666_v25  ;;  %368 = vmatprep.subr.bf16.mxu1 %v5668_v26  ;;  %v136_v12 = vrot.slane %v131_v9, %v8781_v7  ;;  %v144_v13 = vrot.slane %v131_v9, %v8780_v8  ;;  %vm7002_vm2 = vmand %vm2671_vm0, %vm2672_vm1  ;;  %vm2680_vm3 = vcmask 1041408   ;;  %vm2681_vm4 = vsmask.f32 1280 }
  0x73   :  { %v148_v14 = vrot.slane %v131_v9, %v8778_v10  ;;  %v140_v16 = vrot.slane %v131_v9, %v8779_v11  ;;  %vm7056_vm5 = vmand %vm2680_vm3, %vm2681_vm4  ;;  %vm2689_vm6 = vcmask 1042432   ;;  %vm2690_vm7 = vsmask.f32 2304 }
  0x74   :  { %vm7220_vm8 = vmand %vm2689_vm6, %vm2690_vm7  ;;  %vm2698_vm9 = vcmask 1043456   ;;  %vm2699_vm10 = vsmask.f32 3328  ;;  %vm2707_vm12 = vcmask 1044480   ;;  %vm2708_vm13 = vsmask.f32 4352 }
  0x75   :  { %326 = vmatpush1.bf16.msra.mxu0 %v5670_v27  ;;  %369 = vmatpush1.bf16.msra.mxu1 %v5671_v28  ;;  %vm7328_vm11 = vmand %vm2698_vm9, %vm2699_vm10  ;;  %vm2716_vm15 = vcmask 1045504   ;;  %vm2717_vm1 = vsmask.f32 5376  ;;  %vm8786_vm7 = vcmask 1046528   ;;  %vm2726_vm10 = vsmask.f32 6400 }
  0x76   :  { %327 = vmatprep.subr.bf16.mxu0 %v5672_v29  ;;  %370 = vmatprep.subr.bf16.mxu1 %v5674_v30  ;;  %vm7444_vm14 = vmand %vm2707_vm12, %vm2708_vm13 }
  0x77   :  { %vm7552_vm4 = vmand %vm2716_vm15, %vm2717_vm1  ;;  %vm2734_vm1 = vcmask 1047552  }
  0x78   :  { %vm7704_vm13 = vmand %vm8786_vm7, %vm2726_vm10  ;;  %vm2735_vm10 = vsmask.f32 7424 }
  0x79   :  { %328 = vmatpush1.bf16.msra.mxu0 %v5676_v31  ;;  %371 = vmatpush1.bf16.msra.mxu1 %v5677_v32 }
  0x7a   :  { %614 = vmatprep.subr.bf16.mxu0 %v6730_v35  ;;  %655 = vmatprep.subr.bf16.mxu1 %v6732_v36 }
  0x7c   :  { %346 = vmatmul.mubr.bf16.vlgmr.msra.gmra.mrb[0].mxu0 %v98_v37  ;;  %389 = vmatmul.mubr.bf16.vlgmr.msra.gmra.mrb[0].mxu1 %v98_v37 }
  0x7d   :  { %615 = vmatpush1.bf16.msra.mxu0 %v6734_v38  ;;  %656 = vmatpush1.bf16.msra.mxu1 %v6736_v39 }
  0x7e   :  { %616 = vmatprep.subr.bf16.mxu0 %v6738_v40  ;;  %657 = vmatprep.subr.bf16.mxu1 %v6742_v41 }
  0x7f   :  { %646 = vmatprep.mubr.bf16.mxu0 %v8782_v0  ;;  %687 = vmatprep.mubr.bf16.mxu1 %v8782_v0 }
  0x81   :  { %617 = vmatpush1.bf16.msra.mxu0 %v6744_v42  ;;  %658 = vmatpush1.bf16.msra.mxu1 %v6748_v43 }
  0x82   :  { %618 = vmatprep.subr.bf16.mxu0 %v6752_v44  ;;  %659 = vmatprep.subr.bf16.mxu1 %v6754_v45 }
  0x85   :  { %619 = vmatpush1.bf16.msra.mxu0 %v6758_v46  ;;  %660 = vmatpush1.bf16.msra.mxu1 %v6762_v47 }
  0x86   :  { %620 = vmatprep.subr.bf16.mxu0 %v6764_v48  ;;  %661 = vmatprep.subr.bf16.mxu1 %v6768_v49 }
  0x89   :  { %621 = vmatpush1.bf16.msra.mxu0 %v6770_v50  ;;  %662 = vmatpush1.bf16.msra.mxu1 %v6772_v51 }
  0x8a   :  { %622 = vmatprep.subr.bf16.mxu0 %v6774_v52  ;;  %663 = vmatprep.subr.bf16.mxu1 %v6776_v53 }
  0x8d   :  { %623 = vmatpush1.bf16.msra.mxu0 %v6782_v54  ;;  %664 = vmatpush1.bf16.msra.mxu1 %v6784_v55 }
  0x8e   :  { %624 = vmatprep.subr.bf16.mxu0 %v6786_v56  ;;  %665 = vmatprep.subr.bf16.mxu1 %v6788_v57 }
  0x91   :  { %625 = vmatpush1.bf16.msra.mxu0 %v6794_v58  ;;  %666 = vmatpush1.bf16.msra.mxu1 %v6796_v59 }
  0x92   :  { %626 = vmatprep.subr.bf16.mxu0 %v6798_v60  ;;  %667 = vmatprep.subr.bf16.mxu1 %v6800_v61 }
  0x95   :  { %627 = vmatpush1.bf16.msra.mxu0 %v6806_v62  ;;  %668 = vmatpush1.bf16.msra.mxu1 %v6808_v63 }
  0x96   :  { %628 = vmatprep.subr.bf16.mxu0 %v6810_v1  ;;  %669 = vmatprep.subr.bf16.mxu1 %v6812_v2 }
  0x99   :  { %629 = vmatpush1.bf16.msra.mxu0 %v6818_v3  ;;  %670 = vmatpush1.bf16.msra.mxu1 %v6820_v4 }
  0x9a   :  { %725 = vmatprep.subr.bf16.mxu0 %v6730_v35  ;;  %766 = vmatprep.subr.bf16.mxu1 %v6732_v36 }
  0x9c   :  { %647 = vmatmul.mubr.bf16.vlgmr.msra.gmra.mrb[4].mxu0 %v8782_v0  ;;  %688 = vmatmul.mubr.bf16.vlgmr.msra.gmra.mrb[4].mxu1 %v8782_v0 }
  0x9d   :  { %726 = vmatpush1.bf16.msra.mxu0 %v6734_v38  ;;  %767 = vmatpush1.bf16.msra.mxu1 %v6736_v39 }
  0x9e   :  { %727 = vmatprep.subr.bf16.mxu0 %v6738_v40  ;;  %768 = vmatprep.subr.bf16.mxu1 %v6742_v41 }
  0x9f   :  { %757 = vmatprep.mubr.bf16.mxu0 %v8782_v0  ;;  %798 = vmatprep.mubr.bf16.mxu1 %v8782_v0 }
  0xa1   :  { %728 = vmatpush1.bf16.msra.mxu0 %v6744_v42  ;;  %769 = vmatpush1.bf16.msra.mxu1 %v6748_v43 }
  0xa2   :  { %729 = vmatprep.subr.bf16.mxu0 %v6752_v44  ;;  %770 = vmatprep.subr.bf16.mxu1 %v6754_v45 }
  0xa5   :  { %730 = vmatpush1.bf16.msra.mxu0 %v6758_v46  ;;  %771 = vmatpush1.bf16.msra.mxu1 %v6762_v47 }
  0xa6   :  { %731 = vmatprep.subr.bf16.mxu0 %v6764_v48  ;;  %772 = vmatprep.subr.bf16.mxu1 %v6768_v49 }
  0xa9   :  { %732 = vmatpush1.bf16.msra.mxu0 %v6770_v50  ;;  %773 = vmatpush1.bf16.msra.mxu1 %v6772_v51 }
  0xaa   :  { %733 = vmatprep.subr.bf16.mxu0 %v6774_v52  ;;  %774 = vmatprep.subr.bf16.mxu1 %v6776_v53 }
  0xad   :  { %734 = vmatpush1.bf16.msra.mxu0 %v6782_v54  ;;  %775 = vmatpush1.bf16.msra.mxu1 %v6784_v55 }
  0xae   :  { %735 = vmatprep.subr.bf16.mxu0 %v6786_v56  ;;  %776 = vmatprep.subr.bf16.mxu1 %v6788_v57 }
  0xb1   :  { %736 = vmatpush1.bf16.msra.mxu0 %v6794_v58  ;;  %777 = vmatpush1.bf16.msra.mxu1 %v6796_v59 }
  0xb2   :  { %737 = vmatprep.subr.bf16.mxu0 %v6798_v60  ;;  %778 = vmatprep.subr.bf16.mxu1 %v6800_v61 }
  0xb5   :  { %738 = vmatpush1.bf16.msra.mxu0 %v6806_v62  ;;  %779 = vmatpush1.bf16.msra.mxu1 %v6808_v63 }
  0xb6   :  { %739 = vmatprep.subr.bf16.mxu0 %v6810_v1  ;;  %780 = vmatprep.subr.bf16.mxu1 %v6812_v2 }
  0xb9   :  { %740 = vmatpush1.bf16.msra.mxu0 %v6818_v3  ;;  %781 = vmatpush1.bf16.msra.mxu1 %v6820_v4 }
  0xba   :  { %855 = vmatprep.subr.bf16.mxu0 %v6730_v35  ;;  %896 = vmatprep.subr.bf16.mxu1 %v6732_v36 }
 0x14f   :  { %v347_v15 = vpop.f32.mrb[0].mxu0  ;;  %v390_v17 = vpop.f32.mrb[0].mxu1 }
 0x150   :  { %v348_v18 = vadd.f32 %v347_v15, %v136_v12  ;;  %v349_v19 = vpop.f32.mrb[1].mxu0  ;;  %v391_v20 = vadd.f32 %v390_v17, %v144_v13  ;;  %v392_v21 = vpop.f32.mrb[1].mxu1 }
 0x151   :  { %v351_v22 = vpop.f32.mrb[2].mxu0  ;;  %v393_v23 = vadd.f32 %v392_v21, %v148_v14  ;;  %v394_v24 = vpop.f32.mrb[2].mxu1  ;;  %v350_v29 = vadd.f32 %v349_v19, %v140_v16 }
 0x152   :  { %v352_v25 = vadd.f32 %v351_v22, %v136_v12  ;;  %v353_v26 = vpop.f32.mrb[3].mxu0  ;;  %v395_v27 = vadd.f32 %v394_v24, %v144_v13  ;;  %v396_v28 = vpop.f32.mrb[3].mxu1 }
 0x153   :  { %v354_v30 = vadd.f32 %v353_v26, %v140_v16  ;;  %v397_v31 = vadd.f32 %v396_v28, %v148_v14 }
 0x154   :  { %v6883_v32 = vpack.c.bf16 %v352_v25, %v348_v18  ;;  %v6885_v33 = vpack.c.bf16 %v395_v27, %v391_v20 }
 0x155   :  { %v6887_v34 = vpack.c.bf16 %v354_v30, %v350_v29  ;;  %v6889_v37 = vpack.c.bf16 %v397_v31, %v393_v23 }
 0x156   :  { %v6892_v5 = vunpack.c.l.bf16 %v6883_v32  ;;  %v6900_v24 = vunpack.c.l.bf16 %v6885_v33 }
 0x157   :  { %v6895_v9 = vunpack.c.l.bf16 %v6887_v34  ;;  %v6904_v26 = vunpack.c.l.bf16 %v6889_v37 }
 0x16f   :  { %v648_v12 = vpop.f32.mrb[4].mxu0  ;;  %v689_v13 = vpop.f32.mrb[4].mxu1 }
 0x170   :  { %v696_v15 = vadd.f32 %v648_v12, %v6892_v5  ;;  %v650_v16 = vpop.f32.mrb[5].mxu0  ;;  %v691_v14 = vpop.f32.mrb[5].mxu1  ;;  %v698_v25 = vadd.f32 %v689_v13, %v6900_v24 }
 0x171   :  { %v697_v17 = vadd.f32 %v650_v16, %v6895_v9  ;;  %v652_v18 = vpop.f32.mrb[6].mxu0  ;;  %v693_v19 = vpop.f32.mrb[6].mxu1  ;;  %v699_v27 = vadd.f32 %v691_v14, %v6904_v26 }
 0x172   :  { %v5452_v20 = vmul.f32 -1.442695, %v696_v15  ;;  %v653_v21 = vpop.f32.mrb[7].mxu0  ;;  %v694_v22 = vpop.f32.mrb[7].mxu1  ;;  %v5454_v28 = vmul.f32 -1.442695, %v698_v25 }
 0x173   :  { %v5453_v23 = vmul.f32 -1.442695, %v697_v17 }
 0x174   :  { %5823 = vpow2.f32 %v5452_v20 }
 0x175   :  { %5825 = vpow2.f32 %v5453_v23 }
 0x176   :  { %5827 = vtanh.f32 %v699_v27 }
 0x177   :  { %5829 = vpow2.f32 %v5454_v28 }
 0x17e   :  { %v5824_v29 = vpop.eup %5823 }
 0x17f   :  { %v709_v30 = vadd.f32 1.0, %v5824_v29  ;;  %v5826_v31 = vpop.eup %5825 }
 0x180   :  { %v710_v12 = vadd.f32 1.0, %v5826_v31  ;;  %v5828_v15 = vpop.eup %5827 }
 0x181   :  { %5831 = vrcp.f32 %v709_v30  ;;  %v5830_v16 = vpop.eup %5829 }
 0x182   :  { %5833 = vrcp.f32 %v710_v12  ;;  %v711_v13 = vadd.f32 1.0, %v5830_v16 }
 0x184   :  { %5835 = vrcp.f32 %v711_v13 }
 0x18b   :  { %v5832_v17 = vpop.eup %5831 }
 0x18c   :  { %v720_v18 = vmul.f32 %v5832_v17, %v5828_v15  ;;  %v5834_v19 = vpop.eup %5833 }
 0x18d   :  { %v719_v20 = vmul.f32 0.0, %v5834_v19 }
 0x18e   :  { %v5836_v14 = vpop.eup %5835 }
 0x18f   :  { %v6907_v21 = vadd.f32 %v720_v18, %v719_v20 }
 0x191   :  { %5837 = vtanh.f32 %v6907_v21 }
 0x19b   :  { %v5838_v22 = vpop.eup %5837 }
 0x19c   :  { %v723_v23 = vmul.f32 %v5838_v22, %v5836_v14 }
 0x19e   :  { %v6910_v25 = vpack.c.bf16 %v723_v23, %v723_v23 }
 0x1a0   :  { %758 = vmatmul.mubr.bf16.vlgmr.msra.gmra.mrb[8].mxu0 %v6910_v25  ;;  %799 = vmatmul.mubr.bf16.vlgmr.msra.gmra.mrb[8].mxu1 %v6910_v25 }
 0x1a1   :  { %856 = vmatpush1.bf16.msra.mxu0 %v6734_v38  ;;  %897 = vmatpush1.bf16.msra.mxu1 %v6736_v39 }
 0x1a2   :  { %857 = vmatprep.subr.bf16.mxu0 %v6738_v40  ;;  %898 = vmatprep.subr.bf16.mxu1 %v6742_v41 }
 0x1a3   :  { %887 = vmatprep.mubr.bf16.mxu0 %v8782_v0  ;;  %928 = vmatprep.mubr.bf16.mxu1 %v8782_v0 }
 0x1a5   :  { %858 = vmatpush1.bf16.msra.mxu0 %v6744_v42  ;;  %899 = vmatpush1.bf16.msra.mxu1 %v6748_v43 }
 0x1a6   :  { %859 = vmatprep.subr.bf16.mxu0 %v6752_v44  ;;  %900 = vmatprep.subr.bf16.mxu1 %v6754_v45 }
 0x1a9   :  { %860 = vmatpush1.bf16.msra.mxu0 %v6758_v46  ;;  %901 = vmatpush1.bf16.msra.mxu1 %v6762_v47 }
 0x1aa   :  { %861 = vmatprep.subr.bf16.mxu0 %v6764_v48  ;;  %902 = vmatprep.subr.bf16.mxu1 %v6768_v49 }
 0x1ad   :  { %862 = vmatpush1.bf16.msra.mxu0 %v6770_v50  ;;  %903 = vmatpush1.bf16.msra.mxu1 %v6772_v51 }
 0x1ae   :  { %863 = vmatprep.subr.bf16.mxu0 %v6774_v52  ;;  %904 = vmatprep.subr.bf16.mxu1 %v6776_v53 }
 0x1b1   :  { %864 = vmatpush1.bf16.msra.mxu0 %v6782_v54  ;;  %905 = vmatpush1.bf16.msra.mxu1 %v6784_v55 }
 0x1b2   :  { %865 = vmatprep.subr.bf16.mxu0 %v6786_v56  ;;  %906 = vmatprep.subr.bf16.mxu1 %v6788_v57 }
 0x1b5   :  { %866 = vmatpush1.bf16.msra.mxu0 %v6794_v58  ;;  %907 = vmatpush1.bf16.msra.mxu1 %v6796_v59 }
 0x1b6   :  { %867 = vmatprep.subr.bf16.mxu0 %v6798_v60  ;;  %908 = vmatprep.subr.bf16.mxu1 %v6800_v61 }
 0x1b9   :  { %868 = vmatpush1.bf16.msra.mxu0 %v6806_v62  ;;  %909 = vmatpush1.bf16.msra.mxu1 %v6808_v63 }
 0x1ba   :  { %869 = vmatprep.subr.bf16.mxu0 %v6810_v1  ;;  %910 = vmatprep.subr.bf16.mxu1 %v6812_v2 }
 0x1bd   :  { %870 = vmatpush1.bf16.msra.mxu0 %v6818_v3  ;;  %911 = vmatpush1.bf16.msra.mxu1 %v6820_v4 }
 0x1be   :  { %984 = vmatprep.subr.bf16.mxu0 %v6730_v35  ;;  %1025 = vmatprep.subr.bf16.mxu1 %v6732_v36 }
 0x273   :  { %v759_v27 = vpop.f32.mrb[8].mxu0  ;;  %v800_v28 = vpop.f32.mrb[8].mxu1 }
 0x274   :  { %v811_v29 = vrot.slane %v759_v27, 7  ;;  %v761_v30 = vpop.f32.mrb[9].mxu0  ;;  %v802_v31 = vpop.f32.mrb[9].mxu1  ;;  %v813_v22 = vrot.slane %v800_v28, 7  ;;  %v843_v28 = vrot.slane %v6907_v21, 7 }
 0x275   :  { %v812_v12 = vrot.slane %v761_v30, 7  ;;  %v763_v15 = vpop.f32.mrb[10].mxu0  ;;  %v804_v16 = vpop.f32.mrb[10].mxu1  ;;  %v814_v23 = vrot.slane %v802_v31, 7 }
 0x276   :  { %v819_v17 = vadd.f32 %v811_v29, %v6892_v5  ;;  %v764_v18 = vpop.f32.mrb[11].mxu0  ;;  %v805_v19 = vpop.f32.mrb[11].mxu1  ;;  %v821_v10 = vadd.f32 %v813_v22, %v6900_v24 }
 0x277   :  { %v820_v13 = vadd.f32 %v812_v12, %v6895_v9  ;;  %v822_v27 = vadd.f32 %v814_v23, %v6904_v26 }
 0x278   :  { %v5455_v20 = vmul.f32 -1.442695, %v819_v17  ;;  %v5457_v11 = vmul.f32 -1.442695, %v821_v10 }
 0x279   :  { %v5456_v14 = vmul.f32 -1.442695, %v820_v13 }
 0x27a   :  { %5839 = vpow2.f32 %v5455_v20 }
 0x27b   :  { %5841 = vpow2.f32 %v5456_v14 }
 0x27c   :  { %5843 = vtanh.f32 %v822_v27 }
 0x27d   :  { %5845 = vpow2.f32 %v5457_v11 }
 0x284   :  { %v5840_v30 = vpop.eup %5839 }
 0x285   :  { %v832_v15 = vadd.f32 1.0, %v5840_v30  ;;  %v5842_v16 = vpop.eup %5841 }
 0x286   :  { %v833_v29 = vadd.f32 1.0, %v5842_v16  ;;  %v5844_v12 = vpop.eup %5843 }
 0x287   :  { %5847 = vrcp.f32 %v832_v15  ;;  %v5846_v17 = vpop.eup %5845 }
 0x288   :  { %5849 = vrcp.f32 %v833_v29  ;;  %v834_v13 = vadd.f32 1.0, %v5846_v17 }
 0x28a   :  { %5851 = vrcp.f32 %v834_v13 }
 0x291   :  { %v5848_v18 = vpop.eup %5847 }
 0x292   :  { %v846_v19 = vmul.f32 %v5848_v18, %v5844_v12  ;;  %v5850_v31 = vpop.eup %5849 }
 0x293   :  { %v845_v20 = vmul.f32 %v5850_v31, %v843_v28 }
 0x294   :  { %v5852_v10 = vpop.eup %5851 }
 0x295   :  { %v6953_v14 = vadd.f32 %v846_v19, %v845_v20 }
 0x297   :  { %5853 = vtanh.f32 %v6953_v14 }
 0x2a1   :  { %v5854_v22 = vpop.eup %5853 }
 0x2a2   :  { %v849_v11 = vmul.f32 %v5854_v22, %v5852_v10 }
 0x2a4   :  { %v6956_v23 = vpack.c.bf16 %v849_v11, %v849_v11 }
 0x2a6   :  { %v852_v27 = vshrl.u32 %v6956_v23, 16 }
 0x2a8   :  { %888 = vmatmul.mubr.bf16.vlgmr.msra.gmra.mrb[12].mxu0 %v852_v27  ;;  %929 = vmatmul.mubr.bf16.vlgmr.msra.gmra.mrb[12].mxu1 %v852_v27 }
 0x2a9   :  { %985 = vmatpush1.bf16.msra.mxu0 %v6734_v38  ;;  %1026 = vmatpush1.bf16.msra.mxu1 %v6736_v39 }
 0x2aa   :  { %986 = vmatprep.subr.bf16.mxu0 %v6738_v40  ;;  %1027 = vmatprep.subr.bf16.mxu1 %v6742_v41 }
 0x2ab   :  { %1016 = vmatprep.mubr.bf16.mxu0 %v8782_v0  ;;  %1057 = vmatprep.mubr.bf16.mxu1 %v8782_v0 }
 0x2ad   :  { %987 = vmatpush1.bf16.msra.mxu0 %v6744_v42  ;;  %1028 = vmatpush1.bf16.msra.mxu1 %v6748_v43 }
 0x2ae   :  { %988 = vmatprep.subr.bf16.mxu0 %v6752_v44  ;;  %1029 = vmatprep.subr.bf16.mxu1 %v6754_v45 }
 0x2b1   :  { %989 = vmatpush1.bf16.msra.mxu0 %v6758_v46  ;;  %1030 = vmatpush1.bf16.msra.mxu1 %v6762_v47 }
 0x2b2   :  { %990 = vmatprep.subr.bf16.mxu0 %v6764_v48  ;;  %1031 = vmatprep.subr.bf16.mxu1 %v6768_v49 }
 0x2b5   :  { %991 = vmatpush1.bf16.msra.mxu0 %v6770_v50  ;;  %1032 = vmatpush1.bf16.msra.mxu1 %v6772_v51 }
 0x2b6   :  { %992 = vmatprep.subr.bf16.mxu0 %v6774_v52  ;;  %1033 = vmatprep.subr.bf16.mxu1 %v6776_v53 }
 0x2b9   :  { %993 = vmatpush1.bf16.msra.mxu0 %v6782_v54  ;;  %1034 = vmatpush1.bf16.msra.mxu1 %v6784_v55 }
 0x2ba   :  { %994 = vmatprep.subr.bf16.mxu0 %v6786_v56  ;;  %1035 = vmatprep.subr.bf16.mxu1 %v6788_v57 }
 0x2bd   :  { %995 = vmatpush1.bf16.msra.mxu0 %v6794_v58  ;;  %1036 = vmatpush1.bf16.msra.mxu1 %v6796_v59 }
 0x2be   :  { %996 = vmatprep.subr.bf16.mxu0 %v6798_v60  ;;  %1037 = vmatprep.subr.bf16.mxu1 %v6800_v61 }
 0x2c1   :  { %997 = vmatpush1.bf16.msra.mxu0 %v6806_v62  ;;  %1038 = vmatpush1.bf16.msra.mxu1 %v6808_v63 }
 0x2c2   :  { %998 = vmatprep.subr.bf16.mxu0 %v6810_v1  ;;  %1039 = vmatprep.subr.bf16.mxu1 %v6812_v2 }
 0x2c5   :  { %999 = vmatpush1.bf16.msra.mxu0 %v6818_v3  ;;  %1040 = vmatpush1.bf16.msra.mxu1 %v6820_v4 }
 0x2c6   :  { %1115 = vmatprep.subr.bf16.mxu0 %v6730_v35  ;;  %1156 = vmatprep.subr.bf16.mxu1 %v6732_v36 }
 0x37b   :  { %v889_v21 = vpop.f32.mrb[12].mxu0  ;;  %v930_v30 = vpop.f32.mrb[12].mxu1 }
 0x37c   :  { %v941_v15 = vrot.slane %v889_v21, 6  ;;  %v891_v16 = vpop.f32.mrb[13].mxu0  ;;  %v932_v29 = vpop.f32.mrb[13].mxu1  ;;  %v943_v22 = vrot.slane %v930_v30, 6  ;;  %v973_v30 = vrot.slane %v6953_v14, 7 }
 0x37d   :  { %v942_v12 = vrot.slane %v891_v16, 6  ;;  %v893_v17 = vpop.f32.mrb[14].mxu0  ;;  %v934_v18 = vpop.f32.mrb[14].mxu1  ;;  %v944_v11 = vrot.slane %v932_v29, 6 }
 0x37e   :  { %v949_v28 = vadd.f32 %v941_v15, %v6892_v5  ;;  %v894_v19 = vpop.f32.mrb[15].mxu0  ;;  %v935_v31 = vpop.f32.mrb[15].mxu1  ;;  %v951_v27 = vadd.f32 %v943_v22, %v6900_v24 }
 0x37f   :  { %v950_v13 = vadd.f32 %v942_v12, %v6895_v9  ;;  %v952_v21 = vadd.f32 %v944_v11, %v6904_v26 }
 0x380   :  { %v5458_v20 = vmul.f32 -1.442695, %v949_v28  ;;  %v5460_v8 = vmul.f32 -1.442695, %v951_v27 }
 0x381   :  { %v5459_v10 = vmul.f32 -1.442695, %v950_v13 }
 0x382   :  { %5855 = vpow2.f32 %v5458_v20 }
 0x383   :  { %5857 = vpow2.f32 %v5459_v10 }
 0x384   :  { %5859 = vtanh.f32 %v952_v21  ;;  %v2674_v21 = vsel %vm7002_vm2, %v6910_v25, %v6956_v23 }
 0x385   :  { %5861 = vpow2.f32 %v5460_v8 }
 0x38c   :  { %v5856_v16 = vpop.eup %5855 }
 0x38d   :  { %v962_v17 = vadd.f32 1.0, %v5856_v16  ;;  %v5858_v18 = vpop.eup %5857 }
 0x38e   :  { %v963_v15 = vadd.f32 1.0, %v5858_v18  ;;  %v5860_v12 = vpop.eup %5859 }
 0x38f   :  { %5863 = vrcp.f32 %v962_v17  ;;  %v5862_v28 = vpop.eup %5861 }
 0x390   :  { %5865 = vrcp.f32 %v963_v15  ;;  %v964_v13 = vadd.f32 1.0, %v5862_v28 }
 0x392   :  { %5867 = vrcp.f32 %v964_v13 }
 0x399   :  { %v5864_v19 = vpop.eup %5863 }
 0x39a   :  { %v976_v31 = vmul.f32 %v5864_v19, %v5860_v12  ;;  %v5866_v29 = vpop.eup %5865 }
 0x39b   :  { %v975_v20 = vmul.f32 %v5866_v29, %v973_v30 }
 0x39c   :  { %v5868_v8 = vpop.eup %5867 }
 0x39d   :  { %v6998_v10 = vadd.f32 %v976_v31, %v975_v20 }
 0x39f   :  { %5869 = vtanh.f32 %v6998_v10 }
 0x3a9   :  { %v5870_v22 = vpop.eup %5869 }
 0x3aa   :  { %v979_v27 = vmul.f32 %v5870_v22, %v5868_v8 }
 0x3ac   :  { %v980_v14 = vpack.c.bf16 %v979_v27, %v979_v27 }
 0x3ae   :  { %v982_v16 = vrot.slane %v980_v14, 1  ;;  %v7011_v17 = vsel %vm2671_vm0, %v2674_v21, %v980_v14 }
 0x3b0   :  { %1017 = vmatmul.mubr.bf16.vlgmr.msra.gmra.mrb[16].mxu0 %v982_v16  ;;  %1058 = vmatmul.mubr.bf16.vlgmr.msra.gmra.mrb[16].mxu1 %v982_v16 }
 0x3b1   :  { %1116 = vmatpush1.bf16.msra.mxu0 %v6734_v38  ;;  %1157 = vmatpush1.bf16.msra.mxu1 %v6736_v39 }
 0x3b2   :  { %1117 = vmatprep.subr.bf16.mxu0 %v6738_v40  ;;  %1158 = vmatprep.subr.bf16.mxu1 %v6742_v41 }
 0x3b3   :  { %1147 = vmatprep.mubr.bf16.mxu0 %v8782_v0  ;;  %1188 = vmatprep.mubr.bf16.mxu1 %v8782_v0 }
 0x3b5   :  { %1118 = vmatpush1.bf16.msra.mxu0 %v6744_v42  ;;  %1159 = vmatpush1.bf16.msra.mxu1 %v6748_v43 }
 0x3b6   :  { %1119 = vmatprep.subr.bf16.mxu0 %v6752_v44  ;;  %1160 = vmatprep.subr.bf16.mxu1 %v6754_v45 }
 0x3b9   :  { %1120 = vmatpush1.bf16.msra.mxu0 %v6758_v46  ;;  %1161 = vmatpush1.bf16.msra.mxu1 %v6762_v47 }
 0x3ba   :  { %1121 = vmatprep.subr.bf16.mxu0 %v6764_v48  ;;  %1162 = vmatprep.subr.bf16.mxu1 %v6768_v49 }
 0x3bd   :  { %1122 = vmatpush1.bf16.msra.mxu0 %v6770_v50  ;;  %1163 = vmatpush1.bf16.msra.mxu1 %v6772_v51 }
 0x3be   :  { %1123 = vmatprep.subr.bf16.mxu0 %v6774_v52  ;;  %1164 = vmatprep.subr.bf16.mxu1 %v6776_v53 }
 0x3c1   :  { %1124 = vmatpush1.bf16.msra.mxu0 %v6782_v54  ;;  %1165 = vmatpush1.bf16.msra.mxu1 %v6784_v55 }
 0x3c2   :  { %1125 = vmatprep.subr.bf16.mxu0 %v6786_v56  ;;  %1166 = vmatprep.subr.bf16.mxu1 %v6788_v57 }
 0x3c5   :  { %1126 = vmatpush1.bf16.msra.mxu0 %v6794_v58  ;;  %1167 = vmatpush1.bf16.msra.mxu1 %v6796_v59 }
 0x3c6   :  { %1127 = vmatprep.subr.bf16.mxu0 %v6798_v60  ;;  %1168 = vmatprep.subr.bf16.mxu1 %v6800_v61 }
 0x3c9   :  { %1128 = vmatpush1.bf16.msra.mxu0 %v6806_v62  ;;  %1169 = vmatpush1.bf16.msra.mxu1 %v6808_v63 }
 0x3ca   :  { %1129 = vmatprep.subr.bf16.mxu0 %v6810_v1  ;;  %1170 = vmatprep.subr.bf16.mxu1 %v6812_v2 }
 0x3cd   :  { %1130 = vmatpush1.bf16.msra.mxu0 %v6818_v3  ;;  %1171 = vmatpush1.bf16.msra.mxu1 %v6820_v4 }
 0x3ce   :  { %1244 = vmatprep.subr.bf16.mxu0 %v6730_v35  ;;  %1285 = vmatprep.subr.bf16.mxu1 %v6732_v36 }
 0x483   :  { %v1018_v38 = vpop.f32.mrb[16].mxu0  ;;  %v1059_v39 = vpop.f32.mrb[16].mxu1 }
 0x484   :  { %v1070_v40 = vrot.slane %v1018_v38, 5  ;;  %v1020_v25 = vpop.f32.mrb[17].mxu0  ;;  %v1061_v23 = vpop.f32.mrb[17].mxu1  ;;  %v1072_v35 = vrot.slane %v1059_v39, 5  ;;  %v1102_v39 = vrot.slane %v6998_v10, 7 }
 0x485   :  { %v1071_v18 = vrot.slane %v1020_v25, 5  ;;  %v1022_v15 = vpop.f32.mrb[18].mxu0  ;;  %v1063_v12 = vpop.f32.mrb[18].mxu1  ;;  %v1073_v36 = vrot.slane %v1061_v23, 5 }
 0x486   :  { %v1078_v28 = vadd.f32 %v1070_v40, %v6892_v5  ;;  %v1023_v19 = vpop.f32.mrb[19].mxu0  ;;  %v1064_v30 = vpop.f32.mrb[19].mxu1  ;;  %v1080_v20 = vadd.f32 %v1072_v35, %v6900_v24 }
 0x487   :  { %v1079_v31 = vadd.f32 %v1071_v18, %v6895_v9  ;;  %v1081_v8 = vadd.f32 %v1073_v36, %v6904_v26 }
 0x488   :  { %v5461_v29 = vmul.f32 -1.442695, %v1078_v28  ;;  %v5463_v22 = vmul.f32 -1.442695, %v1080_v20  ;;  %v7067_v20 = vld [vmem:[#allocation8] ss:$16 sps:$4 sm:$0xff]  }
 0x489   :  { %v5462_v13 = vmul.f32 -1.442695, %v1079_v31 }
 0x48a   :  { %5871 = vpow2.f32 %v5461_v29  ;;  %v8794_v29 = vmov 0 }
 0x48b   :  { %5873 = vpow2.f32 %v5462_v13  ;;  %v8795_v29 = vsel %vm7056_vm5, 4294967295, %v8794_v29 }
 0x48c   :  { %5875 = vtanh.f32 %v1081_v8  ;;  %8796 = vst [vmem:[#allocation17_spill] sm:$0xff] %v8795_v29  ;;  %v7070_v8 = vld [vmem:[#allocation8 + $0x8] ss:$16 sps:$4 sm:$0xff]  }
 0x48d   :  { %5877 = vpow2.f32 %v5463_v22  ;;  %v7073_v22 = vld [vmem:[#allocation8 + $0x24] ss:$16 sps:$4 sm:$0xff]  }
 0x494   :  { %v5872_v27 = vpop.eup %5871 }
 0x495   :  { %v1091_v14 = vadd.f32 1.0, %v5872_v27  ;;  %v5874_v21 = vpop.eup %5873 }
 0x496   :  { %v1092_v16 = vadd.f32 1.0, %v5874_v21  ;;  %v5876_v38 = vpop.eup %5875 }
 0x497   :  { %5879 = vrcp.f32 %v1091_v14  ;;  %v5878_v40 = vpop.eup %5877 }
 0x498   :  { %5881 = vrcp.f32 %v1092_v16  ;;  %v1093_v15 = vadd.f32 1.0, %v5878_v40 }
 0x49a   :  { %5883 = vrcp.f32 %v1093_v15 }
 0x4a1   :  { %v5880_v25 = vpop.eup %5879 }
 0x4a2   :  { %v1105_v18 = vmul.f32 %v5880_v25, %v5876_v38  ;;  %v5882_v23 = vpop.eup %5881 }
 0x4a3   :  { %v1104_v12 = vmul.f32 %v5882_v23, %v1102_v39 }
 0x4a4   :  { %v5884_v19 = vpop.eup %5883 }
 0x4a5   :  { %v7052_v28 = vadd.f32 %v1105_v18, %v1104_v12 }
 0x4a7   :  { %5885 = vtanh.f32 %v7052_v28  ;;  %v1233_v16 = vrot.slane %v7052_v28, 7 }
 0x4b1   :  { %v5886_v30 = vpop.eup %5885 }
 0x4b2   :  { %v1108_v31 = vmul.f32 %v5886_v30, %v5884_v19 }
 0x4b4   :  { %v7060_v10 = vpack.c.bf16 %v1108_v31, %v1108_v31  ;;  %v7130_v31 = vld [vmem:[#allocation8 + $0x2c] ss:$16 sps:$4 sm:$0xff]  }
 0x4b6   :  { %v1111_v13 = vshrl.u32 %v7060_v10, 16  ;;  %v2683_v35 = vsel %vm7056_vm5, %v7011_v17, %v7060_v10  ;;  %v7135_v17 = vld [vmem:[#allocation8 + $0x20] ss:$16 sps:$4 sm:$0xff]   ;;  %v7138_v10 = vld [vmem:[#allocation8 + $0x28] ss:$16 sps:$4 sm:$0xff]  }
 0x4b8   :  { %v1113_v36 = vrot.slane %v1111_v13, 1  ;;  %v7141_v13 = vld [vmem:[#allocation8 + $0x44] ss:$16 sps:$4 sm:$0xff]  }
 0x4ba   :  { %1148 = vmatmul.mubr.bf16.vlgmr.msra.gmra.mrb[20].mxu0 %v1113_v36  ;;  %1189 = vmatmul.mubr.bf16.vlgmr.msra.gmra.mrb[20].mxu1 %v1113_v36  ;;  %v7147_v36 = vld [vmem:[#allocation8 + $0x40] ss:$16 sps:$4 sm:$0xff]  }
 0x4bb   :  { %1245 = vmatpush1.bf16.msra.mxu0 %v7067_v20  ;;  %1286 = vmatpush1.bf16.msra.mxu1 %v7070_v8 }
 0x4bc   :  { %1246 = vmatprep.subr.bf16.mxu0 %v7073_v22  ;;  %1287 = vmatprep.subr.bf16.mxu1 %v6742_v41  ;;  %v7105_v41 = vld [vmem:[#allocation8 + $0x4] ss:$16 sps:$4 sm:$0xff]  }
 0x4bd   :  { %1276 = vmatprep.mubr.bf16.mxu0 %v8782_v0  ;;  %1317 = vmatprep.mubr.bf16.mxu1 %v8782_v0 }
 0x4bf   :  { %1247 = vmatpush1.bf16.msra.mxu0 %v6744_v42  ;;  %1288 = vmatpush1.bf16.msra.mxu1 %v6748_v43  ;;  %v7108_v42 = vld [vmem:[#allocation8 + $0xc] ss:$16 sps:$4 sm:$0xff]  }
 0x4c0   :  { %1248 = vmatprep.subr.bf16.mxu0 %v6752_v44  ;;  %1289 = vmatprep.subr.bf16.mxu1 %v6754_v45 }
 0x4c3   :  { %1249 = vmatpush1.bf16.msra.mxu0 %v6758_v46  ;;  %1290 = vmatpush1.bf16.msra.mxu1 %v6762_v47 }
 0x4c4   :  { %1250 = vmatprep.subr.bf16.mxu0 %v6764_v48  ;;  %1291 = vmatprep.subr.bf16.mxu1 %v6768_v49 }
 0x4c7   :  { %1251 = vmatpush1.bf16.msra.mxu0 %v6770_v50  ;;  %1292 = vmatpush1.bf16.msra.mxu1 %v6772_v51 }
 0x4c8   :  { %1252 = vmatprep.subr.bf16.mxu0 %v6774_v52  ;;  %1293 = vmatprep.subr.bf16.mxu1 %v6776_v53 }
 0x4cb   :  { %1253 = vmatpush1.bf16.msra.mxu0 %v6782_v54  ;;  %1294 = vmatpush1.bf16.msra.mxu1 %v6784_v55 }
 0x4cc   :  { %1254 = vmatprep.subr.bf16.mxu0 %v6786_v56  ;;  %1295 = vmatprep.subr.bf16.mxu1 %v6788_v57 }
 0x4cf   :  { %1255 = vmatpush1.bf16.msra.mxu0 %v6794_v58  ;;  %1296 = vmatpush1.bf16.msra.mxu1 %v6796_v59 }
 0x4d0   :  { %1256 = vmatprep.subr.bf16.mxu0 %v6798_v60  ;;  %1297 = vmatprep.subr.bf16.mxu1 %v6800_v61 }
 0x4d3   :  { %1257 = vmatpush1.bf16.msra.mxu0 %v6806_v62  ;;  %1298 = vmatpush1.bf16.msra.mxu1 %v6808_v63 }
 0x4d4   :  { %1258 = vmatprep.subr.bf16.mxu0 %v6810_v1  ;;  %1299 = vmatprep.subr.bf16.mxu1 %v6812_v2 }
 0x4d7   :  { %1259 = vmatpush1.bf16.msra.mxu0 %v6818_v3  ;;  %1300 = vmatpush1.bf16.msra.mxu1 %v6820_v4 }
 0x4d8   :  { %1375 = vmatprep.subr.bf16.mxu0 %v7105_v41  ;;  %1416 = vmatprep.subr.bf16.mxu1 %v7108_v42 }
 0x58d   :  { %v1149_v43 = vpop.f32.mrb[20].mxu0  ;;  %v1190_v44 = vpop.f32.mrb[20].mxu1 }
 0x58e   :  { %v1201_v45 = vrot.slane %v1149_v43, 4  ;;  %v1151_v46 = vpop.f32.mrb[21].mxu0  ;;  %v1192_v47 = vpop.f32.mrb[21].mxu1  ;;  %v1203_v57 = vrot.slane %v1190_v44, 4  ;;  %v7150_v43 = vld [vmem:[#allocation8 + $0x48] ss:$16 sps:$4 sm:$0xff]  }
 0x58f   :  { %v1202_v48 = vrot.slane %v1151_v46, 4  ;;  %v1153_v49 = vpop.f32.mrb[22].mxu0  ;;  %v1194_v50 = vpop.f32.mrb[22].mxu1  ;;  %v1204_v58 = vrot.slane %v1192_v47, 4  ;;  %v7153_v44 = vld [vmem:[#allocation8 + $0x64] ss:$16 sps:$4 sm:$0xff]  }
 0x590   :  { %v1209_v51 = vadd.f32 %v1201_v45, %v6892_v5  ;;  %v1154_v52 = vpop.f32.mrb[23].mxu0  ;;  %v1195_v53 = vpop.f32.mrb[23].mxu1  ;;  %v1211_v59 = vadd.f32 %v1203_v57, %v6900_v24  ;;  %v7156_v45 = vld [vmem:[#allocation8 + $0x6c] ss:$16 sps:$4 sm:$0xff]   ;;  %v7159_v46 = vld [vmem:[#allocation8 + $0x60] ss:$16 sps:$4 sm:$0xff]  }
 0x591   :  { %v1210_v54 = vadd.f32 %v1202_v48, %v6895_v9  ;;  %v1212_v60 = vadd.f32 %v1204_v58, %v6904_v26  ;;  %v7162_v47 = vld [vmem:[#allocation8 + $0x68] ss:$16 sps:$4 sm:$0xff]   ;;  %v7165_v48 = vld [vmem:[#allocation8 + $0x84] ss:$16 sps:$4 sm:$0xff]   ;;  %v7168_v49 = vld [vmem:[#allocation8 + $0x8c] ss:$16 sps:$4 sm:$0xff]  }
 0x592   :  { %v5464_v55 = vmul.f32 -1.442695, %v1209_v51  ;;  %v5466_v61 = vmul.f32 -1.442695, %v1211_v59  ;;  %v7171_v50 = vld [vmem:[#allocation8 + $0x80] ss:$16 sps:$4 sm:$0xff]  }
 0x593   :  { %v5465_v56 = vmul.f32 -1.442695, %v1210_v54  ;;  %v7174_v51 = vld [vmem:[#allocation8 + $0x88] ss:$16 sps:$4 sm:$0xff]   ;;  %v7177_v52 = vld [vmem:[#allocation8 + $0xa4] ss:$16 sps:$4 sm:$0xff]  }
 0x594   :  { %5887 = vpow2.f32 %v5464_v55  ;;  %v7180_v53 = vld [vmem:[#allocation8 + $0xac] ss:$16 sps:$4 sm:$0xff]   ;;  %v7183_v54 = vld [vmem:[#allocation8 + $0xa0] ss:$16 sps:$4 sm:$0xff]   ;;  %v7186_v55 = vld [vmem:[#allocation8 + $0xa8] ss:$16 sps:$4 sm:$0xff]  }
 0x595   :  { %5889 = vpow2.f32 %v5465_v56  ;;  %v7189_v56 = vld [vmem:[#allocation8 + $0xc4] ss:$16 sps:$4 sm:$0xff]   ;;  %v7192_v57 = vld [vmem:[#allocation8 + $0xcc] ss:$16 sps:$4 sm:$0xff]   ;;  %v7195_v58 = vld [vmem:[#allocation8 + $0xc0] ss:$16 sps:$4 sm:$0xff]  }
 0x596   :  { %5891 = vtanh.f32 %v1212_v60  ;;  %v7198_v59 = vld [vmem:[#allocation8 + $0xc8] ss:$16 sps:$4 sm:$0xff]   ;;  %v7201_v60 = vld [vmem:[#allocation8 + $0xe4] ss:$16 sps:$4 sm:$0xff]  }
 0x597   :  { %5893 = vpow2.f32 %v5466_v61  ;;  %v7204_v61 = vld [vmem:[#allocation8 + $0xec] ss:$16 sps:$4 sm:$0xff]  }
 0x59e   :  { %v5888_v62 = vpop.eup %5887 }
 0x59f   :  { %v1222_v63 = vadd.f32 1.0, %v5888_v62  ;;  %v5890_v1 = vpop.eup %5889 }
 0x5a0   :  { %v1223_v2 = vadd.f32 1.0, %v5890_v1  ;;  %v5892_v27 = vpop.eup %5891 }
 0x5a1   :  { %5895 = vrcp.f32 %v1222_v63  ;;  %v5894_v14 = vpop.eup %5893 }
 0x5a2   :  { %5897 = vrcp.f32 %v1223_v2  ;;  %v1224_v25 = vadd.f32 1.0, %v5894_v14 }
 0x5a4   :  { %5899 = vrcp.f32 %v1224_v25 }
 0x5ab   :  { %v5896_v21 = vpop.eup %5895 }
 0x5ac   :  { %v1236_v38 = vmul.f32 %v5896_v21, %v5892_v27  ;;  %v5898_v40 = vpop.eup %5897 }
 0x5ad   :  { %v1235_v39 = vmul.f32 %v5898_v40, %v1233_v16 }
 0x5ae   :  { %v5900_v23 = vpop.eup %5899 }
 0x5af   :  { %v7116_v18 = vadd.f32 %v1236_v38, %v1235_v39 }
 0x5b1   :  { %5901 = vtanh.f32 %v7116_v18 }
 0x5bb   :  { %v5902_v15 = vpop.eup %5901 }
 0x5bc   :  { %v1239_v12 = vmul.f32 %v5902_v15, %v5900_v23 }
 0x5be   :  { %v1240_v19 = vpack.c.bf16 %v1239_v12, %v1239_v12 }
 0x5c0   :  { %v1242_v30 = vrot.slane %v1240_v19, 2  ;;  %v7125_v28 = vsel %vm2680_vm3, %v2683_v35, %v1240_v19  ;;  %v7144_v35 = vld [vmem:[#allocation8 + $0x4c] ss:$16 sps:$4 sm:$0xff]  }
 0x5c2   :  { %1277 = vmatmul.mubr.bf16.vlgmr.msra.gmra.mrb[24].mxu0 %v1242_v30  ;;  %1318 = vmatmul.mubr.bf16.vlgmr.msra.gmra.mrb[24].mxu1 %v1242_v30 }
 0x5c3   :  { %1376 = vmatpush1.bf16.msra.mxu0 %v7067_v20  ;;  %1417 = vmatpush1.bf16.msra.mxu1 %v7070_v8 }
 0x5c4   :  { %1377 = vmatprep.subr.bf16.mxu0 %v7073_v22  ;;  %1418 = vmatprep.subr.bf16.mxu1 %v7130_v31 }
 0x5c5   :  { %1407 = vmatprep.mubr.bf16.mxu0 %v8782_v0  ;;  %1448 = vmatprep.mubr.bf16.mxu1 %v8782_v0 }
 0x5c7   :  { %1378 = vmatpush1.bf16.msra.mxu0 %v7135_v17  ;;  %1419 = vmatpush1.bf16.msra.mxu1 %v7138_v10 }
 0x5c8   :  { %1379 = vmatprep.subr.bf16.mxu0 %v7141_v13  ;;  %1420 = vmatprep.subr.bf16.mxu1 %v7144_v35 }
 0x5cb   :  { %1380 = vmatpush1.bf16.msra.mxu0 %v7147_v36  ;;  %1421 = vmatpush1.bf16.msra.mxu1 %v7150_v43 }
 0x5cc   :  { %1381 = vmatprep.subr.bf16.mxu0 %v7153_v44  ;;  %1422 = vmatprep.subr.bf16.mxu1 %v7156_v45 }
 0x5cf   :  { %1382 = vmatpush1.bf16.msra.mxu0 %v7159_v46  ;;  %1423 = vmatpush1.bf16.msra.mxu1 %v7162_v47 }
 0x5d0   :  { %1383 = vmatprep.subr.bf16.mxu0 %v7165_v48  ;;  %1424 = vmatprep.subr.bf16.mxu1 %v7168_v49 }
 0x5d3   :  { %1384 = vmatpush1.bf16.msra.mxu0 %v7171_v50  ;;  %1425 = vmatpush1.bf16.msra.mxu1 %v7174_v51 }
 0x5d4   :  { %1385 = vmatprep.subr.bf16.mxu0 %v7177_v52  ;;  %1426 = vmatprep.subr.bf16.mxu1 %v7180_v53 }
 0x5d7   :  { %1386 = vmatpush1.bf16.msra.mxu0 %v7183_v54  ;;  %1427 = vmatpush1.bf16.msra.mxu1 %v7186_v55 }
 0x5d8   :  { %1387 = vmatprep.subr.bf16.mxu0 %v7189_v56  ;;  %1428 = vmatprep.subr.bf16.mxu1 %v7192_v57 }
 0x5db   :  { %1388 = vmatpush1.bf16.msra.mxu0 %v7195_v58  ;;  %1429 = vmatpush1.bf16.msra.mxu1 %v7198_v59 }
 0x5dc   :  { %1389 = vmatprep.subr.bf16.mxu0 %v7201_v60  ;;  %1430 = vmatprep.subr.bf16.mxu1 %v7204_v61 }
 0x5df   :  { %1390 = vmatpush1.bf16.msra.mxu0 %v6818_v3  ;;  %1431 = vmatpush1.bf16.msra.mxu1 %v6820_v4 }
 0x5e0   :  { %1504 = vmatprep.subr.bf16.mxu0 %v7105_v41  ;;  %1545 = vmatprep.subr.bf16.mxu1 %v7108_v42 }
 0x695   :  { %v1278_v62 = vpop.f32.mrb[24].mxu0  ;;  %v1319_v63 = vpop.f32.mrb[24].mxu1 }
 0x696   :  { %v1330_v1 = vrot.slane %v1278_v62, 3  ;;  %v1280_v2 = vpop.f32.mrb[25].mxu0  ;;  %v1321_v27 = vpop.f32.mrb[25].mxu1  ;;  %v1332_v23 = vrot.slane %v1319_v63, 3  ;;  %v1362_v63 = vrot.slane %v7116_v18, 7 }
 0x697   :  { %v1331_v14 = vrot.slane %v1280_v2, 3  ;;  %v1282_v21 = vpop.f32.mrb[26].mxu0  ;;  %v1323_v16 = vpop.f32.mrb[26].mxu1  ;;  %v1333_v15 = vrot.slane %v1321_v27, 3 }
 0x698   :  { %v1338_v38 = vadd.f32 %v1330_v1, %v6892_v5  ;;  %v1283_v40 = vpop.f32.mrb[27].mxu0  ;;  %v1324_v25 = vpop.f32.mrb[27].mxu1  ;;  %v1340_v12 = vadd.f32 %v1332_v23, %v6900_v24 }
 0x699   :  { %v1339_v3 = vadd.f32 %v1331_v14, %v6895_v9  ;;  %v1341_v19 = vadd.f32 %v1333_v15, %v6904_v26 }
 0x69a   :  { %v5467_v39 = vmul.f32 -1.442695, %v1338_v38  ;;  %v5469_v30 = vmul.f32 -1.442695, %v1340_v12 }
 0x69b   :  { %v5468_v4 = vmul.f32 -1.442695, %v1339_v3 }
 0x69c   :  { %5903 = vpow2.f32 %v5467_v39 }
 0x69d   :  { %5905 = vpow2.f32 %v5468_v4 }
 0x69e   :  { %5907 = vtanh.f32 %v1341_v19 }
 0x69f   :  { %5909 = vpow2.f32 %v5469_v30 }
 0x6a6   :  { %v5904_v62 = vpop.eup %5903 }
 0x6a7   :  { %v1351_v2 = vadd.f32 1.0, %v5904_v62  ;;  %v5906_v21 = vpop.eup %5905 }
 0x6a8   :  { %v1352_v1 = vadd.f32 1.0, %v5906_v21  ;;  %v5908_v14 = vpop.eup %5907  ;;  %v7264_v21 = vld [vmem:[#allocation8 + $0xe8] ss:$16 sps:$4 sm:$0xff]  }
 0x6a9   :  { %5911 = vrcp.f32 %v1351_v2  ;;  %v5910_v16 = vpop.eup %5909  ;;  %v7261_v2 = vld [vmem:[#allocation8 + $0xe0] ss:$16 sps:$4 sm:$0xff]  }
 0x6aa   :  { %5913 = vrcp.f32 %v1352_v1  ;;  %v1353_v25 = vadd.f32 1.0, %v5910_v16 }
 0x6ac   :  { %5915 = vrcp.f32 %v1353_v25 }
 0x6b3   :  { %v5912_v38 = vpop.eup %5911 }
 0x6b4   :  { %v1365_v40 = vmul.f32 %v5912_v38, %v5908_v14  ;;  %v5914_v27 = vpop.eup %5913 }
 0x6b5   :  { %v1364_v3 = vmul.f32 %v5914_v27, %v1362_v63 }
 0x6b6   :  { %v5916_v4 = vpop.eup %5915 }
 0x6b7   :  { %v7216_v39 = vadd.f32 %v1365_v40, %v1364_v3 }
 0x6b9   :  { %5917 = vtanh.f32 %v7216_v39 }
 0x6c3   :  { %v5918_v23 = vpop.eup %5917 }
 0x6c4   :  { %v1368_v15 = vmul.f32 %v5918_v23, %v5916_v4 }
 0x6c6   :  { %v7224_v18 = vpack.c.bf16 %v1368_v15, %v1368_v15 }
 0x6c8   :  { %v1371_v19 = vshrl.u32 %v7224_v18, 16 }
 0x6ca   :  { %v1373_v62 = vrot.slane %v1371_v19, 2 }
 0x6cc   :  { %1408 = vmatmul.mubr.bf16.vlgmr.msra.gmra.mrb[28].mxu0 %v1373_v62  ;;  %1449 = vmatmul.mubr.bf16.vlgmr.msra.gmra.mrb[28].mxu1 %v1373_v62 }
 0x6cd   :  { %1505 = vmatpush1.bf16.msra.mxu0 %v7067_v20  ;;  %1546 = vmatpush1.bf16.msra.mxu1 %v7070_v8 }
 0x6ce   :  { %1506 = vmatprep.subr.bf16.mxu0 %v7073_v22  ;;  %1547 = vmatprep.subr.bf16.mxu1 %v7130_v31 }
 0x6cf   :  { %1536 = vmatprep.mubr.bf16.mxu0 %v8782_v0  ;;  %1577 = vmatprep.mubr.bf16.mxu1 %v8782_v0 }
 0x6d1   :  { %1507 = vmatpush1.bf16.msra.mxu0 %v7135_v17  ;;  %1548 = vmatpush1.bf16.msra.mxu1 %v7138_v10 }
 0x6d2   :  { %1508 = vmatprep.subr.bf16.mxu0 %v7141_v13  ;;  %1549 = vmatprep.subr.bf16.mxu1 %v7144_v35 }
 0x6d5   :  { %1509 = vmatpush1.bf16.msra.mxu0 %v7147_v36  ;;  %1550 = vmatpush1.bf16.msra.mxu1 %v7150_v43 }
 0x6d6   :  { %1510 = vmatprep.subr.bf16.mxu0 %v7153_v44  ;;  %1551 = vmatprep.subr.bf16.mxu1 %v7156_v45 }
 0x6d9   :  { %1511 = vmatpush1.bf16.msra.mxu0 %v7159_v46  ;;  %1552 = vmatpush1.bf16.msra.mxu1 %v7162_v47 }
 0x6da   :  { %1512 = vmatprep.subr.bf16.mxu0 %v7165_v48  ;;  %1553 = vmatprep.subr.bf16.mxu1 %v7168_v49 }
 0x6dd   :  { %1513 = vmatpush1.bf16.msra.mxu0 %v7171_v50  ;;  %1554 = vmatpush1.bf16.msra.mxu1 %v7174_v51 }
 0x6de   :  { %1514 = vmatprep.subr.bf16.mxu0 %v7177_v52  ;;  %1555 = vmatprep.subr.bf16.mxu1 %v7180_v53 }
 0x6e1   :  { %1515 = vmatpush1.bf16.msra.mxu0 %v7183_v54  ;;  %1556 = vmatpush1.bf16.msra.mxu1 %v7186_v55 }
 0x6e2   :  { %1516 = vmatprep.subr.bf16.mxu0 %v7189_v56  ;;  %1557 = vmatprep.subr.bf16.mxu1 %v7192_v57 }
 0x6e5   :  { %1517 = vmatpush1.bf16.msra.mxu0 %v7195_v58  ;;  %1558 = vmatpush1.bf16.msra.mxu1 %v7198_v59 }
 0x6e6   :  { %1518 = vmatprep.subr.bf16.mxu0 %v7201_v60  ;;  %1559 = vmatprep.subr.bf16.mxu1 %v7204_v61 }
 0x6e9   :  { %1519 = vmatpush1.bf16.msra.mxu0 %v7261_v2  ;;  %1560 = vmatpush1.bf16.msra.mxu1 %v7264_v21 }
 0x6ea   :  { %1635 = vmatprep.subr.bf16.mxu0 %v7105_v41  ;;  %1676 = vmatprep.subr.bf16.mxu1 %v7108_v42 }
 0x79f   :  { %v1409_v1 = vpop.f32.mrb[28].mxu0  ;;  %v1450_v14 = vpop.f32.mrb[28].mxu1 }
 0x7a0   :  { %v1461_v16 = vrot.slane %v1409_v1, 2  ;;  %v1411_v38 = vpop.f32.mrb[29].mxu0  ;;  %v1452_v63 = vpop.f32.mrb[29].mxu1  ;;  %v1463_v7 = vrot.slane %v1450_v14, 2  ;;  %v1493_v14 = vrot.slane %v7216_v39, 7 }
 0x7a1   :  { %v1462_v40 = vrot.slane %v1411_v38, 2  ;;  %v1413_v27 = vpop.f32.mrb[30].mxu0  ;;  %v1454_v25 = vpop.f32.mrb[30].mxu1  ;;  %v1464_v0 = vrot.slane %v1452_v63, 2 }
 0x7a2   :  { %v1469_v3 = vadd.f32 %v1461_v16, %v6892_v5  ;;  %v1414_v4 = vpop.f32.mrb[31].mxu0  ;;  %v1455_v23 = vpop.f32.mrb[31].mxu1  ;;  %v1471_v30 = vadd.f32 %v1463_v7, %v6900_v24 }
 0x7a3   :  { %v1470_v15 = vadd.f32 %v1462_v40, %v6895_v9  ;;  %v1472_v1 = vadd.f32 %v1464_v0, %v6904_v26 }
 0x7a4   :  { %v5470_v19 = vmul.f32 -1.442695, %v1469_v3  ;;  %v5472_v29 = vmul.f32 -1.442695, %v1471_v30 }
 0x7a5   :  { %v5471_v62 = vmul.f32 -1.442695, %v1470_v15 }
 0x7a6   :  { %5919 = vpow2.f32 %v5470_v19 }
 0x7a7   :  { %5921 = vpow2.f32 %v5471_v62 }
 0x7a8   :  { %5923 = vtanh.f32 %v1472_v1 }
 0x7a9   :  { %5925 = vpow2.f32 %v5472_v29 }
 0x7b0   :  { %v5920_v38 = vpop.eup %5919 }
 0x7b1   :  { %v1482_v27 = vadd.f32 1.0, %v5920_v38  ;;  %v5922_v25 = vpop.eup %5921  ;;  %v8799_v38 = vsel %vm7220_vm8, %v7125_v28, %v7224_v18 }
 0x7b2   :  { %v1483_v16 = vadd.f32 1.0, %v5922_v25  ;;  %v5924_v40 = vpop.eup %5923 }
 0x7b3   :  { %5927 = vrcp.f32 %v1482_v27  ;;  %v5926_v3 = vpop.eup %5925  ;;  %v8800_v27 = vmov 0  }
 0x7b4   :  { %5929 = vrcp.f32 %v1483_v16  ;;  %v1484_v15 = vadd.f32 1.0, %v5926_v3 }
 0x7b6   :  { %5931 = vrcp.f32 %v1484_v15 }
 0x7bd   :  { %v5928_v4 = vpop.eup %5927 }
 0x7be   :  { %v1496_v23 = vmul.f32 %v5928_v4, %v5924_v40  ;;  %v5930_v63 = vpop.eup %5929 }
 0x7bf   :  { %v1495_v7 = vmul.f32 %v5930_v63, %v1493_v14 }
 0x7c0   :  { %v5932_v0 = vpop.eup %5931 }
 0x7c1   :  { %v7274_v19 = vadd.f32 %v1496_v23, %v1495_v7 }
 0x7c3   :  { %5933 = vtanh.f32 %v7274_v19 }
 0x7cd   :  { %v5934_v30 = vpop.eup %5933 }
 0x7ce   :  { %v1499_v29 = vmul.f32 %v5934_v30, %v5932_v0 }
 0x7d0   :  { %v1500_v62 = vpack.c.bf16 %v1499_v29, %v1499_v29 }
 0x7d2   :  { %v1502_v1 = vrot.slane %v1500_v62, 3  ;;  %v7283_v39 = vsel %vm2689_vm6, %v8799_v38, %v1500_v62 }
 0x7d4   :  { %1537 = vmatmul.mubr.bf16.vlgmr.msra.gmra.mrb[32].mxu0 %v1502_v1  ;;  %1578 = vmatmul.mubr.bf16.vlgmr.msra.gmra.mrb[32].mxu1 %v1502_v1 }
 0x7d5   :  { %1636 = vmatpush1.bf16.msra.mxu0 %v7067_v20  ;;  %1677 = vmatpush1.bf16.msra.mxu1 %v7070_v8 }
 0x7d6   :  { %1637 = vmatprep.subr.bf16.mxu0 %v7073_v22  ;;  %1678 = vmatprep.subr.bf16.mxu1 %v7130_v31 }
 0x7d7   :  { %1667 = vmatprep.mubr.bf16.mxu0 %v8800_v27  ;;  %1708 = vmatprep.mubr.bf16.mxu1 %v8800_v27 }
 0x7d9   :  { %1638 = vmatpush1.bf16.msra.mxu0 %v7135_v17  ;;  %1679 = vmatpush1.bf16.msra.mxu1 %v7138_v10 }
 0x7da   :  { %1639 = vmatprep.subr.bf16.mxu0 %v7141_v13  ;;  %1680 = vmatprep.subr.bf16.mxu1 %v7144_v35 }
 0x7dd   :  { %1640 = vmatpush1.bf16.msra.mxu0 %v7147_v36  ;;  %1681 = vmatpush1.bf16.msra.mxu1 %v7150_v43 }
 0x7de   :  { %1641 = vmatprep.subr.bf16.mxu0 %v7153_v44  ;;  %1682 = vmatprep.subr.bf16.mxu1 %v7156_v45 }
 0x7e1   :  { %1642 = vmatpush1.bf16.msra.mxu0 %v7159_v46  ;;  %1683 = vmatpush1.bf16.msra.mxu1 %v7162_v47 }
 0x7e2   :  { %1643 = vmatprep.subr.bf16.mxu0 %v7165_v48  ;;  %1684 = vmatprep.subr.bf16.mxu1 %v7168_v49 }
 0x7e5   :  { %1644 = vmatpush1.bf16.msra.mxu0 %v7171_v50  ;;  %1685 = vmatpush1.bf16.msra.mxu1 %v7174_v51 }
 0x7e6   :  { %1645 = vmatprep.subr.bf16.mxu0 %v7177_v52  ;;  %1686 = vmatprep.subr.bf16.mxu1 %v7180_v53 }
 0x7e9   :  { %1646 = vmatpush1.bf16.msra.mxu0 %v7183_v54  ;;  %1687 = vmatpush1.bf16.msra.mxu1 %v7186_v55 }
 0x7ea   :  { %1647 = vmatprep.subr.bf16.mxu0 %v7189_v56  ;;  %1688 = vmatprep.subr.bf16.mxu1 %v7192_v57 }
 0x7ed   :  { %1648 = vmatpush1.bf16.msra.mxu0 %v7195_v58  ;;  %1689 = vmatpush1.bf16.msra.mxu1 %v7198_v59 }
 0x7ee   :  { %1649 = vmatprep.subr.bf16.mxu0 %v7201_v60  ;;  %1690 = vmatprep.subr.bf16.mxu1 %v7204_v61 }
 0x7f1   :  { %1650 = vmatpush1.bf16.msra.mxu0 %v7261_v2  ;;  %1691 = vmatpush1.bf16.msra.mxu1 %v7264_v21 }
 0x7f2   :  { %1749 = vmatprep.subr.bf16.mxu0 %v7105_v41  ;;  %1790 = vmatprep.subr.bf16.mxu1 %v7108_v42 }
 0x8a7   :  { %v1538_v28 = vpop.f32.mrb[32].mxu0  ;;  %v1579_v18 = vpop.f32.mrb[32].mxu1 }
 0x8a8   :  { %v1590_v25 = vrot.slane %v1538_v28, 1  ;;  %v1540_v16 = vpop.f32.mrb[33].mxu0  ;;  %v1581_v40 = vpop.f32.mrb[33].mxu1  ;;  %v1592_v29 = vrot.slane %v1579_v18, 1  ;;  %v1622_v18 = vrot.slane %v7274_v19, 7 }
 0x8a9   :  { %v1591_v3 = vrot.slane %v1540_v16, 1  ;;  %v1542_v4 = vpop.f32.mrb[34].mxu0  ;;  %v1583_v14 = vpop.f32.mrb[34].mxu1  ;;  %v1593_v62 = vrot.slane %v1581_v40, 1 }
 0x8aa   :  { %v1598_v23 = vadd.f32 %v1590_v25, %v6892_v5  ;;  %v1543_v63 = vpop.f32.mrb[35].mxu0  ;;  %v1584_v15 = vpop.f32.mrb[35].mxu1  ;;  %v1600_v1 = vadd.f32 %v1592_v29, %v6900_v24 }
 0x8ab   :  { %v1599_v7 = vadd.f32 %v1591_v3, %v6895_v9  ;;  %v1601_v38 = vadd.f32 %v1593_v62, %v6904_v26 }
 0x8ac   :  { %v5473_v0 = vmul.f32 -1.442695, %v1598_v23  ;;  %v5475_v28 = vmul.f32 -1.442695, %v1600_v1 }
 0x8ad   :  { %v5474_v30 = vmul.f32 -1.442695, %v1599_v7 }
 0x8ae   :  { %5935 = vpow2.f32 %v5473_v0 }
 0x8af   :  { %5937 = vpow2.f32 %v5474_v30 }
 0x8b0   :  { %5939 = vtanh.f32 %v1601_v38  ;;  %v7374_v38 = vunpack.c.h.bf16 %v6883_v32  ;;  %v7382_v32 = vunpack.c.h.bf16 %v6885_v33 }
 0x8b1   :  { %5941 = vpow2.f32 %v5475_v28  ;;  %v7377_v28 = vunpack.c.h.bf16 %v6887_v34 }
 0x8b8   :  { %v5936_v16 = vpop.eup %5935 }
 0x8b9   :  { %v1611_v4 = vadd.f32 1.0, %v5936_v16  ;;  %v5938_v14 = vpop.eup %5937 }
 0x8ba   :  { %v1612_v5 = vadd.f32 1.0, %v5938_v14  ;;  %v5940_v9 = vpop.eup %5939 }
 0x8bb   :  { %5943 = vrcp.f32 %v1611_v4  ;;  %v5942_v25 = vpop.eup %5941 }
 0x8bc   :  { %5945 = vrcp.f32 %v1612_v5  ;;  %v1613_v63 = vadd.f32 1.0, %v5942_v25 }
 0x8be   :  { %5947 = vrcp.f32 %v1613_v63 }
 0x8c5   :  { %v5944_v3 = vpop.eup %5943 }
 0x8c6   :  { %v1625_v23 = vmul.f32 %v5944_v3, %v5940_v9  ;;  %v5946_v40 = vpop.eup %5945 }
 0x8c7   :  { %v1624_v24 = vmul.f32 %v5946_v40, %v1622_v18 }
 0x8c8   :  { %v5948_v26 = vpop.eup %5947 }
 0x8c9   :  { %v7324_v15 = vadd.f32 %v1625_v23, %v1624_v24 }
 0x8cb   :  { %5949 = vtanh.f32 %v7324_v15 }
 0x8d5   :  { %v5950_v7 = vpop.eup %5949 }
 0x8d6   :  { %v1628_v0 = vmul.f32 %v5950_v7, %v5948_v26  ;;  %v7386_v26 = vunpack.c.h.bf16 %v6889_v37 }
 0x8d8   :  { %v7332_v19 = vpack.c.bf16 %v1628_v0, %v1628_v0 }
 0x8da   :  { %v1631_v29 = vshrl.u32 %v7332_v19, 16  ;;  %v2701_v62 = vsel %vm7328_vm11, %v7283_v39, %v7332_v19 }
 0x8dc   :  { %v1633_v1 = vrot.slane %v1631_v29, 3 }
 0x8de   :  { %1668 = vmatmul.mubr.bf16.vlgmr.msra.gmra.mrb[36].mxu0 %v1633_v1  ;;  %1709 = vmatmul.mubr.bf16.vlgmr.msra.gmra.mrb[36].mxu1 %v1633_v1 }
 0x8df   :  { %1750 = vmatpush1.bf16.msra.mxu0 %v7067_v20  ;;  %1791 = vmatpush1.bf16.msra.mxu1 %v7070_v8 }
 0x8e0   :  { %1751 = vmatprep.subr.bf16.mxu0 %v7073_v22  ;;  %1792 = vmatprep.subr.bf16.mxu1 %v7130_v31 }
 0x8e1   :  { %1781 = vmatprep.mubr.bf16.mxu0 %v8800_v27  ;;  %1822 = vmatprep.mubr.bf16.mxu1 %v8800_v27 }
 0x8e3   :  { %1752 = vmatpush1.bf16.msra.mxu0 %v7135_v17  ;;  %1793 = vmatpush1.bf16.msra.mxu1 %v7138_v10 }
 0x8e4   :  { %1753 = vmatprep.subr.bf16.mxu0 %v7141_v13  ;;  %1794 = vmatprep.subr.bf16.mxu1 %v7144_v35 }
 0x8e7   :  { %1754 = vmatpush1.bf16.msra.mxu0 %v7147_v36  ;;  %1795 = vmatpush1.bf16.msra.mxu1 %v7150_v43 }
 0x8e8   :  { %1755 = vmatprep.subr.bf16.mxu0 %v7153_v44  ;;  %1796 = vmatprep.subr.bf16.mxu1 %v7156_v45 }
 0x8eb   :  { %1756 = vmatpush1.bf16.msra.mxu0 %v7159_v46  ;;  %1797 = vmatpush1.bf16.msra.mxu1 %v7162_v47 }
 0x8ec   :  { %1757 = vmatprep.subr.bf16.mxu0 %v7165_v48  ;;  %1798 = vmatprep.subr.bf16.mxu1 %v7168_v49 }
 0x8ef   :  { %1758 = vmatpush1.bf16.msra.mxu0 %v7171_v50  ;;  %1799 = vmatpush1.bf16.msra.mxu1 %v7174_v51 }
 0x8f0   :  { %1759 = vmatprep.subr.bf16.mxu0 %v7177_v52  ;;  %1800 = vmatprep.subr.bf16.mxu1 %v7180_v53 }
 0x8f3   :  { %1760 = vmatpush1.bf16.msra.mxu0 %v7183_v54  ;;  %1801 = vmatpush1.bf16.msra.mxu1 %v7186_v55 }
 0x8f4   :  { %1761 = vmatprep.subr.bf16.mxu0 %v7189_v56  ;;  %1802 = vmatprep.subr.bf16.mxu1 %v7192_v57 }
 0x8f7   :  { %1762 = vmatpush1.bf16.msra.mxu0 %v7195_v58  ;;  %1803 = vmatpush1.bf16.msra.mxu1 %v7198_v59 }
 0x8f8   :  { %1763 = vmatprep.subr.bf16.mxu0 %v7201_v60  ;;  %1804 = vmatprep.subr.bf16.mxu1 %v7204_v61 }
 0x8fb   :  { %1764 = vmatpush1.bf16.msra.mxu0 %v7261_v2  ;;  %1805 = vmatpush1.bf16.msra.mxu1 %v7264_v21 }
 0x8fc   :  { %1879 = vmatprep.subr.bf16.mxu0 %v7105_v41  ;;  %1920 = vmatprep.subr.bf16.mxu1 %v7108_v42 }
 0x9b1   :  { %v1669_v16 = vpop.f32.mrb[36].mxu0  ;;  %v1710_v4 = vpop.f32.mrb[36].mxu1 }
 0x9b2   :  { %v1717_v14 = vadd.f32 %v1669_v16, %v7374_v38  ;;  %v1671_v5 = vpop.f32.mrb[37].mxu0  ;;  %v1712_v9 = vpop.f32.mrb[37].mxu1  ;;  %v1719_v34 = vadd.f32 %v1710_v4, %v7382_v32 }
 0x9b3   :  { %v1718_v25 = vadd.f32 %v1671_v5, %v7377_v28  ;;  %v1673_v3 = vpop.f32.mrb[38].mxu0  ;;  %v1714_v18 = vpop.f32.mrb[38].mxu1  ;;  %v1720_v7 = vadd.f32 %v1712_v9, %v7386_v26 }
 0x9b4   :  { %v5476_v23 = vmul.f32 -1.442695, %v1717_v14  ;;  %v1674_v40 = vpop.f32.mrb[39].mxu0  ;;  %v1715_v63 = vpop.f32.mrb[39].mxu1  ;;  %v5478_v0 = vmul.f32 -1.442695, %v1719_v34 }
 0x9b5   :  { %v5477_v24 = vmul.f32 -1.442695, %v1718_v25  ;;  %v1741_v3 = vrot.slane %v7324_v15, 7 }
 0x9b6   :  { %5951 = vpow2.f32 %v5476_v23 }
 0x9b7   :  { %5953 = vpow2.f32 %v5477_v24 }
 0x9b8   :  { %5955 = vtanh.f32 %v1720_v7 }
 0x9b9   :  { %5957 = vpow2.f32 %v5478_v0 }
 0x9c0   :  { %v5952_v29 = vpop.eup %5951 }
 0x9c1   :  { %v1730_v1 = vadd.f32 1.0, %v5952_v29  ;;  %v5954_v16 = vpop.eup %5953 }
 0x9c2   :  { %v1731_v14 = vadd.f32 1.0, %v5954_v16  ;;  %v5956_v5 = vpop.eup %5955 }
 0x9c3   :  { %5959 = vrcp.f32 %v1730_v1  ;;  %v5958_v33 = vpop.eup %5957 }
 0x9c4   :  { %5961 = vrcp.f32 %v1731_v14  ;;  %v1732_v37 = vadd.f32 1.0, %v5958_v33 }
 0x9c6   :  { %5963 = vrcp.f32 %v1732_v37 }
 0x9cd   :  { %v5960_v25 = vpop.eup %5959 }
 0x9ce   :  { %v1744_v4 = vmul.f32 %v5960_v25, %v5956_v5  ;;  %v5962_v18 = vpop.eup %5961 }
 0x9cf   :  { %v1743_v23 = vmul.f32 %v5962_v18, %v1741_v3 }
 0x9d0   :  { %v5964_v9 = vpop.eup %5963 }
 0x9d1   :  { %v7390_v40 = vadd.f32 %v1744_v4, %v1743_v23 }
 0x9d3   :  { %5965 = vtanh.f32 %v7390_v40 }
 0x9dd   :  { %v5966_v63 = vpop.eup %5965 }
 0x9de   :  { %v1747_v24 = vmul.f32 %v5966_v63, %v5964_v9 }
 0x9e0   :  { %v1748_v34 = vpack.c.bf16 %v1747_v24, %v1747_v24 }
 0x9e2   :  { %1782 = vmatmul.mubr.bf16.vlgmr.msra.gmra.mrb[40].mxu0 %v1748_v34  ;;  %v2655_v7 = vrot.slane %v1748_v34, 4  ;;  %1823 = vmatmul.mubr.bf16.vlgmr.msra.gmra.mrb[40].mxu1 %v1748_v34 }
 0x9e3   :  { %1880 = vmatpush1.bf16.msra.mxu0 %v7067_v20  ;;  %1921 = vmatpush1.bf16.msra.mxu1 %v7070_v8 }
 0x9e4   :  { %v7401_v15 = vsel %vm2698_vm9, %v2701_v62, %v2655_v7  ;;  %1881 = vmatprep.subr.bf16.mxu0 %v7073_v22  ;;  %1922 = vmatprep.subr.bf16.mxu1 %v7130_v31 }
 0x9e5   :  { %1911 = vmatprep.mubr.bf16.mxu0 %v8800_v27  ;;  %1952 = vmatprep.mubr.bf16.mxu1 %v8800_v27 }
 0x9e7   :  { %1882 = vmatpush1.bf16.msra.mxu0 %v7135_v17  ;;  %1923 = vmatpush1.bf16.msra.mxu1 %v7138_v10 }
 0x9e8   :  { %1883 = vmatprep.subr.bf16.mxu0 %v7141_v13  ;;  %1924 = vmatprep.subr.bf16.mxu1 %v7144_v35 }
 0x9eb   :  { %1884 = vmatpush1.bf16.msra.mxu0 %v7147_v36  ;;  %1925 = vmatpush1.bf16.msra.mxu1 %v7150_v43 }
 0x9ec   :  { %1885 = vmatprep.subr.bf16.mxu0 %v7153_v44  ;;  %1926 = vmatprep.subr.bf16.mxu1 %v7156_v45 }
 0x9ef   :  { %1886 = vmatpush1.bf16.msra.mxu0 %v7159_v46  ;;  %1927 = vmatpush1.bf16.msra.mxu1 %v7162_v47 }
 0x9f0   :  { %1887 = vmatprep.subr.bf16.mxu0 %v7165_v48  ;;  %1928 = vmatprep.subr.bf16.mxu1 %v7168_v49 }
 0x9f3   :  { %1888 = vmatpush1.bf16.msra.mxu0 %v7171_v50  ;;  %1929 = vmatpush1.bf16.msra.mxu1 %v7174_v51 }
 0x9f4   :  { %1889 = vmatprep.subr.bf16.mxu0 %v7177_v52  ;;  %1930 = vmatprep.subr.bf16.mxu1 %v7180_v53 }
 0x9f7   :  { %1890 = vmatpush1.bf16.msra.mxu0 %v7183_v54  ;;  %1931 = vmatpush1.bf16.msra.mxu1 %v7186_v55 }
 0x9f8   :  { %1891 = vmatprep.subr.bf16.mxu0 %v7189_v56  ;;  %1932 = vmatprep.subr.bf16.mxu1 %v7192_v57 }
 0x9fb   :  { %1892 = vmatpush1.bf16.msra.mxu0 %v7195_v58  ;;  %1933 = vmatpush1.bf16.msra.mxu1 %v7198_v59 }
 0x9fc   :  { %1893 = vmatprep.subr.bf16.mxu0 %v7201_v60  ;;  %1934 = vmatprep.subr.bf16.mxu1 %v7204_v61 }
 0x9ff   :  { %1894 = vmatpush1.bf16.msra.mxu0 %v7261_v2  ;;  %1935 = vmatpush1.bf16.msra.mxu1 %v7264_v21 }
 0xa00   :  { %2008 = vmatprep.subr.bf16.mxu0 %v7105_v41  ;;  %2049 = vmatprep.subr.bf16.mxu1 %v7108_v42 }
 0xab5   :  { %v1783_v39 = vpop.f32.mrb[40].mxu0  ;;  %v1824_v19 = vpop.f32.mrb[40].mxu1 }
 0xab6   :  { %v1835_v62 = vrot.slane %v1783_v39, 7  ;;  %v1785_v0 = vpop.f32.mrb[41].mxu0  ;;  %v1826_v29 = vpop.f32.mrb[41].mxu1  ;;  %v1837_v37 = vrot.slane %v1824_v19, 7  ;;  %v1867_v19 = vrot.slane %v7390_v40, 7 }
 0xab7   :  { %v1836_v1 = vrot.slane %v1785_v0, 7  ;;  %v1787_v16 = vpop.f32.mrb[42].mxu0  ;;  %v1828_v14 = vpop.f32.mrb[42].mxu1  ;;  %v1838_v23 = vrot.slane %v1826_v29, 7 }
 0xab8   :  { %v1843_v5 = vadd.f32 %v1835_v62, %v7374_v38  ;;  %v1788_v33 = vpop.f32.mrb[43].mxu0  ;;  %v1829_v25 = vpop.f32.mrb[43].mxu1  ;;  %v1845_v9 = vadd.f32 %v1837_v37, %v7382_v32 }
 0xab9   :  { %v1844_v3 = vadd.f32 %v1836_v1, %v7377_v28  ;;  %v1846_v63 = vadd.f32 %v1838_v23, %v7386_v26  ;;  %v8803_v23 = vmov 0 }
 0xaba   :  { %v5479_v4 = vmul.f32 -1.442695, %v1843_v5  ;;  %v5481_v24 = vmul.f32 -1.442695, %v1845_v9  ;;  %v8804_v23 = vsel %vm7444_vm14, 4294967295, %v8803_v23 }
 0xabb   :  { %v5480_v18 = vmul.f32 -1.442695, %v1844_v3  ;;  %8805 = vst [vmem:[#allocation18_spill] sm:$0xff] %v8804_v23 }
 0xabc   :  { %5967 = vpow2.f32 %v5479_v4 }
 0xabd   :  { %5969 = vpow2.f32 %v5480_v18 }
 0xabe   :  { %5971 = vtanh.f32 %v1846_v63 }
 0xabf   :  { %5973 = vpow2.f32 %v5481_v24 }
 0xac6   :  { %v5968_v34 = vpop.eup %5967 }
 0xac7   :  { %v1856_v7 = vadd.f32 1.0, %v5968_v34  ;;  %v5970_v39 = vpop.eup %5969 }
 0xac8   :  { %v1857_v62 = vadd.f32 1.0, %v5970_v39  ;;  %v5972_v0 = vpop.eup %5971 }
 0xac9   :  { %5975 = vrcp.f32 %v1856_v7  ;;  %v5974_v1 = vpop.eup %5973 }
 0xaca   :  { %5977 = vrcp.f32 %v1857_v62  ;;  %v1858_v5 = vadd.f32 1.0, %v5974_v1 }
 0xacc   :  { %5979 = vrcp.f32 %v1858_v5 }
 0xad3   :  { %v5976_v16 = vpop.eup %5975 }
 0xad4   :  { %v1870_v14 = vmul.f32 %v5976_v16, %v5972_v0  ;;  %v5978_v29 = vpop.eup %5977 }
 0xad5   :  { %v1869_v33 = vmul.f32 %v5978_v29, %v1867_v19 }
 0xad6   :  { %v5980_v3 = vpop.eup %5979 }
 0xad7   :  { %v7440_v25 = vadd.f32 %v1870_v14, %v1869_v33 }
 0xad9   :  { %5981 = vtanh.f32 %v7440_v25 }
 0xae3   :  { %v5982_v4 = vpop.eup %5981 }
 0xae4   :  { %v1873_v18 = vmul.f32 %v5982_v4, %v5980_v3 }
 0xae6   :  { %v1874_v37 = vpack.c.bf16 %v1873_v18, %v1873_v18 }
 0xae8   :  { %v1876_v40 = vshrl.u32 %v1874_v37, 16  ;;  %v2657_v9 = vrot.slane %v1874_v37, 4 }
 0xaea   :  { %1912 = vmatmul.mubr.bf16.vlgmr.msra.gmra.mrb[44].mxu0 %v1876_v40  ;;  %v7451_v63 = vsel %vm7444_vm14, %v7401_v15, %v2657_v9  ;;  %1953 = vmatmul.mubr.bf16.vlgmr.msra.gmra.mrb[44].mxu1 %v1876_v40 }
 0xaeb   :  { %2009 = vmatpush1.bf16.msra.mxu0 %v7067_v20  ;;  %2050 = vmatpush1.bf16.msra.mxu1 %v7070_v8 }
 0xaec   :  { %2010 = vmatprep.subr.bf16.mxu0 %v7073_v22  ;;  %2051 = vmatprep.subr.bf16.mxu1 %v7130_v31 }
 0xaed   :  { %2040 = vmatprep.mubr.bf16.mxu0 %v8800_v27  ;;  %2081 = vmatprep.mubr.bf16.mxu1 %v8800_v27 }
 0xaef   :  { %2011 = vmatpush1.bf16.msra.mxu0 %v7135_v17  ;;  %2052 = vmatpush1.bf16.msra.mxu1 %v7138_v10 }
 0xaf0   :  { %2012 = vmatprep.subr.bf16.mxu0 %v7141_v13  ;;  %2053 = vmatprep.subr.bf16.mxu1 %v7144_v35 }
 0xaf3   :  { %2013 = vmatpush1.bf16.msra.mxu0 %v7147_v36  ;;  %2054 = vmatpush1.bf16.msra.mxu1 %v7150_v43 }
 0xaf4   :  { %2014 = vmatprep.subr.bf16.mxu0 %v7153_v44  ;;  %2055 = vmatprep.subr.bf16.mxu1 %v7156_v45 }
 0xaf7   :  { %2015 = vmatpush1.bf16.msra.mxu0 %v7159_v46  ;;  %2056 = vmatpush1.bf16.msra.mxu1 %v7162_v47 }
 0xaf8   :  { %2016 = vmatprep.subr.bf16.mxu0 %v7165_v48  ;;  %2057 = vmatprep.subr.bf16.mxu1 %v7168_v49 }
 0xafb   :  { %2017 = vmatpush1.bf16.msra.mxu0 %v7171_v50  ;;  %2058 = vmatpush1.bf16.msra.mxu1 %v7174_v51 }
 0xafc   :  { %2018 = vmatprep.subr.bf16.mxu0 %v7177_v52  ;;  %2059 = vmatprep.subr.bf16.mxu1 %v7180_v53 }
 0xaff   :  { %2019 = vmatpush1.bf16.msra.mxu0 %v7183_v54  ;;  %2060 = vmatpush1.bf16.msra.mxu1 %v7186_v55 }
 0xb00   :  { %2020 = vmatprep.subr.bf16.mxu0 %v7189_v56  ;;  %2061 = vmatprep.subr.bf16.mxu1 %v7192_v57 }
 0xb03   :  { %2021 = vmatpush1.bf16.msra.mxu0 %v7195_v58  ;;  %2062 = vmatpush1.bf16.msra.mxu1 %v7198_v59 }
 0xb04   :  { %2022 = vmatprep.subr.bf16.mxu0 %v7201_v60  ;;  %2063 = vmatprep.subr.bf16.mxu1 %v7204_v61 }
 0xb07   :  { %2023 = vmatpush1.bf16.msra.mxu0 %v7261_v2  ;;  %2064 = vmatpush1.bf16.msra.mxu1 %v7264_v21 }
 0xb08   :  { %2139 = vmatprep.subr.bf16.mxu0 %v7105_v41  ;;  %2180 = vmatprep.subr.bf16.mxu1 %v7108_v42 }
 0xbbd   :  { %v1913_v20 = vpop.f32.mrb[44].mxu0  ;;  %v1954_v8 = vpop.f32.mrb[44].mxu1 }
 0xbbe   :  { %v1965_v22 = vrot.slane %v1913_v20, 6  ;;  %v1915_v15 = vpop.f32.mrb[45].mxu0  ;;  %v1956_v24 = vpop.f32.mrb[45].mxu1  ;;  %v1967_v41 = vrot.slane %v1954_v8, 6  ;;  %v1997_v8 = vrot.slane %v7440_v25, 7 }
 0xbbf   :  { %v1966_v34 = vrot.slane %v1915_v15, 6  ;;  %v1917_v7 = vpop.f32.mrb[46].mxu0  ;;  %v1958_v39 = vpop.f32.mrb[46].mxu1  ;;  %v1968_v42 = vrot.slane %v1956_v24, 6  ;;  %v7499_v25 = vld [vmem:[#allocation8] ss:$16 sps:$4 sm:$0xff]  }
 0xbc0   :  { %v1973_v62 = vadd.f32 %v1965_v22, %v7374_v38  ;;  %v1918_v0 = vpop.f32.mrb[47].mxu0  ;;  %v1959_v1 = vpop.f32.mrb[47].mxu1  ;;  %v1975_v29 = vadd.f32 %v1967_v41, %v7382_v32  ;;  %v7502_v41 = vld [vmem:[#allocation8 + $0x8] ss:$16 sps:$4 sm:$0xff]  }
 0xbc1   :  { %v1974_v16 = vadd.f32 %v1966_v34, %v7377_v28  ;;  %v1976_v5 = vadd.f32 %v1968_v42, %v7386_v26  ;;  %v7505_v42 = vld [vmem:[#allocation8 + $0x24] ss:$16 sps:$4 sm:$0xff]  }
 0xbc2   :  { %v5482_v19 = vmul.f32 -1.442695, %v1973_v62  ;;  %v5484_v33 = vmul.f32 -1.442695, %v1975_v29 }
 0xbc3   :  { %v5483_v14 = vmul.f32 -1.442695, %v1974_v16 }
 0xbc4   :  { %5983 = vpow2.f32 %v5482_v19 }
 0xbc5   :  { %5985 = vpow2.f32 %v5483_v14 }
 0xbc6   :  { %5987 = vtanh.f32 %v1976_v5 }
 0xbc7   :  { %5989 = vpow2.f32 %v5484_v33 }
 0xbce   :  { %v5984_v3 = vpop.eup %5983 }
 0xbcf   :  { %v1986_v4 = vadd.f32 1.0, %v5984_v3  ;;  %v5986_v18 = vpop.eup %5985 }
 0xbd0   :  { %v1987_v37 = vadd.f32 1.0, %v5986_v18  ;;  %v5988_v40 = vpop.eup %5987 }
 0xbd1   :  { %5991 = vrcp.f32 %v1986_v4  ;;  %v5990_v9 = vpop.eup %5989 }
 0xbd2   :  { %5993 = vrcp.f32 %v1987_v37  ;;  %v1988_v24 = vadd.f32 1.0, %v5990_v9 }
 0xbd4   :  { %5995 = vrcp.f32 %v1988_v24 }
 0xbdb   :  { %v5992_v20 = vpop.eup %5991 }
 0xbdc   :  { %v2000_v22 = vmul.f32 %v5992_v20, %v5988_v40  ;;  %v5994_v15 = vpop.eup %5993 }
 0xbdd   :  { %v1999_v34 = vmul.f32 %v5994_v15, %v1997_v8  ;;  %v8806_v15 = vmov 0 }
 0xbde   :  { %v5996_v39 = vpop.eup %5995  ;;  %v8807_v15 = vsel %vm7552_vm4, 4294967295, %v8806_v15 }
 0xbdf   :  { %v7492_v7 = vadd.f32 %v2000_v22, %v1999_v34  ;;  %8808 = vst [vmem:[#allocation19_spill] sm:$0xff] %v8807_v15 }
 0xbe1   :  { %5997 = vtanh.f32 %v7492_v7  ;;  %v2126_v33 = vrot.slane %v7492_v7, 7 }
 0xbeb   :  { %v5998_v62 = vpop.eup %5997 }
 0xbec   :  { %v2003_v0 = vmul.f32 %v5998_v62, %v5996_v39  ;;  %v7564_v62 = vld [vmem:[#allocation8 + $0x2c] ss:$16 sps:$4 sm:$0xff]  }
 0xbee   :  { %v2004_v1 = vpack.c.bf16 %v2003_v0, %v2003_v0  ;;  %v7569_v0 = vld [vmem:[#allocation8 + $0x20] ss:$16 sps:$4 sm:$0xff]  }
 0xbf0   :  { %v2006_v16 = vrot.slane %v2004_v1, 1  ;;  %v2659_v19 = vrot.slane %v2004_v1, 4  ;;  %v7572_v1 = vld [vmem:[#allocation8 + $0x28] ss:$16 sps:$4 sm:$0xff]  }
 0xbf2   :  { %2041 = vmatmul.mubr.bf16.vlgmr.msra.gmra.mrb[48].mxu0 %v2006_v16  ;;  %v7497_v14 = vsel %vm2707_vm12, %v7451_v63, %v2659_v19  ;;  %2082 = vmatmul.mubr.bf16.vlgmr.msra.gmra.mrb[48].mxu1 %v2006_v16  ;;  %v7575_v16 = vld [vmem:[#allocation8 + $0x44] ss:$16 sps:$4 sm:$0xff]   ;;  %v7578_v19 = vld [vmem:[#allocation8 + $0x4c] ss:$16 sps:$4 sm:$0xff]  }
 0xbf3   :  { %2140 = vmatpush1.bf16.msra.mxu0 %v7499_v25  ;;  %2181 = vmatpush1.bf16.msra.mxu1 %v7502_v41 }
 0xbf4   :  { %2141 = vmatprep.subr.bf16.mxu0 %v7505_v42  ;;  %2182 = vmatprep.subr.bf16.mxu1 %v7130_v31  ;;  %v7537_v31 = vld [vmem:[#allocation8 + $0x4] ss:$16 sps:$4 sm:$0xff]  }
 0xbf5   :  { %2171 = vmatprep.mubr.bf16.mxu0 %v8800_v27  ;;  %2212 = vmatprep.mubr.bf16.mxu1 %v8800_v27 }
 0xbf7   :  { %2142 = vmatpush1.bf16.msra.mxu0 %v7135_v17  ;;  %2183 = vmatpush1.bf16.msra.mxu1 %v7138_v10  ;;  %v7540_v17 = vld [vmem:[#allocation8 + $0xc] ss:$16 sps:$4 sm:$0xff]  }
 0xbf8   :  { %2143 = vmatprep.subr.bf16.mxu0 %v7141_v13  ;;  %2184 = vmatprep.subr.bf16.mxu1 %v7144_v35 }
 0xbfb   :  { %2144 = vmatpush1.bf16.msra.mxu0 %v7147_v36  ;;  %2185 = vmatpush1.bf16.msra.mxu1 %v7150_v43 }
 0xbfc   :  { %2145 = vmatprep.subr.bf16.mxu0 %v7153_v44  ;;  %2186 = vmatprep.subr.bf16.mxu1 %v7156_v45 }
 0xbff   :  { %2146 = vmatpush1.bf16.msra.mxu0 %v7159_v46  ;;  %2187 = vmatpush1.bf16.msra.mxu1 %v7162_v47 }
 0xc00   :  { %2147 = vmatprep.subr.bf16.mxu0 %v7165_v48  ;;  %2188 = vmatprep.subr.bf16.mxu1 %v7168_v49 }
 0xc03   :  { %2148 = vmatpush1.bf16.msra.mxu0 %v7171_v50  ;;  %2189 = vmatpush1.bf16.msra.mxu1 %v7174_v51 }
 0xc04   :  { %2149 = vmatprep.subr.bf16.mxu0 %v7177_v52  ;;  %2190 = vmatprep.subr.bf16.mxu1 %v7180_v53 }
 0xc07   :  { %2150 = vmatpush1.bf16.msra.mxu0 %v7183_v54  ;;  %2191 = vmatpush1.bf16.msra.mxu1 %v7186_v55 }
 0xc08   :  { %2151 = vmatprep.subr.bf16.mxu0 %v7189_v56  ;;  %2192 = vmatprep.subr.bf16.mxu1 %v7192_v57 }
 0xc0b   :  { %2152 = vmatpush1.bf16.msra.mxu0 %v7195_v58  ;;  %2193 = vmatpush1.bf16.msra.mxu1 %v7198_v59 }
 0xc0c   :  { %2153 = vmatprep.subr.bf16.mxu0 %v7201_v60  ;;  %2194 = vmatprep.subr.bf16.mxu1 %v7204_v61 }
 0xc0f   :  { %2154 = vmatpush1.bf16.msra.mxu0 %v7261_v2  ;;  %2195 = vmatpush1.bf16.msra.mxu1 %v7264_v21 }
 0xc10   :  { %2268 = vmatprep.subr.bf16.mxu0 %v7537_v31  ;;  %2309 = vmatprep.subr.bf16.mxu1 %v7540_v17 }
 0xcc5   :  { %v2042_v10 = vpop.f32.mrb[48].mxu0  ;;  %v2083_v13 = vpop.f32.mrb[48].mxu1 }
 0xcc6   :  { %v2094_v35 = vrot.slane %v2042_v10, 5  ;;  %v2044_v36 = vpop.f32.mrb[49].mxu0  ;;  %v2085_v43 = vpop.f32.mrb[49].mxu1  ;;  %v2096_v53 = vrot.slane %v2083_v13, 5  ;;  %v7584_v10 = vld [vmem:[#allocation8 + $0x48] ss:$16 sps:$4 sm:$0xff]  }
 0xcc7   :  { %v2095_v44 = vrot.slane %v2044_v36, 5  ;;  %v2046_v45 = vpop.f32.mrb[50].mxu0  ;;  %v2087_v46 = vpop.f32.mrb[50].mxu1  ;;  %v2097_v54 = vrot.slane %v2085_v43, 5  ;;  %v7587_v13 = vld [vmem:[#allocation8 + $0x64] ss:$16 sps:$4 sm:$0xff]  }
 0xcc8   :  { %v2102_v47 = vadd.f32 %v2094_v35, %v7374_v38  ;;  %v2047_v48 = vpop.f32.mrb[51].mxu0  ;;  %v2088_v49 = vpop.f32.mrb[51].mxu1  ;;  %v2104_v55 = vadd.f32 %v2096_v53, %v7382_v32  ;;  %v7590_v35 = vld [vmem:[#allocation8 + $0x6c] ss:$16 sps:$4 sm:$0xff]   ;;  %v7593_v36 = vld [vmem:[#allocation8 + $0x60] ss:$16 sps:$4 sm:$0xff]  }
 0xcc9   :  { %v2103_v50 = vadd.f32 %v2095_v44, %v7377_v28  ;;  %v2105_v56 = vadd.f32 %v2097_v54, %v7386_v26  ;;  %v7596_v43 = vld [vmem:[#allocation8 + $0x68] ss:$16 sps:$4 sm:$0xff]   ;;  %v7599_v44 = vld [vmem:[#allocation8 + $0x84] ss:$16 sps:$4 sm:$0xff]   ;;  %v7602_v45 = vld [vmem:[#allocation8 + $0x8c] ss:$16 sps:$4 sm:$0xff]  }
 0xcca   :  { %v5485_v51 = vmul.f32 -1.442695, %v2102_v47  ;;  %v5487_v57 = vmul.f32 -1.442695, %v2104_v55  ;;  %v7605_v46 = vld [vmem:[#allocation8 + $0x80] ss:$16 sps:$4 sm:$0xff]  }
 0xccb   :  { %v5486_v52 = vmul.f32 -1.442695, %v2103_v50  ;;  %v7608_v47 = vld [vmem:[#allocation8 + $0x88] ss:$16 sps:$4 sm:$0xff]   ;;  %v7611_v48 = vld [vmem:[#allocation8 + $0xa4] ss:$16 sps:$4 sm:$0xff]  }
 0xccc   :  { %5999 = vpow2.f32 %v5485_v51  ;;  %v7614_v49 = vld [vmem:[#allocation8 + $0xac] ss:$16 sps:$4 sm:$0xff]   ;;  %v7617_v50 = vld [vmem:[#allocation8 + $0xa0] ss:$16 sps:$4 sm:$0xff]   ;;  %v7620_v51 = vld [vmem:[#allocation8 + $0xa8] ss:$16 sps:$4 sm:$0xff]  }
 0xccd   :  { %6001 = vpow2.f32 %v5486_v52  ;;  %v7623_v52 = vld [vmem:[#allocation8 + $0xc4] ss:$16 sps:$4 sm:$0xff]   ;;  %v7626_v53 = vld [vmem:[#allocation8 + $0xcc] ss:$16 sps:$4 sm:$0xff]   ;;  %v7629_v54 = vld [vmem:[#allocation8 + $0xc0] ss:$16 sps:$4 sm:$0xff]  }
 0xcce   :  { %6003 = vtanh.f32 %v2105_v56  ;;  %v7632_v55 = vld [vmem:[#allocation8 + $0xc8] ss:$16 sps:$4 sm:$0xff]   ;;  %v7635_v56 = vld [vmem:[#allocation8 + $0xe4] ss:$16 sps:$4 sm:$0xff]  }
 0xccf   :  { %6005 = vpow2.f32 %v5487_v57  ;;  %v7638_v57 = vld [vmem:[#allocation8 + $0xec] ss:$16 sps:$4 sm:$0xff]  }
 0xcd6   :  { %v6000_v58 = vpop.eup %5999 }
 0xcd7   :  { %v2115_v59 = vadd.f32 1.0, %v6000_v58  ;;  %v6002_v60 = vpop.eup %6001 }
 0xcd8   :  { %v2116_v61 = vadd.f32 1.0, %v6002_v60  ;;  %v6004_v63 = vpop.eup %6003 }
 0xcd9   :  { %6007 = vrcp.f32 %v2115_v59  ;;  %v6006_v29 = vpop.eup %6005 }
 0xcda   :  { %6009 = vrcp.f32 %v2116_v61  ;;  %v2117_v18 = vadd.f32 1.0, %v6006_v29 }
 0xcdc   :  { %6011 = vrcp.f32 %v2117_v18 }
 0xce3   :  { %v6008_v5 = vpop.eup %6007 }
 0xce4   :  { %v2129_v3 = vmul.f32 %v6008_v5, %v6004_v63  ;;  %v6010_v4 = vpop.eup %6009 }
 0xce5   :  { %v2128_v37 = vmul.f32 %v6010_v4, %v2126_v33 }
 0xce6   :  { %v6012_v9 = vpop.eup %6011 }
 0xce7   :  { %v7548_v40 = vadd.f32 %v2129_v3, %v2128_v37 }
 0xce9   :  { %6013 = vtanh.f32 %v7548_v40 }
 0xcf3   :  { %v6014_v20 = vpop.eup %6013 }
 0xcf4   :  { %v2132_v8 = vmul.f32 %v6014_v20, %v6012_v9 }
 0xcf6   :  { %v2133_v22 = vpack.c.bf16 %v2132_v8, %v2132_v8 }
 0xcf8   :  { %v2135_v24 = vshrl.u32 %v2133_v22, 16  ;;  %v2661_v34 = vrot.slane %v2133_v22, 4 }
 0xcfa   :  { %v2137_v7 = vrot.slane %v2135_v24, 1  ;;  %v7559_v39 = vsel %vm7552_vm4, %v7497_v14, %v2661_v34  ;;  %v7581_v14 = vld [vmem:[#allocation8 + $0x40] ss:$16 sps:$4 sm:$0xff]  }
 0xcfc   :  { %2172 = vmatmul.mubr.bf16.vlgmr.msra.gmra.mrb[52].mxu0 %v2137_v7  ;;  %2213 = vmatmul.mubr.bf16.vlgmr.msra.gmra.mrb[52].mxu1 %v2137_v7 }
 0xcfd   :  { %2269 = vmatpush1.bf16.msra.mxu0 %v7499_v25  ;;  %2310 = vmatpush1.bf16.msra.mxu1 %v7502_v41 }
 0xcfe   :  { %2270 = vmatprep.subr.bf16.mxu0 %v7505_v42  ;;  %2311 = vmatprep.subr.bf16.mxu1 %v7564_v62 }
 0xcff   :  { %2300 = vmatprep.mubr.bf16.mxu0 %v8800_v27  ;;  %2341 = vmatprep.mubr.bf16.mxu1 %v8800_v27 }
 0xd01   :  { %2271 = vmatpush1.bf16.msra.mxu0 %v7569_v0  ;;  %2312 = vmatpush1.bf16.msra.mxu1 %v7572_v1 }
 0xd02   :  { %2272 = vmatprep.subr.bf16.mxu0 %v7575_v16  ;;  %2313 = vmatprep.subr.bf16.mxu1 %v7578_v19 }
 0xd05   :  { %2273 = vmatpush1.bf16.msra.mxu0 %v7581_v14  ;;  %2314 = vmatpush1.bf16.msra.mxu1 %v7584_v10 }
 0xd06   :  { %2274 = vmatprep.subr.bf16.mxu0 %v7587_v13  ;;  %2315 = vmatprep.subr.bf16.mxu1 %v7590_v35 }
 0xd09   :  { %2275 = vmatpush1.bf16.msra.mxu0 %v7593_v36  ;;  %2316 = vmatpush1.bf16.msra.mxu1 %v7596_v43 }
 0xd0a   :  { %2276 = vmatprep.subr.bf16.mxu0 %v7599_v44  ;;  %2317 = vmatprep.subr.bf16.mxu1 %v7602_v45 }
 0xd0d   :  { %2277 = vmatpush1.bf16.msra.mxu0 %v7605_v46  ;;  %2318 = vmatpush1.bf16.msra.mxu1 %v7608_v47 }
 0xd0e   :  { %2278 = vmatprep.subr.bf16.mxu0 %v7611_v48  ;;  %2319 = vmatprep.subr.bf16.mxu1 %v7614_v49 }
 0xd11   :  { %2279 = vmatpush1.bf16.msra.mxu0 %v7617_v50  ;;  %2320 = vmatpush1.bf16.msra.mxu1 %v7620_v51 }
 0xd12   :  { %2280 = vmatprep.subr.bf16.mxu0 %v7623_v52  ;;  %2321 = vmatprep.subr.bf16.mxu1 %v7626_v53 }
 0xd15   :  { %2281 = vmatpush1.bf16.msra.mxu0 %v7629_v54  ;;  %2322 = vmatpush1.bf16.msra.mxu1 %v7632_v55 }
 0xd16   :  { %2282 = vmatprep.subr.bf16.mxu0 %v7635_v56  ;;  %2323 = vmatprep.subr.bf16.mxu1 %v7638_v57 }
 0xd19   :  { %2283 = vmatpush1.bf16.msra.mxu0 %v7261_v2  ;;  %2324 = vmatpush1.bf16.msra.mxu1 %v7264_v21 }
 0xd1a   :  { %2399 = vmatprep.subr.bf16.mxu0 %v7537_v31  ;;  %2440 = vmatprep.subr.bf16.mxu1 %v7540_v17 }
 0xdcf   :  { %v2173_v58 = vpop.f32.mrb[52].mxu0  ;;  %v2214_v59 = vpop.f32.mrb[52].mxu1 }
 0xdd0   :  { %v2225_v60 = vrot.slane %v2173_v58, 4  ;;  %v2175_v61 = vpop.f32.mrb[53].mxu0  ;;  %v2216_v63 = vpop.f32.mrb[53].mxu1  ;;  %v2227_v9 = vrot.slane %v2214_v59, 4  ;;  %v2257_v59 = vrot.slane %v7548_v40, 7 }
 0xdd1   :  { %v2226_v29 = vrot.slane %v2175_v61, 4  ;;  %v2177_v5 = vpop.f32.mrb[54].mxu0  ;;  %v2218_v33 = vpop.f32.mrb[54].mxu1  ;;  %v2228_v20 = vrot.slane %v2216_v63, 4  ;;  %v7687_v40 = vld [vmem:[#allocation8 + $0xe0] ss:$16 sps:$4 sm:$0xff]  }
 0xdd2   :  { %v2233_v3 = vadd.f32 %v2225_v60, %v7374_v38  ;;  %v2178_v4 = vpop.f32.mrb[55].mxu0  ;;  %v2219_v18 = vpop.f32.mrb[55].mxu1  ;;  %v2235_v8 = vadd.f32 %v2227_v9, %v7382_v32 }
 0xdd3   :  { %v2234_v2 = vadd.f32 %v2226_v29, %v7377_v28  ;;  %v2236_v22 = vadd.f32 %v2228_v20, %v7386_v26 }
 0xdd4   :  { %v5488_v37 = vmul.f32 -1.442695, %v2233_v3  ;;  %v5490_v24 = vmul.f32 -1.442695, %v2235_v8 }
 0xdd5   :  { %v5489_v21 = vmul.f32 -1.442695, %v2234_v2 }
 0xdd6   :  { %6015 = vpow2.f32 %v5488_v37 }
 0xdd7   :  { %6017 = vpow2.f32 %v5489_v21 }
 0xdd8   :  { %6019 = vtanh.f32 %v2236_v22 }
 0xdd9   :  { %6021 = vpow2.f32 %v5490_v24 }
 0xde0   :  { %v6016_v34 = vpop.eup %6015 }
 0xde1   :  { %v2246_v7 = vadd.f32 1.0, %v6016_v34  ;;  %v6018_v58 = vpop.eup %6017 }
 0xde2   :  { %v2247_v60 = vadd.f32 1.0, %v6018_v58  ;;  %v6020_v61 = vpop.eup %6019 }
 0xde3   :  { %6023 = vrcp.f32 %v2246_v7  ;;  %v6022_v29 = vpop.eup %6021 }
 0xde4   :  { %6025 = vrcp.f32 %v2247_v60  ;;  %v2248_v3 = vadd.f32 1.0, %v6022_v29 }
 0xde6   :  { %6027 = vrcp.f32 %v2248_v3 }
 0xded   :  { %v6024_v5 = vpop.eup %6023 }
 0xdee   :  { %v2260_v33 = vmul.f32 %v6024_v5, %v6020_v61  ;;  %v6026_v63 = vpop.eup %6025 }
 0xdef   :  { %v2259_v4 = vmul.f32 %v6026_v63, %v2257_v59 }
 0xdf0   :  { %v6028_v2 = vpop.eup %6027 }
 0xdf1   :  { %v7650_v18 = vadd.f32 %v2260_v33, %v2259_v4 }
 0xdf3   :  { %6029 = vtanh.f32 %v7650_v18 }
 0xdfd   :  { %v6030_v37 = vpop.eup %6029 }
 0xdfe   :  { %v2263_v21 = vmul.f32 %v6030_v37, %v6028_v2 }
 0xe00   :  { %v2264_v9 = vpack.c.bf16 %v2263_v21, %v2263_v21 }
 0xe02   :  { %v2266_v20 = vrot.slane %v2264_v9, 2  ;;  %v2663_v8 = vrot.slane %v2264_v9, 4 }
 0xe04   :  { %2301 = vmatmul.mubr.bf16.vlgmr.msra.gmra.mrb[56].mxu0 %v2266_v20  ;;  %v7655_v22 = vsel %vm2716_vm15, %v7559_v39, %v2663_v8  ;;  %2342 = vmatmul.mubr.bf16.vlgmr.msra.gmra.mrb[56].mxu1 %v2266_v20  ;;  %v7690_v39 = vld [vmem:[#allocation8 + $0xe8] ss:$16 sps:$4 sm:$0xff]  }
 0xe05   :  { %2400 = vmatpush1.bf16.msra.mxu0 %v7499_v25  ;;  %2441 = vmatpush1.bf16.msra.mxu1 %v7502_v41 }
 0xe06   :  { %2401 = vmatprep.subr.bf16.mxu0 %v7505_v42  ;;  %2442 = vmatprep.subr.bf16.mxu1 %v7564_v62 }
 0xe07   :  { %2431 = vmatprep.mubr.bf16.mxu0 %v8800_v27  ;;  %2472 = vmatprep.mubr.bf16.mxu1 %v8800_v27 }
 0xe09   :  { %2402 = vmatpush1.bf16.msra.mxu0 %v7569_v0  ;;  %2443 = vmatpush1.bf16.msra.mxu1 %v7572_v1 }
 0xe0a   :  { %2403 = vmatprep.subr.bf16.mxu0 %v7575_v16  ;;  %2444 = vmatprep.subr.bf16.mxu1 %v7578_v19 }
 0xe0d   :  { %2404 = vmatpush1.bf16.msra.mxu0 %v7581_v14  ;;  %2445 = vmatpush1.bf16.msra.mxu1 %v7584_v10 }
 0xe0e   :  { %2405 = vmatprep.subr.bf16.mxu0 %v7587_v13  ;;  %2446 = vmatprep.subr.bf16.mxu1 %v7590_v35 }
 0xe11   :  { %2406 = vmatpush1.bf16.msra.mxu0 %v7593_v36  ;;  %2447 = vmatpush1.bf16.msra.mxu1 %v7596_v43 }
 0xe12   :  { %2407 = vmatprep.subr.bf16.mxu0 %v7599_v44  ;;  %2448 = vmatprep.subr.bf16.mxu1 %v7602_v45 }
 0xe15   :  { %2408 = vmatpush1.bf16.msra.mxu0 %v7605_v46  ;;  %2449 = vmatpush1.bf16.msra.mxu1 %v7608_v47 }
 0xe16   :  { %2409 = vmatprep.subr.bf16.mxu0 %v7611_v48  ;;  %2450 = vmatprep.subr.bf16.mxu1 %v7614_v49 }
 0xe19   :  { %2410 = vmatpush1.bf16.msra.mxu0 %v7617_v50  ;;  %2451 = vmatpush1.bf16.msra.mxu1 %v7620_v51 }
 0xe1a   :  { %2411 = vmatprep.subr.bf16.mxu0 %v7623_v52  ;;  %2452 = vmatprep.subr.bf16.mxu1 %v7626_v53 }
 0xe1d   :  { %2412 = vmatpush1.bf16.msra.mxu0 %v7629_v54  ;;  %2453 = vmatpush1.bf16.msra.mxu1 %v7632_v55 }
 0xe1e   :  { %2413 = vmatprep.subr.bf16.mxu0 %v7635_v56  ;;  %2454 = vmatprep.subr.bf16.mxu1 %v7638_v57 }
 0xe21   :  { %2414 = vmatpush1.bf16.msra.mxu0 %v7687_v40  ;;  %2455 = vmatpush1.bf16.msra.mxu1 %v7690_v39 }
 0xe22   :  { %2528 = vmatprep.subr.bf16.mxu0 %v7537_v31  ;;  %2569 = vmatprep.subr.bf16.mxu1 %v7540_v17 }
 0xed7   :  { %v2302_v24 = vpop.f32.mrb[56].mxu0  ;;  %v2343_v34 = vpop.f32.mrb[56].mxu1 }
 0xed8   :  { %v2354_v7 = vrot.slane %v2302_v24, 3  ;;  %v2304_v58 = vpop.f32.mrb[57].mxu0  ;;  %v2345_v60 = vpop.f32.mrb[57].mxu1  ;;  %v2356_v31 = vrot.slane %v2343_v34, 3  ;;  %v2386_v34 = vrot.slane %v7650_v18, 7 }
 0xed9   :  { %v2355_v61 = vrot.slane %v2304_v58, 3  ;;  %v2306_v29 = vpop.f32.mrb[58].mxu0  ;;  %v2347_v5 = vpop.f32.mrb[58].mxu1  ;;  %v2357_v17 = vrot.slane %v2345_v60, 3 }
 0xeda   :  { %v2362_v59 = vadd.f32 %v2354_v7, %v7374_v38  ;;  %v2307_v33 = vpop.f32.mrb[59].mxu0  ;;  %v2348_v63 = vpop.f32.mrb[59].mxu1  ;;  %v2364_v37 = vadd.f32 %v2356_v31, %v7382_v32 }
 0xedb   :  { %v2363_v3 = vadd.f32 %v2355_v61, %v7377_v28  ;;  %v2365_v21 = vadd.f32 %v2357_v17, %v7386_v26  ;;  %v8809_v17 = vmov 0 }
 0xedc   :  { %v5491_v4 = vmul.f32 -1.442695, %v2362_v59  ;;  %v5493_v9 = vmul.f32 -1.442695, %v2364_v37  ;;  %v8810_v17 = vsel %vm7704_vm13, 4294967295, %v8809_v17 }
 0xedd   :  { %v5492_v2 = vmul.f32 -1.442695, %v2363_v3  ;;  %8811 = vst [vmem:[#allocation20_spill] sm:$0xff] %v8810_v17 }
 0xede   :  { %6031 = vpow2.f32 %v5491_v4 }
 0xedf   :  { %6033 = vpow2.f32 %v5492_v2 }
 0xee0   :  { %6035 = vtanh.f32 %v2365_v21 }
 0xee1   :  { %6037 = vpow2.f32 %v5493_v9 }
 0xee8   :  { %v6032_v20 = vpop.eup %6031 }
 0xee9   :  { %v2375_v8 = vadd.f32 1.0, %v6032_v20  ;;  %v6034_v24 = vpop.eup %6033 }
 0xeea   :  { %v2376_v7 = vadd.f32 1.0, %v6034_v24  ;;  %v6036_v58 = vpop.eup %6035 }
 0xeeb   :  { %6039 = vrcp.f32 %v2375_v8  ;;  %v6038_v61 = vpop.eup %6037 }
 0xeec   :  { %6041 = vrcp.f32 %v2376_v7  ;;  %v2377_v59 = vadd.f32 1.0, %v6038_v61 }
 0xeee   :  { %6043 = vrcp.f32 %v2377_v59  ;;  %v5726_v59 = vld [vmem:[#allocation9] ss:$16 sps:$4 sm:$0xff]  }
 0xef5   :  { %v6040_v29 = vpop.eup %6039 }
 0xef6   :  { %v2389_v5 = vmul.f32 %v6040_v29, %v6036_v58  ;;  %v6042_v60 = vpop.eup %6041 }
 0xef7   :  { %v2388_v33 = vmul.f32 %v6042_v60, %v2386_v34  ;;  %v5731_v60 = vld [vmem:[#allocation9 + $0xc] ss:$16 sps:$4 sm:$0xff]  }
 0xef8   :  { %v6044_v3 = vpop.eup %6043 }
 0xef9   :  { %v7700_v63 = vadd.f32 %v2389_v5, %v2388_v33  ;;  %v5728_v5 = vld [vmem:[#allocation9 + $0x4] ss:$16 sps:$4 sm:$0xff]   ;;  %v5729_v33 = vld [vmem:[#allocation9 + $0x8] ss:$16 sps:$4 sm:$0xff]  }
 0xefb   :  { %6045 = vtanh.f32 %v7700_v63 }
 0xf05   :  { %v6046_v4 = vpop.eup %6045 }
 0xf06   :  { %v2392_v2 = vmul.f32 %v6046_v4, %v6044_v3  ;;  %v5737_v3 = vld [vmem:[#allocation9 + $0x2c] ss:$16 sps:$4 sm:$0xff]   ;;  %v5732_v4 = vld [vmem:[#allocation9 + $0x20] ss:$16 sps:$4 sm:$0xff]  }
 0xf08   :  { %v2393_v31 = vpack.c.bf16 %v2392_v2, %v2392_v2  ;;  %v5735_v2 = vld [vmem:[#allocation9 + $0x28] ss:$16 sps:$4 sm:$0xff]  }
 0xf0a   :  { %v2395_v18 = vshrl.u32 %v2393_v31, 16  ;;  %v2665_v37 = vrot.slane %v2393_v31, 4  ;;  %v5740_v31 = vld [vmem:[#allocation9 + $0x44] ss:$16 sps:$4 sm:$0xff]  }
 0xf0c   :  { %v2397_v21 = vrot.slane %v2395_v18, 2  ;;  %v7711_v9 = vsel %vm7704_vm13, %v7655_v22, %v2665_v37  ;;  %v5743_v18 = vld [vmem:[#allocation9 + $0x4c] ss:$16 sps:$4 sm:$0xff]   ;;  %v5738_v37 = vld [vmem:[#allocation9 + $0x40] ss:$16 sps:$4 sm:$0xff]  }
 0xf0e   :  { %2432 = vmatmul.mubr.bf16.vlgmr.msra.gmra.mrb[60].mxu0 %v2397_v21  ;;  %2473 = vmatmul.mubr.bf16.vlgmr.msra.gmra.mrb[60].mxu1 %v2397_v21  ;;  %v5741_v21 = vld [vmem:[#allocation9 + $0x48] ss:$16 sps:$4 sm:$0xff]  }
 0xf0f   :  { %2529 = vmatpush1.bf16.msra.mxu0 %v7499_v25  ;;  %2570 = vmatpush1.bf16.msra.mxu1 %v7502_v41 }
 0xf10   :  { %2530 = vmatprep.subr.bf16.mxu0 %v7505_v42  ;;  %2571 = vmatprep.subr.bf16.mxu1 %v7564_v62 }
 0xf11   :  { %2560 = vmatprep.mubr.bf16.mxu0 %v8800_v27  ;;  %2601 = vmatprep.mubr.bf16.mxu1 %v8800_v27 }
 0xf13   :  { %2531 = vmatpush1.bf16.msra.mxu0 %v7569_v0  ;;  %2572 = vmatpush1.bf16.msra.mxu1 %v7572_v1 }
 0xf14   :  { %2532 = vmatprep.subr.bf16.mxu0 %v7575_v16  ;;  %2573 = vmatprep.subr.bf16.mxu1 %v7578_v19 }
 0xf17   :  { %2533 = vmatpush1.bf16.msra.mxu0 %v7581_v14  ;;  %2574 = vmatpush1.bf16.msra.mxu1 %v7584_v10 }
 0xf18   :  { %2534 = vmatprep.subr.bf16.mxu0 %v7587_v13  ;;  %2575 = vmatprep.subr.bf16.mxu1 %v7590_v35 }
 0xf1b   :  { %2535 = vmatpush1.bf16.msra.mxu0 %v7593_v36  ;;  %2576 = vmatpush1.bf16.msra.mxu1 %v7596_v43 }
 0xf1c   :  { %2536 = vmatprep.subr.bf16.mxu0 %v7599_v44  ;;  %2577 = vmatprep.subr.bf16.mxu1 %v7602_v45 }
 0xf1f   :  { %2537 = vmatpush1.bf16.msra.mxu0 %v7605_v46  ;;  %2578 = vmatpush1.bf16.msra.mxu1 %v7608_v47 }
 0xf20   :  { %2538 = vmatprep.subr.bf16.mxu0 %v7611_v48  ;;  %2579 = vmatprep.subr.bf16.mxu1 %v7614_v49 }
 0xf23   :  { %2539 = vmatpush1.bf16.msra.mxu0 %v7617_v50  ;;  %2580 = vmatpush1.bf16.msra.mxu1 %v7620_v51 }
 0xf24   :  { %2540 = vmatprep.subr.bf16.mxu0 %v7623_v52  ;;  %2581 = vmatprep.subr.bf16.mxu1 %v7626_v53 }
 0xf27   :  { %2541 = vmatpush1.bf16.msra.mxu0 %v7629_v54  ;;  %2582 = vmatpush1.bf16.msra.mxu1 %v7632_v55 }
 0xf28   :  { %2542 = vmatprep.subr.bf16.mxu0 %v7635_v56  ;;  %2583 = vmatprep.subr.bf16.mxu1 %v7638_v57  ;;  %v2517_v56 = vrot.slane %v7700_v63, 7  ;;  %v5734_v63 = vld [vmem:[#allocation9 + $0x24] ss:$16 sps:$4 sm:$0xff]  }
 0xf2b   :  { %2543 = vmatpush1.bf16.msra.mxu0 %v7687_v40  ;;  %2584 = vmatpush1.bf16.msra.mxu1 %v7690_v39 }
 0xf2c   :  { %2969 = vmatprep.subr.bf16.mxu0 %v5728_v5  ;;  %3012 = vmatprep.subr.bf16.mxu1 %v5731_v60 }
 0xfe1   :  { %v2433_v25 = vpop.f32.mrb[60].mxu0  ;;  %v2474_v41 = vpop.f32.mrb[60].mxu1 }
 0xfe2   :  { %v2485_v42 = vrot.slane %v2433_v25, 2  ;;  %v2435_v62 = vpop.f32.mrb[61].mxu0  ;;  %v2476_v0 = vpop.f32.mrb[61].mxu1  ;;  %v2487_v44 = vrot.slane %v2474_v41, 2  ;;  %v5749_v25 = vld [vmem:[#allocation9 + $0x6c] ss:$16 sps:$4 sm:$0xff]  }
 0xfe3   :  { %v2486_v1 = vrot.slane %v2435_v62, 2  ;;  %v2437_v16 = vpop.f32.mrb[62].mxu0  ;;  %v2478_v19 = vpop.f32.mrb[62].mxu1  ;;  %v2488_v45 = vrot.slane %v2476_v0, 2  ;;  %v5744_v41 = vld [vmem:[#allocation9 + $0x60] ss:$16 sps:$4 sm:$0xff]  }
 0xfe4   :  { %v2493_v14 = vadd.f32 %v2485_v42, %v7374_v38  ;;  %v2438_v10 = vpop.f32.mrb[63].mxu0  ;;  %v2479_v13 = vpop.f32.mrb[63].mxu1  ;;  %v2495_v46 = vadd.f32 %v2487_v44, %v7382_v32  ;;  %v5747_v42 = vld [vmem:[#allocation9 + $0x68] ss:$16 sps:$4 sm:$0xff]   ;;  %v5752_v62 = vld [vmem:[#allocation9 + $0x84] ss:$16 sps:$4 sm:$0xff]  }
 0xfe5   :  { %v2494_v35 = vadd.f32 %v2486_v1, %v7377_v28  ;;  %v2496_v47 = vadd.f32 %v2488_v45, %v7386_v26  ;;  %v5755_v0 = vld [vmem:[#allocation9 + $0x8c] ss:$16 sps:$4 sm:$0xff]   ;;  %v5750_v1 = vld [vmem:[#allocation9 + $0x80] ss:$16 sps:$4 sm:$0xff]   ;;  %v5753_v16 = vld [vmem:[#allocation9 + $0x88] ss:$16 sps:$4 sm:$0xff]  }
 0xfe6   :  { %v5494_v36 = vmul.f32 -1.442695, %v2493_v14  ;;  %v5496_v48 = vmul.f32 -1.442695, %v2495_v46  ;;  %v5758_v19 = vld [vmem:[#allocation9 + $0xa4] ss:$16 sps:$4 sm:$0xff]  }
 0xfe7   :  { %v5495_v43 = vmul.f32 -1.442695, %v2494_v35  ;;  %v5761_v14 = vld [vmem:[#allocation9 + $0xac] ss:$16 sps:$4 sm:$0xff]   ;;  %v5756_v10 = vld [vmem:[#allocation9 + $0xa0] ss:$16 sps:$4 sm:$0xff]  }
 0xfe8   :  { %6047 = vpow2.f32 %v5494_v36  ;;  %v5759_v13 = vld [vmem:[#allocation9 + $0xa8] ss:$16 sps:$4 sm:$0xff]   ;;  %v5764_v35 = vld [vmem:[#allocation9 + $0xc4] ss:$16 sps:$4 sm:$0xff]   ;;  %v5767_v36 = vld [vmem:[#allocation9 + $0xcc] ss:$16 sps:$4 sm:$0xff]  }
 0xfe9   :  { %6049 = vpow2.f32 %v5495_v43  ;;  %v5762_v43 = vld [vmem:[#allocation9 + $0xc0] ss:$16 sps:$4 sm:$0xff]   ;;  %v5765_v44 = vld [vmem:[#allocation9 + $0xc8] ss:$16 sps:$4 sm:$0xff]   ;;  %v5770_v45 = vld [vmem:[#allocation9 + $0xe4] ss:$16 sps:$4 sm:$0xff]  }
 0xfea   :  { %6051 = vtanh.f32 %v2496_v47  ;;  %v5768_v46 = vld [vmem:[#allocation9 + $0xe0] ss:$16 sps:$4 sm:$0xff]   ;;  %v5773_v47 = vld [vmem:[#allocation9 + $0xec] ss:$16 sps:$4 sm:$0xff]  }
 0xfeb   :  { %6053 = vpow2.f32 %v5496_v48  ;;  %v5771_v48 = vld [vmem:[#allocation9 + $0xe8] ss:$16 sps:$4 sm:$0xff]  }
 0xff2   :  { %v6048_v49 = vpop.eup %6047 }
 0xff3   :  { %v2506_v50 = vadd.f32 1.0, %v6048_v49  ;;  %v6050_v51 = vpop.eup %6049  ;;  %v7759_v49 = vld [vmem:[#allocation11 + $0x4] ss:$16 sps:$4 sm:$0xff]  }
 0xff4   :  { %v2507_v52 = vadd.f32 1.0, %v6050_v51  ;;  %v6052_v53 = vpop.eup %6051 }
 0xff5   :  { %6055 = vrcp.f32 %v2506_v50  ;;  %v6054_v54 = vpop.eup %6053  ;;  %v7761_v50 = vld [vmem:[#allocation11 + $0xc] ss:$16 sps:$4 sm:$0xff]  }
 0xff6   :  { %6057 = vrcp.f32 %v2507_v52  ;;  %v2508_v40 = vadd.f32 1.0, %v6054_v54 }
 0xff8   :  { %6059 = vrcp.f32 %v2508_v40 }
 0xfff   :  { %v6056_v55 = vpop.eup %6055 }
0x1000   :  { %v2520_v57 = vmul.f32 %v6056_v55, %v6052_v53  ;;  %v6058_v22 = vpop.eup %6057 }
0x1001   :  { %v2519_v39 = vmul.f32 %v6058_v22, %v2517_v56 }
0x1002   :  { %v6060_v8 = vpop.eup %6059 }
0x1003   :  { %v7750_v20 = vadd.f32 %v2520_v57, %v2519_v39 }
0x1005   :  { %6061 = vtanh.f32 %v7750_v20 }
0x100f   :  { %v6062_v24 = vpop.eup %6061 }
0x1010   :  { %v2523_v7 = vmul.f32 %v6062_v24, %v6060_v8 }
0x1012   :  { %v2524_v58 = vpack.c.bf16 %v2523_v7, %v2523_v7 }
0x1014   :  { %v2526_v61 = vrot.slane %v2524_v58, 3  ;;  %v2667_v29 = vrot.slane %v2524_v58, 4 }
0x1016   :  { %2561 = vmatmul.mubr.bf16.vlgmr.msra.gmra.mrb[64].mxu0 %v2526_v61  ;;  %v7755_v34 = vsel %vm8786_vm7, %v7711_v9, %v2667_v29  ;;  %2602 = vmatmul.mubr.bf16.vlgmr.msra.gmra.mrb[64].mxu1 %v2526_v61  ;;  %v5746_v9 = vld [vmem:[#allocation9 + $0x64] ss:$16 sps:$4 sm:$0xff]   ;;  %vm7770_vm7 = vmand %vm2734_vm1, %vm2735_vm10 }
0x1017   :  { %3001 = vmatprep.mubr.bf16.mxu0 %v8800_v27  ;;  %3044 = vmatprep.mubr.bf16.mxu1 %v8800_v27 }
0x1018   :  { %2970 = vmatpush1.bf16.msra.mxu0 %v5726_v59  ;;  %3013 = vmatpush1.bf16.msra.mxu1 %v5729_v33 }
0x1019   :  { %2971 = vmatprep.subr.bf16.mxu0 %v5734_v63  ;;  %3014 = vmatprep.subr.bf16.mxu1 %v5737_v3 }
0x101c   :  { %2972 = vmatpush1.bf16.msra.mxu0 %v5732_v4  ;;  %3015 = vmatpush1.bf16.msra.mxu1 %v5735_v2 }
0x101d   :  { %2973 = vmatprep.subr.bf16.mxu0 %v5740_v31  ;;  %3016 = vmatprep.subr.bf16.mxu1 %v5743_v18  ;;  %v2646_v31 = vrot.slane %v7750_v20, 7 }
0x1020   :  { %2974 = vmatpush1.bf16.msra.mxu0 %v5738_v37  ;;  %3017 = vmatpush1.bf16.msra.mxu1 %v5741_v21 }
0x1021   :  { %2975 = vmatprep.subr.bf16.mxu0 %v5746_v9  ;;  %3018 = vmatprep.subr.bf16.mxu1 %v5749_v25 }
0x1024   :  { %2976 = vmatpush1.bf16.msra.mxu0 %v5744_v41  ;;  %3019 = vmatpush1.bf16.msra.mxu1 %v5747_v42 }
0x1025   :  { %2977 = vmatprep.subr.bf16.mxu0 %v5752_v62  ;;  %3020 = vmatprep.subr.bf16.mxu1 %v5755_v0  ;;  %v8812_v62 = vmov 0 }
0x1026   :  { %v8813_v62 = vsel %vm7770_vm7, 4294967295, %v8812_v62 }
0x1027   :  { %8814 = vst [vmem:[#allocation21_spill] sm:$0xff] %v8813_v62 }
0x1028   :  { %2978 = vmatpush1.bf16.msra.mxu0 %v5750_v1  ;;  %3021 = vmatpush1.bf16.msra.mxu1 %v5753_v16 }
0x1029   :  { %2979 = vmatprep.subr.bf16.mxu0 %v5758_v19  ;;  %3022 = vmatprep.subr.bf16.mxu1 %v5761_v14  ;;  %v7777_v19 = vld [vmem:[#allocation11] ss:$16 sps:$4 sm:$0xff]   ;;  %v7779_v14 = vld [vmem:[#allocation11 + $0x8] ss:$16 sps:$4 sm:$0xff]  }
0x102c   :  { %2980 = vmatpush1.bf16.msra.mxu0 %v5756_v10  ;;  %3023 = vmatpush1.bf16.msra.mxu1 %v5759_v13  ;;  %v7781_v10 = vld [vmem:[#allocation11 + $0x24] ss:$16 sps:$4 sm:$0xff]   ;;  %v7783_v13 = vld [vmem:[#allocation11 + $0x2c] ss:$16 sps:$4 sm:$0xff]  }
0x102d   :  { %2981 = vmatprep.subr.bf16.mxu0 %v5764_v35  ;;  %3024 = vmatprep.subr.bf16.mxu1 %v5767_v36  ;;  %v7789_v36 = vld [vmem:[#allocation11 + $0x28] ss:$16 sps:$4 sm:$0xff]  }
0x1030   :  { %2982 = vmatpush1.bf16.msra.mxu0 %v5762_v43  ;;  %3025 = vmatpush1.bf16.msra.mxu1 %v5765_v44  ;;  %v7793_v43 = vld [vmem:[#allocation11 + $0x44] ss:$16 sps:$4 sm:$0xff]   ;;  %v7795_v44 = vld [vmem:[#allocation11 + $0x4c] ss:$16 sps:$4 sm:$0xff]  }
0x1031   :  { %2983 = vmatprep.subr.bf16.mxu0 %v5770_v45  ;;  %3026 = vmatprep.subr.bf16.mxu1 %v5773_v47  ;;  %v7801_v45 = vld [vmem:[#allocation11 + $0x40] ss:$16 sps:$4 sm:$0xff]   ;;  %v7807_v47 = vld [vmem:[#allocation11 + $0x64] ss:$16 sps:$4 sm:$0xff]  }
0x1034   :  { %2984 = vmatpush1.bf16.msra.mxu0 %v5768_v46  ;;  %3027 = vmatpush1.bf16.msra.mxu1 %v5771_v48  ;;  %v7803_v46 = vld [vmem:[#allocation11 + $0x48] ss:$16 sps:$4 sm:$0xff]   ;;  %v7809_v48 = vld [vmem:[#allocation11 + $0x6c] ss:$16 sps:$4 sm:$0xff]  }
0x1035   :  { %3267 = vmatprep.subr.bf16.mxu0 %v7759_v49  ;;  %3308 = vmatprep.subr.bf16.mxu1 %v7761_v50 }
0x10e9   :  { %v2562_v51 = vpop.f32.mrb[64].mxu0  ;;  %v2603_v52 = vpop.f32.mrb[64].mxu1 }
0x10ea   :  { %v2614_v53 = vrot.slane %v2562_v51, 1  ;;  %v2564_v54 = vpop.f32.mrb[65].mxu0  ;;  %v2605_v55 = vpop.f32.mrb[65].mxu1  ;;  %v2616_v61 = vrot.slane %v2603_v52, 1  ;;  %v7813_v51 = vld [vmem:[#allocation11 + $0x60] ss:$16 sps:$4 sm:$0xff]  }
0x10eb   :  { %v2615_v56 = vrot.slane %v2564_v54, 1  ;;  %v2566_v57 = vpop.f32.mrb[66].mxu0  ;;  %v2607_v22 = vpop.f32.mrb[66].mxu1  ;;  %v2617_v29 = vrot.slane %v2605_v55, 1  ;;  %v7815_v52 = vld [vmem:[#allocation11 + $0x68] ss:$16 sps:$4 sm:$0xff]  }
0x10ec   :  { %v2622_v40 = vadd.f32 %v2614_v53, %v7374_v38  ;;  %v2567_v39 = vpop.f32.mrb[67].mxu0  ;;  %v2608_v8 = vpop.f32.mrb[67].mxu1  ;;  %v2624_v5 = vadd.f32 %v2616_v61, %v7382_v32  ;;  %v7819_v53 = vld [vmem:[#allocation11 + $0x84] ss:$16 sps:$4 sm:$0xff]   ;;  %v7821_v54 = vld [vmem:[#allocation11 + $0x8c] ss:$16 sps:$4 sm:$0xff]  }
0x10ed   :  { %v2623_v24 = vadd.f32 %v2615_v56, %v7377_v28  ;;  %v2625_v60 = vadd.f32 %v2617_v29, %v7386_v26  ;;  %v7825_v55 = vld [vmem:[#allocation11 + $0x80] ss:$16 sps:$4 sm:$0xff]   ;;  %v7827_v56 = vld [vmem:[#allocation11 + $0x88] ss:$16 sps:$4 sm:$0xff]   ;;  %v7831_v57 = vld [vmem:[#allocation11 + $0xa4] ss:$16 sps:$4 sm:$0xff]  }
0x10ee   :  { %v5497_v7 = vmul.f32 -1.442695, %v2622_v40  ;;  %v5499_v59 = vmul.f32 -1.442695, %v2624_v5  ;;  %v7833_v22 = vld [vmem:[#allocation11 + $0xac] ss:$16 sps:$4 sm:$0xff]  }
0x10ef   :  { %v5498_v58 = vmul.f32 -1.442695, %v2623_v24  ;;  %v7837_v40 = vld [vmem:[#allocation11 + $0xa0] ss:$16 sps:$4 sm:$0xff]   ;;  %v7839_v39 = vld [vmem:[#allocation11 + $0xa8] ss:$16 sps:$4 sm:$0xff]  }
0x10f0   :  { %6063 = vpow2.f32 %v5497_v7  ;;  %v7843_v8 = vld [vmem:[#allocation11 + $0xc4] ss:$16 sps:$4 sm:$0xff]   ;;  %v7845_v24 = vld [vmem:[#allocation11 + $0xcc] ss:$16 sps:$4 sm:$0xff]   ;;  %v7849_v7 = vld [vmem:[#allocation11 + $0xc0] ss:$16 sps:$4 sm:$0xff]  }
0x10f1   :  { %6065 = vpow2.f32 %v5498_v58  ;;  %v7851_v58 = vld [vmem:[#allocation11 + $0xc8] ss:$16 sps:$4 sm:$0xff]   ;;  %v7855_v61 = vld [vmem:[#allocation11 + $0xe4] ss:$16 sps:$4 sm:$0xff]   ;;  %v7857_v29 = vld [vmem:[#allocation11 + $0xec] ss:$16 sps:$4 sm:$0xff]  }
0x10f2   :  { %6067 = vtanh.f32 %v2625_v60  ;;  %v7861_v5 = vld [vmem:[#allocation11 + $0xe0] ss:$16 sps:$4 sm:$0xff]   ;;  %v7863_v60 = vld [vmem:[#allocation11 + $0xe8] ss:$16 sps:$4 sm:$0xff]  }
0x10f3   :  { %6069 = vpow2.f32 %v5499_v59  ;;  %v2781_v59 = vld [vmem:[%s8776_s6] sm:$0xf]  ;;  %s6613_s6 = smov [#allocation12]  }
0x10f4   :  { %s5374_s17 = sshll.u32 %s6613_s6, 4  ;;  %s5375_s17 = int_to_ptr.vmem [resolvable:$true] %s5374_s17 }
0x10f5   :  { %s6573_s19 = scalar_lea.vmem %s5375_s17, 128  ;;  %p6578_p13 = scmp.lt.s32.totalorder %s5375_s17, %s5375_s17 }
0x10f6   :  { %p6574_p12 = scmp.ne.s32.totalorder %s5375_s17, %s6573_s19  ;;  %p6579_p0 = scmp.lt.s32.totalorder %s6573_s19, %s6573_s19 }
0x10f8   :  { %p6580_p1 = por %p6579_p0, %p6578_p13 }
0x10fa   :  { %v6064_v33 = vpop.eup %6063  ;;  %p6581_p2 = pnand %p6580_p1, %p6574_p12 }
0x10fb   :  { %v2635_v63 = vadd.f32 1.0, %v6064_v33  ;;  %v6066_v3 = vpop.eup %6065  ;;  %v8815_v33 = vsub.s32 0, %v6866_v6 }
0x10fc   :  { %v2636_v38 = vadd.f32 1.0, %v6066_v3  ;;  %v6068_v28 = vpop.eup %6067  ;;  %v8816_v3 = vsub.s32 2, %v6866_v6 }
0x10fd   :  { %6071 = vrcp.f32 %v2635_v63  ;;  %v6070_v4 = vpop.eup %6069  ;;  %v2786_v63 = vrot.slane %v2781_v59, %v8815_v33 }
0x10fe   :  { %6073 = vrcp.f32 %v2636_v38  ;;  %v2637_v21 = vadd.f32 1.0, %v6070_v4  ;;  %v2794_v38 = vrot.slane %v2781_v59, %v8816_v3 }
0x1100   :  { %6075 = vrcp.f32 %v2637_v21 }
0x1107   :  { %v6072_v2 = vpop.eup %6071 }
0x1108   :  { %v2649_v18 = vmul.f32 %v6072_v2, %v6068_v28  ;;  %v6074_v37 = vpop.eup %6073  ;;  %v8817_v2 = vsub.s32 1, %v6866_v6 }
0x1109   :  { %v2648_v32 = vmul.f32 %v6074_v37, %v2646_v31 }
0x110a   :  { %v6076_v26 = vpop.eup %6075  ;;  %v2790_v31 = vrot.slane %v2781_v59, %v8817_v2 }
0x110b   :  { %v2650_v9 = vadd.f32 %v2649_v18, %v2648_v32  ;;  %v8818_v18 = vsub.s32 3, %v6866_v6 }
0x110d   :  { %6077 = vtanh.f32 %v2650_v9  ;;  %v2798_v37 = vrot.slane %v2781_v59, %v8818_v18 }
0x1117   :  { %v6078_v25 = vpop.eup %6077 }
0x1118   :  { %v2652_v41 = vmul.f32 %v6078_v25, %v6076_v26 }
0x111a   :  { %v2653_v42 = vpack.c.bf16 %v2652_v41, %v2652_v41 }
0x111c   :  { %v2669_v0 = vrot.slane %v2653_v42, 4 }
0x111e   :  { %v2737_v20 = vsel %vm7770_vm7, %v7755_v34, %v2669_v0  ;;  %v7787_v34 = vld [vmem:[#allocation11 + $0x20] ss:$16 sps:$4 sm:$0xff]  }
0x111f   :  { %v5500_v1 = vcombine.low %v2737_v20, %v2737_v20  ;;  %v5501_v16 = vcombine.high %v2737_v20, %v2737_v20 }
0x1121   :  { %2745 = vst [vmem:[#allocation12] sm:$0xf] %v5500_v1  ;;  %2746 = vst [vmem:[#allocation12 + $0x4] sm:$0xf] %v5501_v16 }
0x1128   :  { %v5778_v35 = vld [vmem:[#allocation12] sm:$0xff]  }
0x1129   :  { %3002 = vmatmul.mubr.bf16.vlgmr.msra.gmra.mrb[68].mxu0 %v5778_v35  ;;  %3045 = vmatmul.mubr.bf16.vlgmr.msra.gmra.mrb[68].mxu1 %v5778_v35 }
0x112a   :  { %3268 = vmatpush1.bf16.msra.mxu0 %v7777_v19  ;;  %3309 = vmatpush1.bf16.msra.mxu1 %v7779_v14 }
0x112b   :  { %3269 = vmatprep.subr.bf16.mxu0 %v7781_v10  ;;  %3310 = vmatprep.subr.bf16.mxu1 %v7783_v13 }
0x112c   :  { %3299 = vmatprep.mubr.bf16.mxu0 %v8800_v27  ;;  %3340 = vmatprep.mubr.bf16.mxu1 %v8800_v27 }
0x112e   :  { %3270 = vmatpush1.bf16.msra.mxu0 %v7787_v34  ;;  %3311 = vmatpush1.bf16.msra.mxu1 %v7789_v36 }
0x112f   :  { %3271 = vmatprep.subr.bf16.mxu0 %v7793_v43  ;;  %3312 = vmatprep.subr.bf16.mxu1 %v7795_v44 }
0x1132   :  { %3272 = vmatpush1.bf16.msra.mxu0 %v7801_v45  ;;  %3313 = vmatpush1.bf16.msra.mxu1 %v7803_v46 }
0x1133   :  { %3273 = vmatprep.subr.bf16.mxu0 %v7807_v47  ;;  %3314 = vmatprep.subr.bf16.mxu1 %v7809_v48 }
0x1136   :  { %3274 = vmatpush1.bf16.msra.mxu0 %v7813_v51  ;;  %3315 = vmatpush1.bf16.msra.mxu1 %v7815_v52 }
0x1137   :  { %3275 = vmatprep.subr.bf16.mxu0 %v7819_v53  ;;  %3316 = vmatprep.subr.bf16.mxu1 %v7821_v54 }
0x113a   :  { %3276 = vmatpush1.bf16.msra.mxu0 %v7825_v55  ;;  %3317 = vmatpush1.bf16.msra.mxu1 %v7827_v56 }
0x113b   :  { %3277 = vmatprep.subr.bf16.mxu0 %v7831_v57  ;;  %3318 = vmatprep.subr.bf16.mxu1 %v7833_v22 }
0x113e   :  { %3278 = vmatpush1.bf16.msra.mxu0 %v7837_v40  ;;  %3319 = vmatpush1.bf16.msra.mxu1 %v7839_v39 }
0x113f   :  { %3279 = vmatprep.subr.bf16.mxu0 %v7843_v8  ;;  %3320 = vmatprep.subr.bf16.mxu1 %v7845_v24 }
0x1142   :  { %3280 = vmatpush1.bf16.msra.mxu0 %v7849_v7  ;;  %3321 = vmatpush1.bf16.msra.mxu1 %v7851_v58 }
0x1143   :  { %3281 = vmatprep.subr.bf16.mxu0 %v7855_v61  ;;  %3322 = vmatprep.subr.bf16.mxu1 %v7857_v29 }
0x1146   :  { %3282 = vmatpush1.bf16.msra.mxu0 %v7861_v5  ;;  %3323 = vmatpush1.bf16.msra.mxu1 %v7863_v60 }
0x1147   :  { %3378 = vmatprep.subr.bf16.mxu0 %v7759_v49  ;;  %3419 = vmatprep.subr.bf16.mxu1 %v7761_v50 }
0x1149   :  { %3300 = vmatmul.mubr.bf16.vlgmr.msra.gmra.mrb[72].mxu0 %v8800_v27  ;;  %3341 = vmatmul.mubr.bf16.vlgmr.msra.gmra.mrb[72].mxu1 %v8800_v27 }
0x114a   :  { %3379 = vmatpush1.bf16.msra.mxu0 %v7777_v19  ;;  %3420 = vmatpush1.bf16.msra.mxu1 %v7779_v14 }
0x114b   :  { %3380 = vmatprep.subr.bf16.mxu0 %v7781_v10  ;;  %3421 = vmatprep.subr.bf16.mxu1 %v7783_v13 }
0x114c   :  { %3410 = vmatprep.mubr.bf16.mxu0 %v8800_v27  ;;  %3451 = vmatprep.mubr.bf16.mxu1 %v8800_v27 }
0x114e   :  { %3381 = vmatpush1.bf16.msra.mxu0 %v7787_v34  ;;  %3422 = vmatpush1.bf16.msra.mxu1 %v7789_v36 }
0x114f   :  { %3382 = vmatprep.subr.bf16.mxu0 %v7793_v43  ;;  %3423 = vmatprep.subr.bf16.mxu1 %v7795_v44 }
0x1152   :  { %3383 = vmatpush1.bf16.msra.mxu0 %v7801_v45  ;;  %3424 = vmatpush1.bf16.msra.mxu1 %v7803_v46 }
0x1153   :  { %3384 = vmatprep.subr.bf16.mxu0 %v7807_v47  ;;  %3425 = vmatprep.subr.bf16.mxu1 %v7809_v48 }
0x1156   :  { %3385 = vmatpush1.bf16.msra.mxu0 %v7813_v51  ;;  %3426 = vmatpush1.bf16.msra.mxu1 %v7815_v52 }
0x1157   :  { %3386 = vmatprep.subr.bf16.mxu0 %v7819_v53  ;;  %3427 = vmatprep.subr.bf16.mxu1 %v7821_v54 }
0x115a   :  { %3387 = vmatpush1.bf16.msra.mxu0 %v7825_v55  ;;  %3428 = vmatpush1.bf16.msra.mxu1 %v7827_v56 }
0x115b   :  { %3388 = vmatprep.subr.bf16.mxu0 %v7831_v57  ;;  %3429 = vmatprep.subr.bf16.mxu1 %v7833_v22 }
0x115e   :  { %3389 = vmatpush1.bf16.msra.mxu0 %v7837_v40  ;;  %3430 = vmatpush1.bf16.msra.mxu1 %v7839_v39 }
0x115f   :  { %3390 = vmatprep.subr.bf16.mxu0 %v7843_v8  ;;  %3431 = vmatprep.subr.bf16.mxu1 %v7845_v24 }
0x1162   :  { %3391 = vmatpush1.bf16.msra.mxu0 %v7849_v7  ;;  %3432 = vmatpush1.bf16.msra.mxu1 %v7851_v58 }
0x1163   :  { %3392 = vmatprep.subr.bf16.mxu0 %v7855_v61  ;;  %3433 = vmatprep.subr.bf16.mxu1 %v7857_v29 }
0x1166   :  { %3393 = vmatpush1.bf16.msra.mxu0 %v7861_v5  ;;  %3434 = vmatpush1.bf16.msra.mxu1 %v7863_v60 }
0x1167   :  { %3508 = vmatprep.subr.bf16.mxu0 %v7759_v49  ;;  %3549 = vmatprep.subr.bf16.mxu1 %v7761_v50 }
0x11fc   :  { %v3003_v28 = vpop.f32.mrb[68].mxu0  ;;  %v3046_v4 = vpop.f32.mrb[68].mxu1 }
0x11fd   :  { %v3005_v21 = vpop.f32.mrb[69].mxu0  ;;  %v3048_v32 = vpop.f32.mrb[69].mxu1  ;;  %v3004_v25 = vadd.f32 %v3003_v28, %v2786_v63  ;;  %v3047_v41 = vadd.f32 %v3046_v4, %v2794_v38 }
0x11fe   :  { %v3007_v9 = vpop.f32.mrb[70].mxu0  ;;  %v3050_v26 = vpop.f32.mrb[70].mxu1  ;;  %v3006_v16 = vadd.f32 %v3005_v21, %v2790_v31  ;;  %v3049_v35 = vadd.f32 %v3048_v32, %v2798_v37 }
0x11ff   :  { %v3008_v42 = vadd.f32 %v3007_v9, %v2786_v63  ;;  %v3051_v0 = vadd.f32 %v3050_v26, %v2794_v38  ;;  %v3009_v20 = vpop.f32.mrb[71].mxu0  ;;  %v3052_v1 = vpop.f32.mrb[71].mxu1 }
0x1200   :  { %v3010_v33 = vadd.f32 %v3009_v20, %v2790_v31  ;;  %v3053_v3 = vadd.f32 %v3052_v1, %v2798_v37 }
0x1201   :  { %v7918_v62 = vpack.c.bf16 %v3008_v42, %v3004_v25  ;;  %v7920_v2 = vpack.c.bf16 %v3051_v0, %v3047_v41 }
0x1202   :  { %v7922_v6 = vpack.c.bf16 %v3010_v33, %v3006_v16  ;;  %v7924_v59 = vpack.c.bf16 %v3053_v3, %v3049_v35 }
0x1203   :  { %v7927_v18 = vunpack.c.l.bf16 %v7918_v62  ;;  %v7935_v0 = vunpack.c.l.bf16 %v7920_v2 }
0x1204   :  { %8819 = vst [vmem:[#allocation22_spill] sm:$0xff] %v7924_v59  ;;  %v7930_v63 = vunpack.c.l.bf16 %v7922_v6  ;;  %v7939_v1 = vunpack.c.l.bf16 %v7924_v59 }
0x121c   :  { %v3301_v38 = vpop.f32.mrb[72].mxu0  ;;  %v3342_v28 = vpop.f32.mrb[72].mxu1 }
0x121d   :  { %v3349_v4 = vadd.f32 %v3301_v38, %v7927_v18  ;;  %v3303_v31 = vpop.f32.mrb[73].mxu0  ;;  %v3344_v37 = vpop.f32.mrb[73].mxu1  ;;  %v3351_v20 = vadd.f32 %v3342_v28, %v7935_v0 }
0x121e   :  { %v3350_v21 = vadd.f32 %v3303_v31, %v7930_v63  ;;  %v3305_v32 = vpop.f32.mrb[74].mxu0  ;;  %v3346_v9 = vpop.f32.mrb[74].mxu1  ;;  %v3352_v16 = vadd.f32 %v3344_v37, %v7939_v1 }
0x121f   :  { %v5567_v26 = vmul.f32 -1.442695, %v3349_v4  ;;  %v3306_v25 = vpop.f32.mrb[75].mxu0  ;;  %v3347_v41 = vpop.f32.mrb[75].mxu1  ;;  %v5569_v35 = vmul.f32 -1.442695, %v3351_v20 }
0x1220   :  { %v5568_v42 = vmul.f32 -1.442695, %v3350_v21 }
0x1221   :  { %6079 = vpow2.f32 %v5567_v26 }
0x1222   :  { %6081 = vpow2.f32 %v5568_v42 }
0x1223   :  { %6083 = vtanh.f32 %v3352_v16 }
0x1224   :  { %6085 = vpow2.f32 %v5569_v35 }
0x122b   :  { %v6080_v33 = vpop.eup %6079 }
0x122c   :  { %v3362_v3 = vadd.f32 1.0, %v6080_v33  ;;  %v6082_v38 = vpop.eup %6081 }
0x122d   :  { %v3363_v4 = vadd.f32 1.0, %v6082_v38  ;;  %v6084_v31 = vpop.eup %6083 }
0x122e   :  { %6087 = vrcp.f32 %v3362_v3  ;;  %v6086_v21 = vpop.eup %6085 }
0x122f   :  { %6089 = vrcp.f32 %v3363_v4  ;;  %v3364_v28 = vadd.f32 1.0, %v6086_v21 }
0x1231   :  { %6091 = vrcp.f32 %v3364_v28 }
0x1238   :  { %v6088_v32 = vpop.eup %6087 }
0x1239   :  { %v3373_v9 = vmul.f32 %v6088_v32, %v6084_v31  ;;  %v6090_v26 = vpop.eup %6089 }
0x123a   :  { %v3372_v25 = vmul.f32 0.0, %v6090_v26 }
0x123b   :  { %v6092_v37 = vpop.eup %6091 }
0x123c   :  { %v7942_v41 = vadd.f32 %v3373_v9, %v3372_v25 }
0x123e   :  { %6093 = vtanh.f32 %v7942_v41 }
0x1248   :  { %v6094_v42 = vpop.eup %6093 }
0x1249   :  { %v3376_v20 = vmul.f32 %v6094_v42, %v6092_v37 }
0x124b   :  { %v7945_v16 = vpack.c.bf16 %v3376_v20, %v3376_v20 }
0x124d   :  { %3411 = vmatmul.mubr.bf16.vlgmr.msra.gmra.mrb[76].mxu0 %v7945_v16  ;;  %3452 = vmatmul.mubr.bf16.vlgmr.msra.gmra.mrb[76].mxu1 %v7945_v16 }
0x124e   :  { %3509 = vmatpush1.bf16.msra.mxu0 %v7777_v19  ;;  %3550 = vmatpush1.bf16.msra.mxu1 %v7779_v14 }
0x124f   :  { %3510 = vmatprep.subr.bf16.mxu0 %v7781_v10  ;;  %3551 = vmatprep.subr.bf16.mxu1 %v7783_v13 }
0x1250   :  { %3540 = vmatprep.mubr.bf16.mxu0 %v8800_v27  ;;  %3581 = vmatprep.mubr.bf16.mxu1 %v8800_v27 }
0x1252   :  { %3511 = vmatpush1.bf16.msra.mxu0 %v7787_v34  ;;  %3552 = vmatpush1.bf16.msra.mxu1 %v7789_v36 }
0x1253   :  { %3512 = vmatprep.subr.bf16.mxu0 %v7793_v43  ;;  %3553 = vmatprep.subr.bf16.mxu1 %v7795_v44 }
0x1256   :  { %3513 = vmatpush1.bf16.msra.mxu0 %v7801_v45  ;;  %3554 = vmatpush1.bf16.msra.mxu1 %v7803_v46 }
0x1257   :  { %3514 = vmatprep.subr.bf16.mxu0 %v7807_v47  ;;  %3555 = vmatprep.subr.bf16.mxu1 %v7809_v48 }
0x125a   :  { %3515 = vmatpush1.bf16.msra.mxu0 %v7813_v51  ;;  %3556 = vmatpush1.bf16.msra.mxu1 %v7815_v52 }
0x125b   :  { %3516 = vmatprep.subr.bf16.mxu0 %v7819_v53  ;;  %3557 = vmatprep.subr.bf16.mxu1 %v7821_v54 }
0x125e   :  { %3517 = vmatpush1.bf16.msra.mxu0 %v7825_v55  ;;  %3558 = vmatpush1.bf16.msra.mxu1 %v7827_v56 }
0x125f   :  { %3518 = vmatprep.subr.bf16.mxu0 %v7831_v57  ;;  %3559 = vmatprep.subr.bf16.mxu1 %v7833_v22 }
0x1262   :  { %3519 = vmatpush1.bf16.msra.mxu0 %v7837_v40  ;;  %3560 = vmatpush1.bf16.msra.mxu1 %v7839_v39 }
0x1263   :  { %3520 = vmatprep.subr.bf16.mxu0 %v7843_v8  ;;  %3561 = vmatprep.subr.bf16.mxu1 %v7845_v24 }
0x1266   :  { %3521 = vmatpush1.bf16.msra.mxu0 %v7849_v7  ;;  %3562 = vmatpush1.bf16.msra.mxu1 %v7851_v58 }
0x1267   :  { %3522 = vmatprep.subr.bf16.mxu0 %v7855_v61  ;;  %3563 = vmatprep.subr.bf16.mxu1 %v7857_v29 }
0x126a   :  { %3523 = vmatpush1.bf16.msra.mxu0 %v7861_v5  ;;  %3564 = vmatpush1.bf16.msra.mxu1 %v7863_v60 }
0x126b   :  { %3637 = vmatprep.subr.bf16.mxu0 %v7759_v49  ;;  %3678 = vmatprep.subr.bf16.mxu1 %v7761_v50 }
0x1320   :  { %v3412_v35 = vpop.f32.mrb[76].mxu0  ;;  %v3453_v33 = vpop.f32.mrb[76].mxu1 }
0x1321   :  { %v3464_v3 = vrot.slane %v3412_v35, 7  ;;  %v3414_v38 = vpop.f32.mrb[77].mxu0  ;;  %v3455_v4 = vpop.f32.mrb[77].mxu1  ;;  %v3466_v20 = vrot.slane %v3453_v33, 7  ;;  %v3496_v33 = vrot.slane %v7942_v41, 7 }
0x1322   :  { %v3465_v31 = vrot.slane %v3414_v38, 7  ;;  %v3416_v21 = vpop.f32.mrb[78].mxu0  ;;  %v3457_v32 = vpop.f32.mrb[78].mxu1  ;;  %v3467_v17 = vrot.slane %v3455_v4, 7 }
0x1323   :  { %v3472_v9 = vadd.f32 %v3464_v3, %v7927_v18  ;;  %v3417_v26 = vpop.f32.mrb[79].mxu0  ;;  %v3458_v28 = vpop.f32.mrb[79].mxu1  ;;  %v3474_v15 = vadd.f32 %v3466_v20, %v7935_v0 }
0x1324   :  { %v3473_v25 = vadd.f32 %v3465_v31, %v7930_v63  ;;  %v3475_v35 = vadd.f32 %v3467_v17, %v7939_v1 }
0x1325   :  { %v5570_v37 = vmul.f32 -1.442695, %v3472_v9  ;;  %v5572_v23 = vmul.f32 -1.442695, %v3474_v15 }
0x1326   :  { %v5571_v42 = vmul.f32 -1.442695, %v3473_v25 }
0x1327   :  { %6095 = vpow2.f32 %v5570_v37 }
0x1328   :  { %6097 = vpow2.f32 %v5571_v42 }
0x1329   :  { %6099 = vtanh.f32 %v3475_v35 }
0x132a   :  { %6101 = vpow2.f32 %v5572_v23 }
0x1331   :  { %v6096_v38 = vpop.eup %6095 }
0x1332   :  { %v3485_v21 = vadd.f32 1.0, %v6096_v38  ;;  %v6098_v32 = vpop.eup %6097 }
0x1333   :  { %v3486_v3 = vadd.f32 1.0, %v6098_v32  ;;  %v6100_v31 = vpop.eup %6099 }
0x1334   :  { %6103 = vrcp.f32 %v3485_v21  ;;  %v6102_v9 = vpop.eup %6101 }
0x1335   :  { %6105 = vrcp.f32 %v3486_v3  ;;  %v3487_v25 = vadd.f32 1.0, %v6102_v9 }
0x1337   :  { %6107 = vrcp.f32 %v3487_v25 }
0x133e   :  { %v6104_v26 = vpop.eup %6103 }
0x133f   :  { %v3499_v28 = vmul.f32 %v6104_v26, %v6100_v31  ;;  %v6106_v4 = vpop.eup %6105 }
0x1340   :  { %v3498_v37 = vmul.f32 %v6106_v4, %v3496_v33 }
0x1341   :  { %v6108_v15 = vpop.eup %6107 }
0x1342   :  { %v7988_v42 = vadd.f32 %v3499_v28, %v3498_v37 }
0x1344   :  { %6109 = vtanh.f32 %v7988_v42 }
0x134e   :  { %v6110_v17 = vpop.eup %6109 }
0x134f   :  { %v3502_v23 = vmul.f32 %v6110_v17, %v6108_v15 }
0x1351   :  { %v7991_v20 = vpack.c.bf16 %v3502_v23, %v3502_v23 }
0x1353   :  { %v3505_v35 = vshrl.u32 %v7991_v20, 16 }
0x1355   :  { %3541 = vmatmul.mubr.bf16.vlgmr.msra.gmra.mrb[80].mxu0 %v3505_v35  ;;  %3582 = vmatmul.mubr.bf16.vlgmr.msra.gmra.mrb[80].mxu1 %v3505_v35 }
0x1356   :  { %3638 = vmatpush1.bf16.msra.mxu0 %v7777_v19  ;;  %3679 = vmatpush1.bf16.msra.mxu1 %v7779_v14 }
0x1357   :  { %3639 = vmatprep.subr.bf16.mxu0 %v7781_v10  ;;  %3680 = vmatprep.subr.bf16.mxu1 %v7783_v13 }
0x1358   :  { %3669 = vmatprep.mubr.bf16.mxu0 %v8800_v27  ;;  %3710 = vmatprep.mubr.bf16.mxu1 %v8800_v27 }
0x135a   :  { %3640 = vmatpush1.bf16.msra.mxu0 %v7787_v34  ;;  %3681 = vmatpush1.bf16.msra.mxu1 %v7789_v36 }
0x135b   :  { %3641 = vmatprep.subr.bf16.mxu0 %v7793_v43  ;;  %3682 = vmatprep.subr.bf16.mxu1 %v7795_v44 }
0x135e   :  { %3642 = vmatpush1.bf16.msra.mxu0 %v7801_v45  ;;  %3683 = vmatpush1.bf16.msra.mxu1 %v7803_v46 }
0x135f   :  { %3643 = vmatprep.subr.bf16.mxu0 %v7807_v47  ;;  %3684 = vmatprep.subr.bf16.mxu1 %v7809_v48 }
0x1362   :  { %3644 = vmatpush1.bf16.msra.mxu0 %v7813_v51  ;;  %3685 = vmatpush1.bf16.msra.mxu1 %v7815_v52 }
0x1363   :  { %3645 = vmatprep.subr.bf16.mxu0 %v7819_v53  ;;  %3686 = vmatprep.subr.bf16.mxu1 %v7821_v54 }
0x1366   :  { %3646 = vmatpush1.bf16.msra.mxu0 %v7825_v55  ;;  %3687 = vmatpush1.bf16.msra.mxu1 %v7827_v56 }
0x1367   :  { %3647 = vmatprep.subr.bf16.mxu0 %v7831_v57  ;;  %3688 = vmatprep.subr.bf16.mxu1 %v7833_v22 }
0x136a   :  { %3648 = vmatpush1.bf16.msra.mxu0 %v7837_v40  ;;  %3689 = vmatpush1.bf16.msra.mxu1 %v7839_v39 }
0x136b   :  { %3649 = vmatprep.subr.bf16.mxu0 %v7843_v8  ;;  %3690 = vmatprep.subr.bf16.mxu1 %v7845_v24 }
0x136e   :  { %3650 = vmatpush1.bf16.msra.mxu0 %v7849_v7  ;;  %3691 = vmatpush1.bf16.msra.mxu1 %v7851_v58 }
0x136f   :  { %3651 = vmatprep.subr.bf16.mxu0 %v7855_v61  ;;  %3692 = vmatprep.subr.bf16.mxu1 %v7857_v29 }
0x1372   :  { %3652 = vmatpush1.bf16.msra.mxu0 %v7861_v5  ;;  %3693 = vmatpush1.bf16.msra.mxu1 %v7863_v60 }
0x1373   :  { %3768 = vmatprep.subr.bf16.mxu0 %v7759_v49  ;;  %3809 = vmatprep.subr.bf16.mxu1 %v7761_v50 }
0x1428   :  { %v3542_v41 = vpop.f32.mrb[80].mxu0  ;;  %v3583_v38 = vpop.f32.mrb[80].mxu1 }
0x1429   :  { %v3594_v21 = vrot.slane %v3542_v41, 6  ;;  %v3544_v32 = vpop.f32.mrb[81].mxu0  ;;  %v3585_v3 = vpop.f32.mrb[81].mxu1  ;;  %v3596_v17 = vrot.slane %v3583_v38, 6  ;;  %v3626_v38 = vrot.slane %v7988_v42, 7 }
0x142a   :  { %v3595_v31 = vrot.slane %v3544_v32, 6  ;;  %v3546_v9 = vpop.f32.mrb[82].mxu0  ;;  %v3587_v26 = vpop.f32.mrb[82].mxu1  ;;  %v3597_v23 = vrot.slane %v3585_v3, 6 }
0x142b   :  { %v3602_v33 = vadd.f32 %v3594_v21, %v7927_v18  ;;  %v3547_v28 = vpop.f32.mrb[83].mxu0  ;;  %v3588_v4 = vpop.f32.mrb[83].mxu1  ;;  %v3604_v35 = vadd.f32 %v3596_v17, %v7935_v0 }
0x142c   :  { %v3603_v25 = vadd.f32 %v3595_v31, %v7930_v63  ;;  %v3605_v41 = vadd.f32 %v3597_v23, %v7939_v1 }
0x142d   :  { %v5573_v37 = vmul.f32 -1.442695, %v3602_v33  ;;  %v5575_v59 = vmul.f32 -1.442695, %v3604_v35 }
0x142e   :  { %v5574_v15 = vmul.f32 -1.442695, %v3603_v25 }
0x142f   :  { %6111 = vpow2.f32 %v5573_v37 }
0x1430   :  { %6113 = vpow2.f32 %v5574_v15 }
0x1431   :  { %6115 = vtanh.f32 %v3605_v41  ;;  %v5324_v41 = vsel %vm7002_vm2, %v7945_v16, %v7991_v20 }
0x1432   :  { %6117 = vpow2.f32 %v5575_v59 }
0x1439   :  { %v6112_v32 = vpop.eup %6111 }
0x143a   :  { %v3615_v9 = vadd.f32 1.0, %v6112_v32  ;;  %v6114_v26 = vpop.eup %6113 }
0x143b   :  { %v3616_v21 = vadd.f32 1.0, %v6114_v26  ;;  %v6116_v31 = vpop.eup %6115 }
0x143c   :  { %6119 = vrcp.f32 %v3615_v9  ;;  %v6118_v33 = vpop.eup %6117 }
0x143d   :  { %6121 = vrcp.f32 %v3616_v21  ;;  %v3617_v25 = vadd.f32 1.0, %v6118_v33 }
0x143f   :  { %6123 = vrcp.f32 %v3617_v25 }
0x1446   :  { %v6120_v28 = vpop.eup %6119 }
0x1447   :  { %v3629_v4 = vmul.f32 %v6120_v28, %v6116_v31  ;;  %v6122_v3 = vpop.eup %6121 }
0x1448   :  { %v3628_v37 = vmul.f32 %v6122_v3, %v3626_v38 }
0x1449   :  { %v6124_v17 = vpop.eup %6123 }
0x144a   :  { %v8033_v15 = vadd.f32 %v3629_v4, %v3628_v37 }
0x144c   :  { %6125 = vtanh.f32 %v8033_v15 }
0x1456   :  { %v6126_v23 = vpop.eup %6125 }
0x1457   :  { %v3632_v59 = vmul.f32 %v6126_v23, %v6124_v17 }
0x1459   :  { %v3633_v35 = vpack.c.bf16 %v3632_v59, %v3632_v59 }
0x145b   :  { %v3635_v32 = vrot.slane %v3633_v35, 1  ;;  %v8041_v42 = vsel %vm2671_vm0, %v5324_v41, %v3633_v35  ;;  %vm8826_vm0 = vcmask 1046528  }
0x145d   :  { %3670 = vmatmul.mubr.bf16.vlgmr.msra.gmra.mrb[84].mxu0 %v3635_v32  ;;  %3711 = vmatmul.mubr.bf16.vlgmr.msra.gmra.mrb[84].mxu1 %v3635_v32 }
0x145e   :  { %3769 = vmatpush1.bf16.msra.mxu0 %v7777_v19  ;;  %3810 = vmatpush1.bf16.msra.mxu1 %v7779_v14 }
0x145f   :  { %3770 = vmatprep.subr.bf16.mxu0 %v7781_v10  ;;  %3811 = vmatprep.subr.bf16.mxu1 %v7783_v13 }
0x1460   :  { %3800 = vmatprep.mubr.bf16.mxu0 %v8800_v27  ;;  %3841 = vmatprep.mubr.bf16.mxu1 %v8800_v27 }
0x1462   :  { %3771 = vmatpush1.bf16.msra.mxu0 %v7787_v34  ;;  %3812 = vmatpush1.bf16.msra.mxu1 %v7789_v36 }
0x1463   :  { %3772 = vmatprep.subr.bf16.mxu0 %v7793_v43  ;;  %3813 = vmatprep.subr.bf16.mxu1 %v7795_v44 }
0x1466   :  { %3773 = vmatpush1.bf16.msra.mxu0 %v7801_v45  ;;  %3814 = vmatpush1.bf16.msra.mxu1 %v7803_v46 }
0x1467   :  { %3774 = vmatprep.subr.bf16.mxu0 %v7807_v47  ;;  %3815 = vmatprep.subr.bf16.mxu1 %v7809_v48 }
0x146a   :  { %3775 = vmatpush1.bf16.msra.mxu0 %v7813_v51  ;;  %3816 = vmatpush1.bf16.msra.mxu1 %v7815_v52 }
0x146b   :  { %3776 = vmatprep.subr.bf16.mxu0 %v7819_v53  ;;  %3817 = vmatprep.subr.bf16.mxu1 %v7821_v54 }
0x146e   :  { %3777 = vmatpush1.bf16.msra.mxu0 %v7825_v55  ;;  %3818 = vmatpush1.bf16.msra.mxu1 %v7827_v56 }
0x146f   :  { %3778 = vmatprep.subr.bf16.mxu0 %v7831_v57  ;;  %3819 = vmatprep.subr.bf16.mxu1 %v7833_v22 }
0x1472   :  { %3779 = vmatpush1.bf16.msra.mxu0 %v7837_v40  ;;  %3820 = vmatpush1.bf16.msra.mxu1 %v7839_v39 }
0x1473   :  { %3780 = vmatprep.subr.bf16.mxu0 %v7843_v8  ;;  %3821 = vmatprep.subr.bf16.mxu1 %v7845_v24 }
0x1476   :  { %3781 = vmatpush1.bf16.msra.mxu0 %v7849_v7  ;;  %3822 = vmatpush1.bf16.msra.mxu1 %v7851_v58 }
0x1477   :  { %3782 = vmatprep.subr.bf16.mxu0 %v7855_v61  ;;  %3823 = vmatprep.subr.bf16.mxu1 %v7857_v29 }
0x147a   :  { %3783 = vmatpush1.bf16.msra.mxu0 %v7861_v5  ;;  %3824 = vmatpush1.bf16.msra.mxu1 %v7863_v60 }
0x147b   :  { %3897 = vmatprep.subr.bf16.mxu0 %v7759_v49  ;;  %3938 = vmatprep.subr.bf16.mxu1 %v7761_v50 }
0x1530   :  { %v3671_v11 = vpop.f32.mrb[84].mxu0  ;;  %v3712_v16 = vpop.f32.mrb[84].mxu1 }
0x1531   :  { %v3723_v20 = vrot.slane %v3671_v11, 5  ;;  %v3673_v9 = vpop.f32.mrb[85].mxu0  ;;  %v3714_v26 = vpop.f32.mrb[85].mxu1  ;;  %v3725_v49 = vrot.slane %v3712_v16, 5  ;;  %v3755_v16 = vrot.slane %v8033_v15, 7 }
0x1532   :  { %v3724_v21 = vrot.slane %v3673_v9, 5  ;;  %v3675_v31 = vpop.f32.mrb[86].mxu0  ;;  %v3716_v33 = vpop.f32.mrb[86].mxu1  ;;  %v3726_v50 = vrot.slane %v3714_v26, 5 }
0x1533   :  { %v3731_v28 = vadd.f32 %v3723_v20, %v7927_v18  ;;  %v3676_v38 = vpop.f32.mrb[87].mxu0  ;;  %v3717_v4 = vpop.f32.mrb[87].mxu1  ;;  %v3733_v17 = vadd.f32 %v3725_v49, %v7935_v0 }
0x1534   :  { %v3732_v3 = vadd.f32 %v3724_v21, %v7930_v63  ;;  %v3734_v23 = vadd.f32 %v3726_v50, %v7939_v1 }
0x1535   :  { %v5576_v25 = vmul.f32 -1.442695, %v3731_v28  ;;  %v5578_v59 = vmul.f32 -1.442695, %v3733_v17 }
0x1536   :  { %v5577_v37 = vmul.f32 -1.442695, %v3732_v3 }
0x1537   :  { %6127 = vpow2.f32 %v5576_v25 }
0x1538   :  { %6129 = vpow2.f32 %v5577_v37 }
0x1539   :  { %6131 = vtanh.f32 %v3734_v23  ;;  %v8124_v23 = vld [vmem:[#allocation11 + $0x4] ss:$16 sps:$4 sm:$0xff]  }
0x153a   :  { %6133 = vpow2.f32 %v5578_v59  ;;  %v8127_v59 = vld [vmem:[#allocation11 + $0xc] ss:$16 sps:$4 sm:$0xff]  }
0x1541   :  { %v6128_v35 = vpop.eup %6127 }
0x1542   :  { %v3744_v41 = vadd.f32 1.0, %v6128_v35  ;;  %v6130_v32 = vpop.eup %6129 }
0x1543   :  { %v3745_v11 = vadd.f32 1.0, %v6130_v32  ;;  %v6132_v20 = vpop.eup %6131 }
0x1544   :  { %6135 = vrcp.f32 %v3744_v41  ;;  %v6134_v9 = vpop.eup %6133 }
0x1545   :  { %6137 = vrcp.f32 %v3745_v11  ;;  %v3746_v33 = vadd.f32 1.0, %v6134_v9 }
0x1547   :  { %6139 = vrcp.f32 %v3746_v33 }
0x154e   :  { %v6136_v21 = vpop.eup %6135 }
0x154f   :  { %v3758_v31 = vmul.f32 %v6136_v21, %v6132_v20  ;;  %v6138_v26 = vpop.eup %6137 }
0x1550   :  { %v3757_v28 = vmul.f32 %v6138_v26, %v3755_v16 }
0x1551   :  { %v6140_v4 = vpop.eup %6139 }
0x1552   :  { %v8082_v38 = vadd.f32 %v3758_v31, %v3757_v28 }
0x1554   :  { %6141 = vtanh.f32 %v8082_v38 }
0x155e   :  { %v6142_v3 = vpop.eup %6141 }
0x155f   :  { %v3761_v25 = vmul.f32 %v6142_v3, %v6140_v4 }
0x1561   :  { %v8085_v37 = vpack.c.bf16 %v3761_v25, %v3761_v25 }
0x1563   :  { %v3764_v49 = vshrl.u32 %v8085_v37, 16 }
0x1565   :  { %v3766_v17 = vrot.slane %v3764_v49, 1 }
0x1567   :  { %3801 = vmatmul.mubr.bf16.vlgmr.msra.gmra.mrb[88].mxu0 %v3766_v17  ;;  %3842 = vmatmul.mubr.bf16.vlgmr.msra.gmra.mrb[88].mxu1 %v3766_v17 }
0x1568   :  { %3898 = vmatpush1.bf16.msra.mxu0 %v7777_v19  ;;  %3939 = vmatpush1.bf16.msra.mxu1 %v7779_v14 }
0x1569   :  { %3899 = vmatprep.subr.bf16.mxu0 %v7781_v10  ;;  %3940 = vmatprep.subr.bf16.mxu1 %v7783_v13 }
0x156a   :  { %3929 = vmatprep.mubr.bf16.mxu0 %v8800_v27  ;;  %3970 = vmatprep.mubr.bf16.mxu1 %v8800_v27 }
0x156c   :  { %3900 = vmatpush1.bf16.msra.mxu0 %v7787_v34  ;;  %3941 = vmatpush1.bf16.msra.mxu1 %v7789_v36 }
0x156d   :  { %3901 = vmatprep.subr.bf16.mxu0 %v7793_v43  ;;  %3942 = vmatprep.subr.bf16.mxu1 %v7795_v44 }
0x1570   :  { %3902 = vmatpush1.bf16.msra.mxu0 %v7801_v45  ;;  %3943 = vmatpush1.bf16.msra.mxu1 %v7803_v46 }
0x1571   :  { %3903 = vmatprep.subr.bf16.mxu0 %v7807_v47  ;;  %3944 = vmatprep.subr.bf16.mxu1 %v7809_v48 }
0x1574   :  { %3904 = vmatpush1.bf16.msra.mxu0 %v7813_v51  ;;  %3945 = vmatpush1.bf16.msra.mxu1 %v7815_v52 }
0x1575   :  { %3905 = vmatprep.subr.bf16.mxu0 %v7819_v53  ;;  %3946 = vmatprep.subr.bf16.mxu1 %v7821_v54 }
0x1578   :  { %3906 = vmatpush1.bf16.msra.mxu0 %v7825_v55  ;;  %3947 = vmatpush1.bf16.msra.mxu1 %v7827_v56 }
0x1579   :  { %3907 = vmatprep.subr.bf16.mxu0 %v7831_v57  ;;  %3948 = vmatprep.subr.bf16.mxu1 %v7833_v22 }
0x157c   :  { %3908 = vmatpush1.bf16.msra.mxu0 %v7837_v40  ;;  %3949 = vmatpush1.bf16.msra.mxu1 %v7839_v39 }
0x157d   :  { %3909 = vmatprep.subr.bf16.mxu0 %v7843_v8  ;;  %3950 = vmatprep.subr.bf16.mxu1 %v7845_v24 }
0x1580   :  { %3910 = vmatpush1.bf16.msra.mxu0 %v7849_v7  ;;  %3951 = vmatpush1.bf16.msra.mxu1 %v7851_v58 }
0x1581   :  { %3911 = vmatprep.subr.bf16.mxu0 %v7855_v61  ;;  %3952 = vmatprep.subr.bf16.mxu1 %v7857_v29 }
0x1584   :  { %3912 = vmatpush1.bf16.msra.mxu0 %v7861_v5  ;;  %3953 = vmatpush1.bf16.msra.mxu1 %v7863_v60 }
0x1585   :  { %4028 = vmatprep.subr.bf16.mxu0 %v8124_v23  ;;  %4069 = vmatprep.subr.bf16.mxu1 %v8127_v59 }
0x163a   :  { %v3802_v35 = vpop.f32.mrb[88].mxu0  ;;  %v3843_v41 = vpop.f32.mrb[88].mxu1 }
0x163b   :  { %v3854_v32 = vrot.slane %v3802_v35, 4  ;;  %v3804_v11 = vpop.f32.mrb[89].mxu0  ;;  %v3845_v20 = vpop.f32.mrb[89].mxu1  ;;  %v3856_v25 = vrot.slane %v3843_v41, 4  ;;  %v3886_v41 = vrot.slane %v8082_v38, 7 }
0x163c   :  { %v3855_v9 = vrot.slane %v3804_v11, 4  ;;  %v3806_v21 = vpop.f32.mrb[90].mxu0  ;;  %v3847_v16 = vpop.f32.mrb[90].mxu1  ;;  %v3857_v49 = vrot.slane %v3845_v20, 4 }
0x163d   :  { %v3862_v31 = vadd.f32 %v3854_v32, %v7927_v18  ;;  %v3807_v26 = vpop.f32.mrb[91].mxu0  ;;  %v3848_v33 = vpop.f32.mrb[91].mxu1  ;;  %v3864_v17 = vadd.f32 %v3856_v25, %v7935_v0 }
0x163e   :  { %v3863_v28 = vadd.f32 %v3855_v9, %v7930_v63  ;;  %v3865_v35 = vadd.f32 %v3857_v49, %v7939_v1 }
0x163f   :  { %v5579_v4 = vmul.f32 -1.442695, %v3862_v31  ;;  %v5581_v15 = vmul.f32 -1.442695, %v3864_v17 }
0x1640   :  { %v5580_v3 = vmul.f32 -1.442695, %v3863_v28 }
0x1641   :  { %6143 = vpow2.f32 %v5579_v4 }
0x1642   :  { %6145 = vpow2.f32 %v5580_v3 }
0x1643   :  { %6147 = vtanh.f32 %v3865_v35 }
0x1644   :  { %6149 = vpow2.f32 %v5581_v15 }
0x164b   :  { %v6144_v11 = vpop.eup %6143 }
0x164c   :  { %v3875_v21 = vadd.f32 1.0, %v6144_v11  ;;  %v6146_v16 = vpop.eup %6145  ;;  %v8821_v11 = vsel %vm7056_vm5, %v8041_v42, %v8085_v37 }
0x164d   :  { %v3876_v32 = vadd.f32 1.0, %v6146_v16  ;;  %v6148_v9 = vpop.eup %6147 }
0x164e   :  { %6151 = vrcp.f32 %v3875_v21  ;;  %v6150_v31 = vpop.eup %6149 }
0x164f   :  { %6153 = vrcp.f32 %v3876_v32  ;;  %v3877_v28 = vadd.f32 1.0, %v6150_v31 }
0x1651   :  { %6155 = vrcp.f32 %v3877_v28  ;;  %v8204_v28 = vld [vmem:[#allocation11 + $0x2c] ss:$16 sps:$4 sm:$0xff]  }
0x1658   :  { %v6152_v26 = vpop.eup %6151 }
0x1659   :  { %v3889_v33 = vmul.f32 %v6152_v26, %v6148_v9  ;;  %v6154_v20 = vpop.eup %6153 }
0x165a   :  { %v3888_v4 = vmul.f32 %v6154_v20, %v3886_v41  ;;  %v8195_v41 = vld [vmem:[#allocation11] ss:$16 sps:$4 sm:$0xff]   ;;  %v8201_v20 = vld [vmem:[#allocation11 + $0x24] ss:$16 sps:$4 sm:$0xff]  }
0x165b   :  { %v6156_v25 = vpop.eup %6155 }
0x165c   :  { %v8135_v3 = vadd.f32 %v3889_v33, %v3888_v4  ;;  %v8198_v33 = vld [vmem:[#allocation11 + $0x8] ss:$16 sps:$4 sm:$0xff]   ;;  %v8209_v4 = vld [vmem:[#allocation11 + $0x20] ss:$16 sps:$4 sm:$0xff]  }
0x165e   :  { %6157 = vtanh.f32 %v8135_v3 }
0x1668   :  { %v6158_v49 = vpop.eup %6157 }
0x1669   :  { %v3892_v15 = vmul.f32 %v6158_v49, %v6156_v25  ;;  %v8215_v25 = vld [vmem:[#allocation11 + $0x44] ss:$16 sps:$4 sm:$0xff]   ;;  %v8218_v49 = vld [vmem:[#allocation11 + $0x4c] ss:$16 sps:$4 sm:$0xff]  }
0x166b   :  { %v3893_v17 = vpack.c.bf16 %v3892_v15, %v3892_v15  ;;  %v8221_v15 = vld [vmem:[#allocation11 + $0x40] ss:$16 sps:$4 sm:$0xff]  }
0x166d   :  { %v3895_v35 = vrot.slane %v3893_v17, 2  ;;  %v8144_v38 = vsel %vm2680_vm3, %v8821_v11, %v3893_v17  ;;  %v8224_v17 = vld [vmem:[#allocation11 + $0x48] ss:$16 sps:$4 sm:$0xff]   ;;  %v8230_v11 = vld [vmem:[#allocation11 + $0x6c] ss:$16 sps:$4 sm:$0xff]  }
0x166f   :  { %3930 = vmatmul.mubr.bf16.vlgmr.msra.gmra.mrb[92].mxu0 %v3895_v35  ;;  %3971 = vmatmul.mubr.bf16.vlgmr.msra.gmra.mrb[92].mxu1 %v3895_v35  ;;  %v8227_v35 = vld [vmem:[#allocation11 + $0x64] ss:$16 sps:$4 sm:$0xff]  }
0x1670   :  { %4029 = vmatpush1.bf16.msra.mxu0 %v7777_v19  ;;  %4070 = vmatpush1.bf16.msra.mxu1 %v7779_v14 }
0x1671   :  { %4030 = vmatprep.subr.bf16.mxu0 %v7781_v10  ;;  %4071 = vmatprep.subr.bf16.mxu1 %v7783_v13 }
0x1672   :  { %4060 = vmatprep.mubr.bf16.mxu0 %v8800_v27  ;;  %4101 = vmatprep.mubr.bf16.mxu1 %v8800_v27 }
0x1674   :  { %4031 = vmatpush1.bf16.msra.mxu0 %v7787_v34  ;;  %4072 = vmatpush1.bf16.msra.mxu1 %v7789_v36 }
0x1675   :  { %4032 = vmatprep.subr.bf16.mxu0 %v7793_v43  ;;  %4073 = vmatprep.subr.bf16.mxu1 %v7795_v44 }
0x1678   :  { %4033 = vmatpush1.bf16.msra.mxu0 %v7801_v45  ;;  %4074 = vmatpush1.bf16.msra.mxu1 %v7803_v46 }
0x1679   :  { %4034 = vmatprep.subr.bf16.mxu0 %v7807_v47  ;;  %4075 = vmatprep.subr.bf16.mxu1 %v7809_v48 }
0x167c   :  { %4035 = vmatpush1.bf16.msra.mxu0 %v7813_v51  ;;  %4076 = vmatpush1.bf16.msra.mxu1 %v7815_v52 }
0x167d   :  { %4036 = vmatprep.subr.bf16.mxu0 %v7819_v53  ;;  %4077 = vmatprep.subr.bf16.mxu1 %v7821_v54 }
0x1680   :  { %4037 = vmatpush1.bf16.msra.mxu0 %v7825_v55  ;;  %4078 = vmatpush1.bf16.msra.mxu1 %v7827_v56 }
0x1681   :  { %4038 = vmatprep.subr.bf16.mxu0 %v7831_v57  ;;  %4079 = vmatprep.subr.bf16.mxu1 %v7833_v22 }
0x1684   :  { %4039 = vmatpush1.bf16.msra.mxu0 %v7837_v40  ;;  %4080 = vmatpush1.bf16.msra.mxu1 %v7839_v39 }
0x1685   :  { %4040 = vmatprep.subr.bf16.mxu0 %v7843_v8  ;;  %4081 = vmatprep.subr.bf16.mxu1 %v7845_v24 }
0x1688   :  { %4041 = vmatpush1.bf16.msra.mxu0 %v7849_v7  ;;  %4082 = vmatpush1.bf16.msra.mxu1 %v7851_v58 }
0x1689   :  { %4042 = vmatprep.subr.bf16.mxu0 %v7855_v61  ;;  %4083 = vmatprep.subr.bf16.mxu1 %v7857_v29  ;;  %v4015_v61 = vrot.slane %v8135_v3, 7  ;;  %v8212_v3 = vld [vmem:[#allocation11 + $0x28] ss:$16 sps:$4 sm:$0xff]  }
0x168c   :  { %4043 = vmatpush1.bf16.msra.mxu0 %v7861_v5  ;;  %4084 = vmatpush1.bf16.msra.mxu1 %v7863_v60 }
0x168d   :  { %4157 = vmatprep.subr.bf16.mxu0 %v8124_v23  ;;  %4198 = vmatprep.subr.bf16.mxu1 %v8127_v59 }
0x1742   :  { %v3931_v19 = vpop.f32.mrb[92].mxu0  ;;  %v3972_v14 = vpop.f32.mrb[92].mxu1 }
0x1743   :  { %v3983_v10 = vrot.slane %v3931_v19, 3  ;;  %v3933_v13 = vpop.f32.mrb[93].mxu0  ;;  %v3974_v34 = vpop.f32.mrb[93].mxu1  ;;  %v3985_v53 = vrot.slane %v3972_v14, 3  ;;  %v8233_v19 = vld [vmem:[#allocation11 + $0x60] ss:$16 sps:$4 sm:$0xff]  }
0x1744   :  { %v3984_v36 = vrot.slane %v3933_v13, 3  ;;  %v3935_v43 = vpop.f32.mrb[94].mxu0  ;;  %v3976_v44 = vpop.f32.mrb[94].mxu1  ;;  %v3986_v54 = vrot.slane %v3974_v34, 3  ;;  %v8236_v14 = vld [vmem:[#allocation11 + $0x68] ss:$16 sps:$4 sm:$0xff]  }
0x1745   :  { %v3991_v45 = vadd.f32 %v3983_v10, %v7927_v18  ;;  %v3936_v46 = vpop.f32.mrb[95].mxu0  ;;  %v3977_v47 = vpop.f32.mrb[95].mxu1  ;;  %v3993_v55 = vadd.f32 %v3985_v53, %v7935_v0  ;;  %v8239_v10 = vld [vmem:[#allocation11 + $0x84] ss:$16 sps:$4 sm:$0xff]   ;;  %v8242_v13 = vld [vmem:[#allocation11 + $0x8c] ss:$16 sps:$4 sm:$0xff]  }
0x1746   :  { %v3992_v48 = vadd.f32 %v3984_v36, %v7930_v63  ;;  %v3994_v56 = vadd.f32 %v3986_v54, %v7939_v1  ;;  %v8245_v34 = vld [vmem:[#allocation11 + $0x80] ss:$16 sps:$4 sm:$0xff]   ;;  %v8248_v36 = vld [vmem:[#allocation11 + $0x88] ss:$16 sps:$4 sm:$0xff]   ;;  %v8251_v43 = vld [vmem:[#allocation11 + $0xa4] ss:$16 sps:$4 sm:$0xff]  }
0x1747   :  { %v5582_v51 = vmul.f32 -1.442695, %v3991_v45  ;;  %v5584_v57 = vmul.f32 -1.442695, %v3993_v55  ;;  %v8254_v44 = vld [vmem:[#allocation11 + $0xac] ss:$16 sps:$4 sm:$0xff]  }
0x1748   :  { %v5583_v52 = vmul.f32 -1.442695, %v3992_v48  ;;  %v8257_v45 = vld [vmem:[#allocation11 + $0xa0] ss:$16 sps:$4 sm:$0xff]   ;;  %v8260_v46 = vld [vmem:[#allocation11 + $0xa8] ss:$16 sps:$4 sm:$0xff]  }
0x1749   :  { %6159 = vpow2.f32 %v5582_v51  ;;  %v8263_v47 = vld [vmem:[#allocation11 + $0xc4] ss:$16 sps:$4 sm:$0xff]   ;;  %v8266_v48 = vld [vmem:[#allocation11 + $0xcc] ss:$16 sps:$4 sm:$0xff]   ;;  %v8269_v51 = vld [vmem:[#allocation11 + $0xc0] ss:$16 sps:$4 sm:$0xff]  }
0x174a   :  { %6161 = vpow2.f32 %v5583_v52  ;;  %v8272_v52 = vld [vmem:[#allocation11 + $0xc8] ss:$16 sps:$4 sm:$0xff]   ;;  %v8275_v53 = vld [vmem:[#allocation11 + $0xe4] ss:$16 sps:$4 sm:$0xff]   ;;  %v8278_v54 = vld [vmem:[#allocation11 + $0xec] ss:$16 sps:$4 sm:$0xff]  }
0x174b   :  { %6163 = vtanh.f32 %v3994_v56  ;;  %v8281_v55 = vld [vmem:[#allocation11 + $0xe0] ss:$16 sps:$4 sm:$0xff]   ;;  %v8284_v56 = vld [vmem:[#allocation11 + $0xe8] ss:$16 sps:$4 sm:$0xff]  }
0x174c   :  { %6165 = vpow2.f32 %v5584_v57 }
0x1753   :  { %v6160_v22 = vpop.eup %6159 }
0x1754   :  { %v4004_v40 = vadd.f32 1.0, %v6160_v22  ;;  %v6162_v39 = vpop.eup %6161 }
0x1755   :  { %v4005_v8 = vadd.f32 1.0, %v6162_v39  ;;  %v6164_v24 = vpop.eup %6163 }
0x1756   :  { %6167 = vrcp.f32 %v4004_v40  ;;  %v6166_v7 = vpop.eup %6165 }
0x1757   :  { %6169 = vrcp.f32 %v4005_v8  ;;  %v4006_v60 = vadd.f32 1.0, %v6166_v7 }
0x1759   :  { %6171 = vrcp.f32 %v4006_v60 }
0x1760   :  { %v6168_v58 = vpop.eup %6167 }
0x1761   :  { %v4018_v29 = vmul.f32 %v6168_v58, %v6164_v24  ;;  %v6170_v5 = vpop.eup %6169 }
0x1762   :  { %v4017_v42 = vmul.f32 %v6170_v5, %v4015_v61 }
0x1763   :  { %v6172_v50 = vpop.eup %6171 }
0x1764   :  { %v8185_v37 = vadd.f32 %v4018_v29, %v4017_v42 }
0x1766   :  { %6173 = vtanh.f32 %v8185_v37 }
0x1770   :  { %v6174_v21 = vpop.eup %6173 }
0x1771   :  { %v4021_v16 = vmul.f32 %v6174_v21, %v6172_v50 }
0x1773   :  { %v8188_v32 = vpack.c.bf16 %v4021_v16, %v4021_v16 }
0x1775   :  { %v4024_v9 = vshrl.u32 %v8188_v32, 16  ;;  %v5334_v31 = vsel %vm7220_vm8, %v8144_v38, %v8188_v32 }
0x1777   :  { %v4026_v26 = vrot.slane %v4024_v9, 2 }
0x1779   :  { %4061 = vmatmul.mubr.bf16.vlgmr.msra.gmra.mrb[96].mxu0 %v4026_v26  ;;  %4102 = vmatmul.mubr.bf16.vlgmr.msra.gmra.mrb[96].mxu1 %v4026_v26 }
0x177a   :  { %4158 = vmatpush1.bf16.msra.mxu0 %v8195_v41  ;;  %4199 = vmatpush1.bf16.msra.mxu1 %v8198_v33 }
0x177b   :  { %4159 = vmatprep.subr.bf16.mxu0 %v8201_v20  ;;  %4200 = vmatprep.subr.bf16.mxu1 %v8204_v28 }
0x177c   :  { %4189 = vmatprep.mubr.bf16.mxu0 %v8800_v27  ;;  %4230 = vmatprep.mubr.bf16.mxu1 %v8800_v27 }
0x177e   :  { %4160 = vmatpush1.bf16.msra.mxu0 %v8209_v4  ;;  %4201 = vmatpush1.bf16.msra.mxu1 %v8212_v3 }
0x177f   :  { %4161 = vmatprep.subr.bf16.mxu0 %v8215_v25  ;;  %4202 = vmatprep.subr.bf16.mxu1 %v8218_v49 }
0x1782   :  { %4162 = vmatpush1.bf16.msra.mxu0 %v8221_v15  ;;  %4203 = vmatpush1.bf16.msra.mxu1 %v8224_v17 }
0x1783   :  { %4163 = vmatprep.subr.bf16.mxu0 %v8227_v35  ;;  %4204 = vmatprep.subr.bf16.mxu1 %v8230_v11 }
0x1786   :  { %4164 = vmatpush1.bf16.msra.mxu0 %v8233_v19  ;;  %4205 = vmatpush1.bf16.msra.mxu1 %v8236_v14 }
0x1787   :  { %4165 = vmatprep.subr.bf16.mxu0 %v8239_v10  ;;  %4206 = vmatprep.subr.bf16.mxu1 %v8242_v13 }
0x178a   :  { %4166 = vmatpush1.bf16.msra.mxu0 %v8245_v34  ;;  %4207 = vmatpush1.bf16.msra.mxu1 %v8248_v36 }
0x178b   :  { %4167 = vmatprep.subr.bf16.mxu0 %v8251_v43  ;;  %4208 = vmatprep.subr.bf16.mxu1 %v8254_v44 }
0x178e   :  { %4168 = vmatpush1.bf16.msra.mxu0 %v8257_v45  ;;  %4209 = vmatpush1.bf16.msra.mxu1 %v8260_v46 }
0x178f   :  { %4169 = vmatprep.subr.bf16.mxu0 %v8263_v47  ;;  %4210 = vmatprep.subr.bf16.mxu1 %v8266_v48 }
0x1792   :  { %4170 = vmatpush1.bf16.msra.mxu0 %v8269_v51  ;;  %4211 = vmatpush1.bf16.msra.mxu1 %v8272_v52 }
0x1793   :  { %4171 = vmatprep.subr.bf16.mxu0 %v8275_v53  ;;  %4212 = vmatprep.subr.bf16.mxu1 %v8278_v54 }
0x1796   :  { %4172 = vmatpush1.bf16.msra.mxu0 %v8281_v55  ;;  %4213 = vmatpush1.bf16.msra.mxu1 %v8284_v56 }
0x1797   :  { %4288 = vmatprep.subr.bf16.mxu0 %v8124_v23  ;;  %4329 = vmatprep.subr.bf16.mxu1 %v8127_v59 }
0x184c   :  { %v4062_v57 = vpop.f32.mrb[96].mxu0  ;;  %v4103_v22 = vpop.f32.mrb[96].mxu1 }
0x184d   :  { %v4114_v40 = vrot.slane %v4062_v57, 2  ;;  %v4064_v39 = vpop.f32.mrb[97].mxu0  ;;  %v4105_v8 = vpop.f32.mrb[97].mxu1  ;;  %v4116_v21 = vrot.slane %v4103_v22, 2  ;;  %v4146_v22 = vrot.slane %v8185_v37, 7 }
0x184e   :  { %v4115_v24 = vrot.slane %v4064_v39, 2  ;;  %v4066_v7 = vpop.f32.mrb[98].mxu0  ;;  %v4107_v58 = vpop.f32.mrb[98].mxu1  ;;  %v4117_v16 = vrot.slane %v4105_v8, 2 }
0x184f   :  { %v4122_v61 = vadd.f32 %v4114_v40, %v7927_v18  ;;  %v4067_v29 = vpop.f32.mrb[99].mxu0  ;;  %v4108_v5 = vpop.f32.mrb[99].mxu1  ;;  %v4124_v9 = vadd.f32 %v4116_v21, %v7935_v0 }
0x1850   :  { %v4123_v60 = vadd.f32 %v4115_v24, %v7930_v63  ;;  %v4125_v26 = vadd.f32 %v4117_v16, %v7939_v1 }
0x1851   :  { %v5585_v42 = vmul.f32 -1.442695, %v4122_v61  ;;  %v5587_v57 = vmul.f32 -1.442695, %v4124_v9 }
0x1852   :  { %v5586_v50 = vmul.f32 -1.442695, %v4123_v60 }
0x1853   :  { %6175 = vpow2.f32 %v5585_v42 }
0x1854   :  { %6177 = vpow2.f32 %v5586_v50 }
0x1855   :  { %6179 = vtanh.f32 %v4125_v26 }
0x1856   :  { %6181 = vpow2.f32 %v5587_v57 }
0x185d   :  { %v6176_v39 = vpop.eup %6175 }
0x185e   :  { %v4135_v7 = vadd.f32 1.0, %v6176_v39  ;;  %v6178_v58 = vpop.eup %6177 }
0x185f   :  { %v4136_v40 = vadd.f32 1.0, %v6178_v58  ;;  %v6180_v24 = vpop.eup %6179 }
0x1860   :  { %6183 = vrcp.f32 %v4135_v7  ;;  %v6182_v61 = vpop.eup %6181 }
0x1861   :  { %6185 = vrcp.f32 %v4136_v40  ;;  %v4137_v60 = vadd.f32 1.0, %v6182_v61 }
0x1863   :  { %6187 = vrcp.f32 %v4137_v60 }
0x186a   :  { %v6184_v29 = vpop.eup %6183 }
0x186b   :  { %v4149_v5 = vmul.f32 %v6184_v29, %v6180_v24  ;;  %v6186_v8 = vpop.eup %6185 }
0x186c   :  { %v4148_v42 = vmul.f32 %v6186_v8, %v4146_v22 }
0x186d   :  { %v6188_v21 = vpop.eup %6187 }
0x186e   :  { %v8294_v50 = vadd.f32 %v4149_v5, %v4148_v42 }
0x1870   :  { %6189 = vtanh.f32 %v8294_v50 }
0x187a   :  { %v6190_v16 = vpop.eup %6189 }
0x187b   :  { %v4152_v9 = vmul.f32 %v6190_v16, %v6188_v21 }
0x187d   :  { %v4153_v26 = vpack.c.bf16 %v4152_v9, %v4152_v9 }
0x187f   :  { %v4155_v57 = vrot.slane %v4153_v26, 3  ;;  %v8303_v37 = vsel %vm2689_vm6, %v5334_v31, %v4153_v26 }
0x1881   :  { %4190 = vmatmul.mubr.bf16.vlgmr.msra.gmra.mrb[100].mxu0 %v4155_v57  ;;  %4231 = vmatmul.mubr.bf16.vlgmr.msra.gmra.mrb[100].mxu1 %v4155_v57 }
0x1882   :  { %4289 = vmatpush1.bf16.msra.mxu0 %v8195_v41  ;;  %4330 = vmatpush1.bf16.msra.mxu1 %v8198_v33 }
0x1883   :  { %4290 = vmatprep.subr.bf16.mxu0 %v8201_v20  ;;  %4331 = vmatprep.subr.bf16.mxu1 %v8204_v28 }
0x1884   :  { %4320 = vmatprep.mubr.bf16.mxu0 %v8800_v27  ;;  %4361 = vmatprep.mubr.bf16.mxu1 %v8800_v27 }
0x1886   :  { %4291 = vmatpush1.bf16.msra.mxu0 %v8209_v4  ;;  %4332 = vmatpush1.bf16.msra.mxu1 %v8212_v3 }
0x1887   :  { %4292 = vmatprep.subr.bf16.mxu0 %v8215_v25  ;;  %4333 = vmatprep.subr.bf16.mxu1 %v8218_v49 }
0x188a   :  { %4293 = vmatpush1.bf16.msra.mxu0 %v8221_v15  ;;  %4334 = vmatpush1.bf16.msra.mxu1 %v8224_v17 }
0x188b   :  { %4294 = vmatprep.subr.bf16.mxu0 %v8227_v35  ;;  %4335 = vmatprep.subr.bf16.mxu1 %v8230_v11 }
0x188e   :  { %4295 = vmatpush1.bf16.msra.mxu0 %v8233_v19  ;;  %4336 = vmatpush1.bf16.msra.mxu1 %v8236_v14 }
0x188f   :  { %4296 = vmatprep.subr.bf16.mxu0 %v8239_v10  ;;  %4337 = vmatprep.subr.bf16.mxu1 %v8242_v13 }
0x1892   :  { %4297 = vmatpush1.bf16.msra.mxu0 %v8245_v34  ;;  %4338 = vmatpush1.bf16.msra.mxu1 %v8248_v36 }
0x1893   :  { %4298 = vmatprep.subr.bf16.mxu0 %v8251_v43  ;;  %4339 = vmatprep.subr.bf16.mxu1 %v8254_v44 }
0x1896   :  { %4299 = vmatpush1.bf16.msra.mxu0 %v8257_v45  ;;  %4340 = vmatpush1.bf16.msra.mxu1 %v8260_v46 }
0x1897   :  { %4300 = vmatprep.subr.bf16.mxu0 %v8263_v47  ;;  %4341 = vmatprep.subr.bf16.mxu1 %v8266_v48 }
0x189a   :  { %4301 = vmatpush1.bf16.msra.mxu0 %v8269_v51  ;;  %4342 = vmatpush1.bf16.msra.mxu1 %v8272_v52 }
0x189b   :  { %4302 = vmatprep.subr.bf16.mxu0 %v8275_v53  ;;  %4343 = vmatprep.subr.bf16.mxu1 %v8278_v54 }
0x189e   :  { %4303 = vmatpush1.bf16.msra.mxu0 %v8281_v55  ;;  %4344 = vmatpush1.bf16.msra.mxu1 %v8284_v56 }
0x189f   :  { %4402 = vmatprep.subr.bf16.mxu0 %v8124_v23  ;;  %4443 = vmatprep.subr.bf16.mxu1 %v8127_v59 }
0x1954   :  { %v4191_v12 = vpop.f32.mrb[100].mxu0  ;;  %v4232_v38 = vpop.f32.mrb[100].mxu1 }
0x1955   :  { %v4243_v32 = vrot.slane %v4191_v12, 1  ;;  %v4193_v31 = vpop.f32.mrb[101].mxu0  ;;  %v4234_v39 = vpop.f32.mrb[101].mxu1  ;;  %v4245_v60 = vrot.slane %v4232_v38, 1  ;;  %v4275_v38 = vrot.slane %v8294_v50, 7 }
0x1956   :  { %v4244_v7 = vrot.slane %v4193_v31, 1  ;;  %v4195_v58 = vpop.f32.mrb[102].mxu0  ;;  %v4236_v40 = vpop.f32.mrb[102].mxu1  ;;  %v4246_v42 = vrot.slane %v4234_v39, 1 }
0x1957   :  { %v4251_v24 = vadd.f32 %v4243_v32, %v7927_v18  ;;  %v4196_v61 = vpop.f32.mrb[103].mxu0  ;;  %v4237_v29 = vpop.f32.mrb[103].mxu1  ;;  %v4253_v21 = vadd.f32 %v4245_v60, %v7935_v0  ;;  %v8392_v60 = vunpack.c.h.bf16 %v7922_v6 }
0x1958   :  { %v4252_v22 = vadd.f32 %v4244_v7, %v7930_v63  ;;  %v4254_v16 = vadd.f32 %v4246_v42, %v7939_v1 }
0x1959   :  { %v5588_v5 = vmul.f32 -1.442695, %v4251_v24  ;;  %v5590_v9 = vmul.f32 -1.442695, %v4253_v21 }
0x195a   :  { %v5589_v8 = vmul.f32 -1.442695, %v4252_v22 }
0x195b   :  { %6191 = vpow2.f32 %v5588_v5 }
0x195c   :  { %6193 = vpow2.f32 %v5589_v8  ;;  %v8389_v8 = vunpack.c.h.bf16 %v7918_v62  ;;  %v8397_v62 = vunpack.c.h.bf16 %v7920_v2 }
0x195d   :  { %6195 = vtanh.f32 %v4254_v16 }
0x195e   :  { %6197 = vpow2.f32 %v5590_v9 }
0x1965   :  { %v6192_v26 = vpop.eup %6191 }
0x1966   :  { %v4264_v57 = vadd.f32 1.0, %v6192_v26  ;;  %v6194_v12 = vpop.eup %6193 }
0x1967   :  { %v4265_v18 = vadd.f32 1.0, %v6194_v12  ;;  %v6196_v63 = vpop.eup %6195 }
0x1968   :  { %6199 = vrcp.f32 %v4264_v57  ;;  %v6198_v32 = vpop.eup %6197 }
0x1969   :  { %6201 = vrcp.f32 %v4265_v18  ;;  %v4266_v58 = vadd.f32 1.0, %v6198_v32 }
0x196b   :  { %6203 = vrcp.f32 %v4266_v58 }
0x1972   :  { %v6200_v31 = vpop.eup %6199 }
0x1973   :  { %v4278_v7 = vmul.f32 %v6200_v31, %v6196_v63  ;;  %v6202_v39 = vpop.eup %6201 }
0x1974   :  { %v4277_v0 = vmul.f32 %v6202_v39, %v4275_v38 }
0x1975   :  { %v6204_v1 = vpop.eup %6203 }
0x1976   :  { %v8344_v40 = vadd.f32 %v4278_v7, %v4277_v0  ;;  %v8822_v7 = vld [vmem:[#allocation22_spill] sm:$0xff] }
0x1977   :  { %v8401_v39 = vunpack.c.h.bf16 %v8822_v7 }
0x1978   :  { %6205 = vtanh.f32 %v8344_v40 }
0x1982   :  { %v6206_v24 = vpop.eup %6205 }
0x1983   :  { %v4281_v61 = vmul.f32 %v6206_v24, %v6204_v1 }
0x1985   :  { %v8347_v29 = vpack.c.bf16 %v4281_v61, %v4281_v61 }
0x1987   :  { %v4284_v22 = vshrl.u32 %v8347_v29, 16  ;;  %v5339_v50 = vsel %vm7328_vm11, %v8303_v37, %v8347_v29 }
0x1989   :  { %v4286_v5 = vrot.slane %v4284_v22, 3 }
0x198b   :  { %4321 = vmatmul.mubr.bf16.vlgmr.msra.gmra.mrb[104].mxu0 %v4286_v5  ;;  %4362 = vmatmul.mubr.bf16.vlgmr.msra.gmra.mrb[104].mxu1 %v4286_v5 }
0x198c   :  { %4403 = vmatpush1.bf16.msra.mxu0 %v8195_v41  ;;  %4444 = vmatpush1.bf16.msra.mxu1 %v8198_v33 }
0x198d   :  { %4404 = vmatprep.subr.bf16.mxu0 %v8201_v20  ;;  %4445 = vmatprep.subr.bf16.mxu1 %v8204_v28 }
0x198e   :  { %4434 = vmatprep.mubr.bf16.mxu0 %v8800_v27  ;;  %4475 = vmatprep.mubr.bf16.mxu1 %v8800_v27 }
0x1990   :  { %4405 = vmatpush1.bf16.msra.mxu0 %v8209_v4  ;;  %4446 = vmatpush1.bf16.msra.mxu1 %v8212_v3 }
0x1991   :  { %4406 = vmatprep.subr.bf16.mxu0 %v8215_v25  ;;  %4447 = vmatprep.subr.bf16.mxu1 %v8218_v49 }
0x1994   :  { %4407 = vmatpush1.bf16.msra.mxu0 %v8221_v15  ;;  %4448 = vmatpush1.bf16.msra.mxu1 %v8224_v17 }
0x1995   :  { %4408 = vmatprep.subr.bf16.mxu0 %v8227_v35  ;;  %4449 = vmatprep.subr.bf16.mxu1 %v8230_v11 }
0x1998   :  { %4409 = vmatpush1.bf16.msra.mxu0 %v8233_v19  ;;  %4450 = vmatpush1.bf16.msra.mxu1 %v8236_v14 }
0x1999   :  { %4410 = vmatprep.subr.bf16.mxu0 %v8239_v10  ;;  %4451 = vmatprep.subr.bf16.mxu1 %v8242_v13 }
0x199c   :  { %4411 = vmatpush1.bf16.msra.mxu0 %v8245_v34  ;;  %4452 = vmatpush1.bf16.msra.mxu1 %v8248_v36 }
0x199d   :  { %4412 = vmatprep.subr.bf16.mxu0 %v8251_v43  ;;  %4453 = vmatprep.subr.bf16.mxu1 %v8254_v44 }
0x19a0   :  { %4413 = vmatpush1.bf16.msra.mxu0 %v8257_v45  ;;  %4454 = vmatpush1.bf16.msra.mxu1 %v8260_v46 }
0x19a1   :  { %4414 = vmatprep.subr.bf16.mxu0 %v8263_v47  ;;  %4455 = vmatprep.subr.bf16.mxu1 %v8266_v48 }
0x19a4   :  { %4415 = vmatpush1.bf16.msra.mxu0 %v8269_v51  ;;  %4456 = vmatpush1.bf16.msra.mxu1 %v8272_v52 }
0x19a5   :  { %4416 = vmatprep.subr.bf16.mxu0 %v8275_v53  ;;  %4457 = vmatprep.subr.bf16.mxu1 %v8278_v54 }
0x19a8   :  { %4417 = vmatpush1.bf16.msra.mxu0 %v8281_v55  ;;  %4458 = vmatpush1.bf16.msra.mxu1 %v8284_v56 }
0x19a9   :  { %4532 = vmatprep.subr.bf16.mxu0 %v8124_v23  ;;  %4573 = vmatprep.subr.bf16.mxu1 %v8127_v59 }
0x1a5e   :  { %v4322_v42 = vpop.f32.mrb[104].mxu0  ;;  %v4363_v21 = vpop.f32.mrb[104].mxu1 }
0x1a5f   :  { %v4370_v16 = vadd.f32 %v4322_v42, %v8389_v8  ;;  %v4324_v9 = vpop.f32.mrb[105].mxu0  ;;  %v4365_v26 = vpop.f32.mrb[105].mxu1  ;;  %v4372_v6 = vadd.f32 %v4363_v21, %v8397_v62 }
0x1a60   :  { %v4371_v57 = vadd.f32 %v4324_v9, %v8392_v60  ;;  %v4326_v12 = vpop.f32.mrb[106].mxu0  ;;  %v4367_v18 = vpop.f32.mrb[106].mxu1  ;;  %v4373_v58 = vadd.f32 %v4365_v26, %v8401_v39 }
0x1a61   :  { %v5591_v63 = vmul.f32 -1.442695, %v4370_v16  ;;  %v4327_v32 = vpop.f32.mrb[107].mxu0  ;;  %v4368_v31 = vpop.f32.mrb[107].mxu1  ;;  %v5593_v0 = vmul.f32 -1.442695, %v4372_v6 }
0x1a62   :  { %v5592_v38 = vmul.f32 -1.442695, %v4371_v57  ;;  %v4394_v16 = vrot.slane %v8344_v40, 7 }
0x1a63   :  { %6207 = vpow2.f32 %v5591_v63 }
0x1a64   :  { %6209 = vpow2.f32 %v5592_v38 }
0x1a65   :  { %6211 = vtanh.f32 %v4373_v58 }
0x1a66   :  { %6213 = vpow2.f32 %v5593_v0 }
0x1a6d   :  { %v6208_v1 = vpop.eup %6207 }
0x1a6e   :  { %v4383_v24 = vadd.f32 1.0, %v6208_v1  ;;  %v6210_v61 = vpop.eup %6209 }
0x1a6f   :  { %v4384_v22 = vadd.f32 1.0, %v6210_v61  ;;  %v6212_v5 = vpop.eup %6211 }
0x1a70   :  { %6215 = vrcp.f32 %v4383_v24  ;;  %v6214_v2 = vpop.eup %6213 }
0x1a71   :  { %6217 = vrcp.f32 %v4384_v22  ;;  %v4385_v57 = vadd.f32 1.0, %v6214_v2 }
0x1a73   :  { %6219 = vrcp.f32 %v4385_v57 }
0x1a7a   :  { %v6216_v42 = vpop.eup %6215 }
0x1a7b   :  { %v4397_v21 = vmul.f32 %v6216_v42, %v6212_v5  ;;  %v6218_v9 = vpop.eup %6217 }
0x1a7c   :  { %v4396_v12 = vmul.f32 %v6218_v9, %v4394_v16 }
0x1a7d   :  { %v6220_v26 = vpop.eup %6219 }
0x1a7e   :  { %v8405_v18 = vadd.f32 %v4397_v21, %v4396_v12 }
0x1a80   :  { %6221 = vtanh.f32 %v8405_v18 }
0x1a8a   :  { %v6222_v63 = vpop.eup %6221 }
0x1a8b   :  { %v4400_v32 = vmul.f32 %v6222_v63, %v6220_v26 }
0x1a8d   :  { %v4401_v31 = vpack.c.bf16 %v4400_v32, %v4400_v32 }
0x1a8f   :  { %4435 = vmatmul.mubr.bf16.vlgmr.msra.gmra.mrb[108].mxu0 %v4401_v31  ;;  %v5308_v38 = vrot.slane %v4401_v31, 4  ;;  %4476 = vmatmul.mubr.bf16.vlgmr.msra.gmra.mrb[108].mxu1 %v4401_v31 }
0x1a90   :  { %4533 = vmatpush1.bf16.msra.mxu0 %v8195_v41  ;;  %4574 = vmatpush1.bf16.msra.mxu1 %v8198_v33 }
0x1a91   :  { %v8416_v40 = vsel %vm2698_vm9, %v5339_v50, %v5308_v38  ;;  %4534 = vmatprep.subr.bf16.mxu0 %v8201_v20  ;;  %4575 = vmatprep.subr.bf16.mxu1 %v8204_v28 }
0x1a92   :  { %4564 = vmatprep.mubr.bf16.mxu0 %v8800_v27  ;;  %4605 = vmatprep.mubr.bf16.mxu1 %v8800_v27 }
0x1a94   :  { %4535 = vmatpush1.bf16.msra.mxu0 %v8209_v4  ;;  %4576 = vmatpush1.bf16.msra.mxu1 %v8212_v3 }
0x1a95   :  { %4536 = vmatprep.subr.bf16.mxu0 %v8215_v25  ;;  %4577 = vmatprep.subr.bf16.mxu1 %v8218_v49 }
0x1a98   :  { %4537 = vmatpush1.bf16.msra.mxu0 %v8221_v15  ;;  %4578 = vmatpush1.bf16.msra.mxu1 %v8224_v17 }
0x1a99   :  { %4538 = vmatprep.subr.bf16.mxu0 %v8227_v35  ;;  %4579 = vmatprep.subr.bf16.mxu1 %v8230_v11 }
0x1a9c   :  { %4539 = vmatpush1.bf16.msra.mxu0 %v8233_v19  ;;  %4580 = vmatpush1.bf16.msra.mxu1 %v8236_v14 }
0x1a9d   :  { %4540 = vmatprep.subr.bf16.mxu0 %v8239_v10  ;;  %4581 = vmatprep.subr.bf16.mxu1 %v8242_v13 }
0x1aa0   :  { %4541 = vmatpush1.bf16.msra.mxu0 %v8245_v34  ;;  %4582 = vmatpush1.bf16.msra.mxu1 %v8248_v36 }
0x1aa1   :  { %4542 = vmatprep.subr.bf16.mxu0 %v8251_v43  ;;  %4583 = vmatprep.subr.bf16.mxu1 %v8254_v44 }
0x1aa4   :  { %4543 = vmatpush1.bf16.msra.mxu0 %v8257_v45  ;;  %4584 = vmatpush1.bf16.msra.mxu1 %v8260_v46 }
0x1aa5   :  { %4544 = vmatprep.subr.bf16.mxu0 %v8263_v47  ;;  %4585 = vmatprep.subr.bf16.mxu1 %v8266_v48 }
0x1aa8   :  { %4545 = vmatpush1.bf16.msra.mxu0 %v8269_v51  ;;  %4586 = vmatpush1.bf16.msra.mxu1 %v8272_v52 }
0x1aa9   :  { %4546 = vmatprep.subr.bf16.mxu0 %v8275_v53  ;;  %4587 = vmatprep.subr.bf16.mxu1 %v8278_v54 }
0x1aac   :  { %4547 = vmatpush1.bf16.msra.mxu0 %v8281_v55  ;;  %4588 = vmatpush1.bf16.msra.mxu1 %v8284_v56 }
0x1aad   :  { %4661 = vmatprep.subr.bf16.mxu0 %v8124_v23  ;;  %4702 = vmatprep.subr.bf16.mxu1 %v8127_v59 }
0x1b62   :  { %v4436_v30 = vpop.f32.mrb[108].mxu0  ;;  %v4477_v37 = vpop.f32.mrb[108].mxu1 }
0x1b63   :  { %v4488_v29 = vrot.slane %v4436_v30, 7  ;;  %v4438_v50 = vpop.f32.mrb[109].mxu0  ;;  %v4479_v6 = vpop.f32.mrb[109].mxu1  ;;  %v4490_v42 = vrot.slane %v4477_v37, 7  ;;  %v4520_v37 = vrot.slane %v8405_v18, 7 }
0x1b64   :  { %v4489_v7 = vrot.slane %v4438_v50, 7  ;;  %v4440_v58 = vpop.f32.mrb[110].mxu0  ;;  %v4481_v0 = vpop.f32.mrb[110].mxu1  ;;  %v4491_v16 = vrot.slane %v4479_v6, 7 }
0x1b65   :  { %v4496_v1 = vadd.f32 %v4488_v29, %v8389_v8  ;;  %v4441_v24 = vpop.f32.mrb[111].mxu0  ;;  %v4482_v61 = vpop.f32.mrb[111].mxu1  ;;  %v4498_v21 = vadd.f32 %v4490_v42, %v8397_v62 }
0x1b66   :  { %v4497_v22 = vadd.f32 %v4489_v7, %v8392_v60  ;;  %v4499_v9 = vadd.f32 %v4491_v16, %v8401_v39 }
0x1b67   :  { %v5594_v5 = vmul.f32 -1.442695, %v4496_v1  ;;  %v5596_v57 = vmul.f32 -1.442695, %v4498_v21 }
0x1b68   :  { %v5595_v2 = vmul.f32 -1.442695, %v4497_v22 }
0x1b69   :  { %6223 = vpow2.f32 %v5594_v5 }
0x1b6a   :  { %6225 = vpow2.f32 %v5595_v2 }
0x1b6b   :  { %6227 = vtanh.f32 %v4499_v9 }
0x1b6c   :  { %6229 = vpow2.f32 %v5596_v57 }
0x1b73   :  { %v6224_v12 = vpop.eup %6223 }
0x1b74   :  { %v4509_v26 = vadd.f32 1.0, %v6224_v12  ;;  %v6226_v63 = vpop.eup %6225 }
0x1b75   :  { %v4510_v32 = vadd.f32 1.0, %v6226_v63  ;;  %v6228_v31 = vpop.eup %6227 }
0x1b76   :  { %6231 = vrcp.f32 %v4509_v26  ;;  %v6230_v38 = vpop.eup %6229 }
0x1b77   :  { %6233 = vrcp.f32 %v4510_v32  ;;  %v4511_v6 = vadd.f32 1.0, %v6230_v38 }
0x1b79   :  { %6235 = vrcp.f32 %v4511_v6 }
0x1b80   :  { %v6232_v30 = vpop.eup %6231 }
0x1b81   :  { %v4523_v29 = vmul.f32 %v6232_v30, %v6228_v31  ;;  %v6234_v50 = vpop.eup %6233 }
0x1b82   :  { %v4522_v7 = vmul.f32 %v6234_v50, %v4520_v37 }
0x1b83   :  { %v6236_v0 = vpop.eup %6235 }
0x1b84   :  { %v8455_v58 = vadd.f32 %v4523_v29, %v4522_v7 }
0x1b86   :  { %6237 = vtanh.f32 %v8455_v58  ;;  %v4650_v2 = vrot.slane %v8455_v58, 7  ;;  %v8541_v58 = vld [vmem:[#allocation11 + $0x4] ss:$16 sps:$4 sm:$0xff]  }
0x1b90   :  { %v6238_v1 = vpop.eup %6237 }
0x1b91   :  { %v4526_v24 = vmul.f32 %v6238_v1, %v6236_v0 }
0x1b93   :  { %v4527_v61 = vpack.c.bf16 %v4526_v24, %v4526_v24 }
0x1b95   :  { %v4529_v22 = vshrl.u32 %v4527_v61, 16  ;;  %v5310_v5 = vrot.slane %v4527_v61, 4 }
0x1b97   :  { %4565 = vmatmul.mubr.bf16.vlgmr.msra.gmra.mrb[112].mxu0 %v4529_v22  ;;  %v8461_v18 = vsel %vm7444_vm14, %v8416_v40, %v5310_v5  ;;  %4606 = vmatmul.mubr.bf16.vlgmr.msra.gmra.mrb[112].mxu1 %v4529_v22 }
0x1b98   :  { %4662 = vmatpush1.bf16.msra.mxu0 %v8195_v41  ;;  %4703 = vmatpush1.bf16.msra.mxu1 %v8198_v33 }
0x1b99   :  { %4663 = vmatprep.subr.bf16.mxu0 %v8201_v20  ;;  %4704 = vmatprep.subr.bf16.mxu1 %v8204_v28 }
0x1b9a   :  { %4693 = vmatprep.mubr.bf16.mxu0 %v8800_v27  ;;  %4734 = vmatprep.mubr.bf16.mxu1 %v8800_v27 }
0x1b9c   :  { %4664 = vmatpush1.bf16.msra.mxu0 %v8209_v4  ;;  %4705 = vmatpush1.bf16.msra.mxu1 %v8212_v3 }
0x1b9d   :  { %4665 = vmatprep.subr.bf16.mxu0 %v8215_v25  ;;  %4706 = vmatprep.subr.bf16.mxu1 %v8218_v49 }
0x1ba0   :  { %4666 = vmatpush1.bf16.msra.mxu0 %v8221_v15  ;;  %4707 = vmatpush1.bf16.msra.mxu1 %v8224_v17 }
0x1ba1   :  { %4667 = vmatprep.subr.bf16.mxu0 %v8227_v35  ;;  %4708 = vmatprep.subr.bf16.mxu1 %v8230_v11 }
0x1ba4   :  { %4668 = vmatpush1.bf16.msra.mxu0 %v8233_v19  ;;  %4709 = vmatpush1.bf16.msra.mxu1 %v8236_v14 }
0x1ba5   :  { %4669 = vmatprep.subr.bf16.mxu0 %v8239_v10  ;;  %4710 = vmatprep.subr.bf16.mxu1 %v8242_v13 }
0x1ba8   :  { %4670 = vmatpush1.bf16.msra.mxu0 %v8245_v34  ;;  %4711 = vmatpush1.bf16.msra.mxu1 %v8248_v36 }
0x1ba9   :  { %4671 = vmatprep.subr.bf16.mxu0 %v8251_v43  ;;  %4712 = vmatprep.subr.bf16.mxu1 %v8254_v44 }
0x1bac   :  { %4672 = vmatpush1.bf16.msra.mxu0 %v8257_v45  ;;  %4713 = vmatpush1.bf16.msra.mxu1 %v8260_v46 }
0x1bad   :  { %4673 = vmatprep.subr.bf16.mxu0 %v8263_v47  ;;  %4714 = vmatprep.subr.bf16.mxu1 %v8266_v48 }
0x1bb0   :  { %4674 = vmatpush1.bf16.msra.mxu0 %v8269_v51  ;;  %4715 = vmatpush1.bf16.msra.mxu1 %v8272_v52 }
0x1bb1   :  { %4675 = vmatprep.subr.bf16.mxu0 %v8275_v53  ;;  %4716 = vmatprep.subr.bf16.mxu1 %v8278_v54 }
0x1bb4   :  { %4676 = vmatpush1.bf16.msra.mxu0 %v8281_v55  ;;  %4717 = vmatpush1.bf16.msra.mxu1 %v8284_v56 }
0x1bb5   :  { %4792 = vmatprep.subr.bf16.mxu0 %v8124_v23  ;;  %4833 = vmatprep.subr.bf16.mxu1 %v8127_v59 }
0x1c6a   :  { %v4566_v40 = vpop.f32.mrb[112].mxu0  ;;  %v4607_v42 = vpop.f32.mrb[112].mxu1 }
0x1c6b   :  { %v4618_v16 = vrot.slane %v4566_v40, 6  ;;  %v4568_v21 = vpop.f32.mrb[113].mxu0  ;;  %v4609_v9 = vpop.f32.mrb[113].mxu1  ;;  %v4620_v23 = vrot.slane %v4607_v42, 6 }
0x1c6c   :  { %v4619_v57 = vrot.slane %v4568_v21, 6  ;;  %v4570_v12 = vpop.f32.mrb[114].mxu0  ;;  %v4611_v26 = vpop.f32.mrb[114].mxu1  ;;  %v4621_v59 = vrot.slane %v4609_v9, 6 }
0x1c6d   :  { %v4626_v63 = vadd.f32 %v4618_v16, %v8389_v8  ;;  %v4571_v32 = vpop.f32.mrb[115].mxu0  ;;  %v4612_v31 = vpop.f32.mrb[115].mxu1  ;;  %v4628_v29 = vadd.f32 %v4620_v23, %v8397_v62 }
0x1c6e   :  { %v4627_v38 = vadd.f32 %v4619_v57, %v8392_v60  ;;  %v4629_v50 = vadd.f32 %v4621_v59, %v8401_v39 }
0x1c6f   :  { %v5597_v30 = vmul.f32 -1.442695, %v4626_v63  ;;  %v5599_v6 = vmul.f32 -1.442695, %v4628_v29 }
0x1c70   :  { %v5598_v37 = vmul.f32 -1.442695, %v4627_v38 }
0x1c71   :  { %6239 = vpow2.f32 %v5597_v30 }
0x1c72   :  { %6241 = vpow2.f32 %v5598_v37 }
0x1c73   :  { %6243 = vtanh.f32 %v4629_v50 }
0x1c74   :  { %6245 = vpow2.f32 %v5599_v6 }
0x1c7b   :  { %v6240_v7 = vpop.eup %6239 }
0x1c7c   :  { %v4639_v0 = vadd.f32 1.0, %v6240_v7  ;;  %v6242_v1 = vpop.eup %6241 }
0x1c7d   :  { %v4640_v24 = vadd.f32 1.0, %v6242_v1  ;;  %v6244_v61 = vpop.eup %6243 }
0x1c7e   :  { %6247 = vrcp.f32 %v4639_v0  ;;  %v6246_v22 = vpop.eup %6245 }
0x1c7f   :  { %6249 = vrcp.f32 %v4640_v24  ;;  %v4641_v16 = vadd.f32 1.0, %v6246_v22 }
0x1c81   :  { %6251 = vrcp.f32 %v4641_v16 }
0x1c88   :  { %v6248_v5 = vpop.eup %6247 }
0x1c89   :  { %v4653_v40 = vmul.f32 %v6248_v5, %v6244_v61  ;;  %v6250_v42 = vpop.eup %6249 }
0x1c8a   :  { %v4652_v21 = vmul.f32 %v6250_v42, %v4650_v2 }
0x1c8b   :  { %v6252_v57 = vpop.eup %6251 }
0x1c8c   :  { %v8502_v9 = vadd.f32 %v4653_v40, %v4652_v21 }
0x1c8e   :  { %6253 = vtanh.f32 %v8502_v9 }
0x1c98   :  { %v6254_v12 = vpop.eup %6253 }
0x1c99   :  { %v4656_v26 = vmul.f32 %v6254_v12, %v6252_v57 }
0x1c9b   :  { %v4657_v63 = vpack.c.bf16 %v4656_v26, %v4656_v26 }
0x1c9d   :  { %v4659_v32 = vrot.slane %v4657_v63, 1  ;;  %v5312_v31 = vrot.slane %v4657_v63, 4 }
0x1c9f   :  { %4694 = vmatmul.mubr.bf16.vlgmr.msra.gmra.mrb[116].mxu0 %v4659_v32  ;;  %v8507_v38 = vsel %vm2707_vm12, %v8461_v18, %v5312_v31  ;;  %4735 = vmatmul.mubr.bf16.vlgmr.msra.gmra.mrb[116].mxu1 %v4659_v32  ;;  %v8544_v18 = vld [vmem:[#allocation11 + $0xc] ss:$16 sps:$4 sm:$0xff]  }
0x1ca0   :  { %4793 = vmatpush1.bf16.msra.mxu0 %v8195_v41  ;;  %4834 = vmatpush1.bf16.msra.mxu1 %v8198_v33 }
0x1ca1   :  { %4794 = vmatprep.subr.bf16.mxu0 %v8201_v20  ;;  %4835 = vmatprep.subr.bf16.mxu1 %v8204_v28 }
0x1ca2   :  { %4824 = vmatprep.mubr.bf16.mxu0 %v8800_v27  ;;  %4865 = vmatprep.mubr.bf16.mxu1 %v8800_v27 }
0x1ca4   :  { %4795 = vmatpush1.bf16.msra.mxu0 %v8209_v4  ;;  %4836 = vmatpush1.bf16.msra.mxu1 %v8212_v3 }
0x1ca5   :  { %4796 = vmatprep.subr.bf16.mxu0 %v8215_v25  ;;  %4837 = vmatprep.subr.bf16.mxu1 %v8218_v49 }
0x1ca8   :  { %4797 = vmatpush1.bf16.msra.mxu0 %v8221_v15  ;;  %4838 = vmatpush1.bf16.msra.mxu1 %v8224_v17 }
0x1ca9   :  { %4798 = vmatprep.subr.bf16.mxu0 %v8227_v35  ;;  %4839 = vmatprep.subr.bf16.mxu1 %v8230_v11 }
0x1cac   :  { %4799 = vmatpush1.bf16.msra.mxu0 %v8233_v19  ;;  %4840 = vmatpush1.bf16.msra.mxu1 %v8236_v14 }
0x1cad   :  { %4800 = vmatprep.subr.bf16.mxu0 %v8239_v10  ;;  %4841 = vmatprep.subr.bf16.mxu1 %v8242_v13 }
0x1cb0   :  { %4801 = vmatpush1.bf16.msra.mxu0 %v8245_v34  ;;  %4842 = vmatpush1.bf16.msra.mxu1 %v8248_v36 }
0x1cb1   :  { %4802 = vmatprep.subr.bf16.mxu0 %v8251_v43  ;;  %4843 = vmatprep.subr.bf16.mxu1 %v8254_v44 }
0x1cb4   :  { %4803 = vmatpush1.bf16.msra.mxu0 %v8257_v45  ;;  %4844 = vmatpush1.bf16.msra.mxu1 %v8260_v46 }
0x1cb5   :  { %4804 = vmatprep.subr.bf16.mxu0 %v8263_v47  ;;  %4845 = vmatprep.subr.bf16.mxu1 %v8266_v48 }
0x1cb8   :  { %4805 = vmatpush1.bf16.msra.mxu0 %v8269_v51  ;;  %4846 = vmatpush1.bf16.msra.mxu1 %v8272_v52 }
0x1cb9   :  { %4806 = vmatprep.subr.bf16.mxu0 %v8275_v53  ;;  %4847 = vmatprep.subr.bf16.mxu1 %v8278_v54 }
0x1cbc   :  { %4807 = vmatpush1.bf16.msra.mxu0 %v8281_v55  ;;  %4848 = vmatpush1.bf16.msra.mxu1 %v8284_v56 }
0x1cbd   :  { %4921 = vmatprep.subr.bf16.mxu0 %v8541_v58  ;;  %4962 = vmatprep.subr.bf16.mxu1 %v8544_v18 }
0x1d72   :  { %v4695_v30 = vpop.f32.mrb[116].mxu0  ;;  %v4736_v37 = vpop.f32.mrb[116].mxu1 }
0x1d73   :  { %v4747_v23 = vrot.slane %v4695_v30, 5  ;;  %v4697_v59 = vpop.f32.mrb[117].mxu0  ;;  %v4738_v29 = vpop.f32.mrb[117].mxu1  ;;  %v4749_v2 = vrot.slane %v4736_v37, 5  ;;  %v4779_v37 = vrot.slane %v8502_v9, 7 }
0x1d74   :  { %v4748_v50 = vrot.slane %v4697_v59, 5  ;;  %v4699_v6 = vpop.f32.mrb[118].mxu0  ;;  %v4740_v7 = vpop.f32.mrb[118].mxu1  ;;  %v4750_v40 = vrot.slane %v4738_v29, 5 }
0x1d75   :  { %v4755_v0 = vadd.f32 %v4747_v23, %v8389_v8  ;;  %v4700_v1 = vpop.f32.mrb[119].mxu0  ;;  %v4741_v24 = vpop.f32.mrb[119].mxu1  ;;  %v4757_v42 = vadd.f32 %v4749_v2, %v8397_v62  ;;  %v8656_v2 = vld [vmem:[#allocation11 + $0x80] ss:$16 sps:$4 sm:$0xff]  }
0x1d76   :  { %v4756_v61 = vadd.f32 %v4748_v50, %v8392_v60  ;;  %v4758_v16 = vadd.f32 %v4750_v40, %v8401_v39 }
0x1d77   :  { %v5600_v22 = vmul.f32 -1.442695, %v4755_v0  ;;  %v5602_v21 = vmul.f32 -1.442695, %v4757_v42 }
0x1d78   :  { %v5601_v5 = vmul.f32 -1.442695, %v4756_v61 }
0x1d79   :  { %6255 = vpow2.f32 %v5600_v22 }
0x1d7a   :  { %6257 = vpow2.f32 %v5601_v5 }
0x1d7b   :  { %6259 = vtanh.f32 %v4758_v16 }
0x1d7c   :  { %6261 = vpow2.f32 %v5602_v21 }
0x1d83   :  { %v6256_v57 = vpop.eup %6255 }
0x1d84   :  { %v4768_v12 = vadd.f32 1.0, %v6256_v57  ;;  %v6258_v26 = vpop.eup %6257 }
0x1d85   :  { %v4769_v63 = vadd.f32 1.0, %v6258_v26  ;;  %v6260_v32 = vpop.eup %6259 }
0x1d86   :  { %6263 = vrcp.f32 %v4768_v12  ;;  %v6262_v31 = vpop.eup %6261 }
0x1d87   :  { %6265 = vrcp.f32 %v4769_v63  ;;  %v4770_v29 = vadd.f32 1.0, %v6262_v31  ;;  %v8609_v31 = vld [vmem:[#allocation11 + $0x8] ss:$16 sps:$4 sm:$0xff]  }
0x1d89   :  { %6267 = vrcp.f32 %v4770_v29  ;;  %v8626_v29 = vld [vmem:[#allocation11 + $0x44] ss:$16 sps:$4 sm:$0xff]  }
0x1d90   :  { %v6264_v30 = vpop.eup %6263 }
0x1d91   :  { %v4782_v23 = vmul.f32 %v6264_v30, %v6260_v32  ;;  %v6266_v59 = vpop.eup %6265  ;;  %v8606_v32 = vld [vmem:[#allocation11] ss:$16 sps:$4 sm:$0xff]   ;;  %v8612_v30 = vld [vmem:[#allocation11 + $0x24] ss:$16 sps:$4 sm:$0xff]  }
0x1d92   :  { %v4781_v50 = vmul.f32 %v6266_v59, %v4779_v37  ;;  %v8615_v37 = vld [vmem:[#allocation11 + $0x2c] ss:$16 sps:$4 sm:$0xff]   ;;  %v8623_v59 = vld [vmem:[#allocation11 + $0x28] ss:$16 sps:$4 sm:$0xff]  }
0x1d93   :  { %v6268_v7 = vpop.eup %6267 }
0x1d94   :  { %v8552_v6 = vadd.f32 %v4782_v23, %v4781_v50  ;;  %v8620_v23 = vld [vmem:[#allocation11 + $0x20] ss:$16 sps:$4 sm:$0xff]   ;;  %v8629_v50 = vld [vmem:[#allocation11 + $0x4c] ss:$16 sps:$4 sm:$0xff]  }
0x1d96   :  { %6269 = vtanh.f32 %v8552_v6 }
0x1da0   :  { %v6270_v0 = vpop.eup %6269 }
0x1da1   :  { %v4785_v1 = vmul.f32 %v6270_v0, %v6268_v7  ;;  %v8635_v7 = vld [vmem:[#allocation11 + $0x48] ss:$16 sps:$4 sm:$0xff]   ;;  %v8638_v0 = vld [vmem:[#allocation11 + $0x64] ss:$16 sps:$4 sm:$0xff]  }
0x1da3   :  { %v4786_v24 = vpack.c.bf16 %v4785_v1, %v4785_v1  ;;  %v8641_v1 = vld [vmem:[#allocation11 + $0x6c] ss:$16 sps:$4 sm:$0xff]  }
0x1da5   :  { %v4788_v61 = vshrl.u32 %v4786_v24, 16  ;;  %v5314_v22 = vrot.slane %v4786_v24, 4  ;;  %v8644_v24 = vld [vmem:[#allocation11 + $0x60] ss:$16 sps:$4 sm:$0xff]  }
0x1da7   :  { %v4790_v5 = vrot.slane %v4788_v61, 1  ;;  %v8558_v9 = vsel %vm7552_vm4, %v8507_v38, %v5314_v22  ;;  %v8647_v61 = vld [vmem:[#allocation11 + $0x68] ss:$16 sps:$4 sm:$0xff]   ;;  %v8650_v22 = vld [vmem:[#allocation11 + $0x84] ss:$16 sps:$4 sm:$0xff]  }
0x1da9   :  { %4825 = vmatmul.mubr.bf16.vlgmr.msra.gmra.mrb[120].mxu0 %v4790_v5  ;;  %4866 = vmatmul.mubr.bf16.vlgmr.msra.gmra.mrb[120].mxu1 %v4790_v5  ;;  %v8653_v5 = vld [vmem:[#allocation11 + $0x8c] ss:$16 sps:$4 sm:$0xff]  }
0x1daa   :  { %4922 = vmatpush1.bf16.msra.mxu0 %v8195_v41  ;;  %4963 = vmatpush1.bf16.msra.mxu1 %v8198_v33 }
0x1dab   :  { %4923 = vmatprep.subr.bf16.mxu0 %v8201_v20  ;;  %4964 = vmatprep.subr.bf16.mxu1 %v8204_v28 }
0x1dac   :  { %4953 = vmatprep.mubr.bf16.mxu0 %v8800_v27  ;;  %4994 = vmatprep.mubr.bf16.mxu1 %v8800_v27 }
0x1dae   :  { %4924 = vmatpush1.bf16.msra.mxu0 %v8209_v4  ;;  %4965 = vmatpush1.bf16.msra.mxu1 %v8212_v3 }
0x1daf   :  { %4925 = vmatprep.subr.bf16.mxu0 %v8215_v25  ;;  %4966 = vmatprep.subr.bf16.mxu1 %v8218_v49 }
0x1db2   :  { %4926 = vmatpush1.bf16.msra.mxu0 %v8221_v15  ;;  %4967 = vmatpush1.bf16.msra.mxu1 %v8224_v17 }
0x1db3   :  { %4927 = vmatprep.subr.bf16.mxu0 %v8227_v35  ;;  %4968 = vmatprep.subr.bf16.mxu1 %v8230_v11 }
0x1db6   :  { %4928 = vmatpush1.bf16.msra.mxu0 %v8233_v19  ;;  %4969 = vmatpush1.bf16.msra.mxu1 %v8236_v14 }
0x1db7   :  { %4929 = vmatprep.subr.bf16.mxu0 %v8239_v10  ;;  %4970 = vmatprep.subr.bf16.mxu1 %v8242_v13 }
0x1dba   :  { %4930 = vmatpush1.bf16.msra.mxu0 %v8245_v34  ;;  %4971 = vmatpush1.bf16.msra.mxu1 %v8248_v36 }
0x1dbb   :  { %4931 = vmatprep.subr.bf16.mxu0 %v8251_v43  ;;  %4972 = vmatprep.subr.bf16.mxu1 %v8254_v44 }
0x1dbe   :  { %4932 = vmatpush1.bf16.msra.mxu0 %v8257_v45  ;;  %4973 = vmatpush1.bf16.msra.mxu1 %v8260_v46 }
0x1dbf   :  { %4933 = vmatprep.subr.bf16.mxu0 %v8263_v47  ;;  %4974 = vmatprep.subr.bf16.mxu1 %v8266_v48 }
0x1dc2   :  { %4934 = vmatpush1.bf16.msra.mxu0 %v8269_v51  ;;  %4975 = vmatpush1.bf16.msra.mxu1 %v8272_v52 }
0x1dc3   :  { %4935 = vmatprep.subr.bf16.mxu0 %v8275_v53  ;;  %4976 = vmatprep.subr.bf16.mxu1 %v8278_v54  ;;  %v4910_v53 = vrot.slane %v8552_v6, 7  ;;  %v8632_v6 = vld [vmem:[#allocation11 + $0x40] ss:$16 sps:$4 sm:$0xff]  }
0x1dc6   :  { %4936 = vmatpush1.bf16.msra.mxu0 %v8281_v55  ;;  %4977 = vmatpush1.bf16.msra.mxu1 %v8284_v56 }
0x1dc7   :  { %5052 = vmatprep.subr.bf16.mxu0 %v8541_v58  ;;  %5093 = vmatprep.subr.bf16.mxu1 %v8544_v18 }
0x1e7c   :  { %v4826_v41 = vpop.f32.mrb[120].mxu0  ;;  %v4867_v33 = vpop.f32.mrb[120].mxu1 }
0x1e7d   :  { %v4878_v20 = vrot.slane %v4826_v41, 4  ;;  %v4828_v28 = vpop.f32.mrb[121].mxu0  ;;  %v4869_v4 = vpop.f32.mrb[121].mxu1  ;;  %v4880_v10 = vrot.slane %v4867_v33, 4  ;;  %v8662_v41 = vld [vmem:[#allocation11 + $0xa4] ss:$16 sps:$4 sm:$0xff]  }
0x1e7e   :  { %v4879_v3 = vrot.slane %v4828_v28, 4  ;;  %v4830_v25 = vpop.f32.mrb[122].mxu0  ;;  %v4871_v49 = vpop.f32.mrb[122].mxu1  ;;  %v4881_v13 = vrot.slane %v4869_v4, 4  ;;  %v8665_v33 = vld [vmem:[#allocation11 + $0xac] ss:$16 sps:$4 sm:$0xff]  }
0x1e7f   :  { %v4886_v15 = vadd.f32 %v4878_v20, %v8389_v8  ;;  %v4831_v17 = vpop.f32.mrb[123].mxu0  ;;  %v4872_v35 = vpop.f32.mrb[123].mxu1  ;;  %v4888_v34 = vadd.f32 %v4880_v10, %v8397_v62  ;;  %v8668_v20 = vld [vmem:[#allocation11 + $0xa0] ss:$16 sps:$4 sm:$0xff]   ;;  %v8671_v28 = vld [vmem:[#allocation11 + $0xa8] ss:$16 sps:$4 sm:$0xff]  }
0x1e80   :  { %v4887_v11 = vadd.f32 %v4879_v3, %v8392_v60  ;;  %v4889_v36 = vadd.f32 %v4881_v13, %v8401_v39  ;;  %v8674_v4 = vld [vmem:[#allocation11 + $0xc4] ss:$16 sps:$4 sm:$0xff]   ;;  %v8677_v3 = vld [vmem:[#allocation11 + $0xcc] ss:$16 sps:$4 sm:$0xff]   ;;  %v8680_v25 = vld [vmem:[#allocation11 + $0xc0] ss:$16 sps:$4 sm:$0xff]  }
0x1e81   :  { %v5603_v19 = vmul.f32 -1.442695, %v4886_v15  ;;  %v5605_v43 = vmul.f32 -1.442695, %v4888_v34  ;;  %v8683_v49 = vld [vmem:[#allocation11 + $0xc8] ss:$16 sps:$4 sm:$0xff]  }
0x1e82   :  { %v5604_v14 = vmul.f32 -1.442695, %v4887_v11  ;;  %v8686_v15 = vld [vmem:[#allocation11 + $0xe4] ss:$16 sps:$4 sm:$0xff]   ;;  %v8689_v17 = vld [vmem:[#allocation11 + $0xec] ss:$16 sps:$4 sm:$0xff]  }
0x1e83   :  { %6271 = vpow2.f32 %v5603_v19  ;;  %v8692_v35 = vld [vmem:[#allocation11 + $0xe0] ss:$16 sps:$4 sm:$0xff]   ;;  %v8695_v11 = vld [vmem:[#allocation11 + $0xe8] ss:$16 sps:$4 sm:$0xff]  }
0x1e84   :  { %6273 = vpow2.f32 %v5604_v14 }
0x1e85   :  { %6275 = vtanh.f32 %v4889_v36 }
0x1e86   :  { %6277 = vpow2.f32 %v5605_v43 }
0x1e8d   :  { %v6272_v44 = vpop.eup %6271 }
0x1e8e   :  { %v4899_v45 = vadd.f32 1.0, %v6272_v44  ;;  %v6274_v46 = vpop.eup %6273 }
0x1e8f   :  { %v4900_v47 = vadd.f32 1.0, %v6274_v46  ;;  %v6276_v48 = vpop.eup %6275 }
0x1e90   :  { %6279 = vrcp.f32 %v4899_v45  ;;  %v6278_v51 = vpop.eup %6277 }
0x1e91   :  { %6281 = vrcp.f32 %v4900_v47  ;;  %v4901_v56 = vadd.f32 1.0, %v6278_v51 }
0x1e93   :  { %6283 = vrcp.f32 %v4901_v56 }
0x1e9a   :  { %v6280_v52 = vpop.eup %6279 }
0x1e9b   :  { %v4913_v54 = vmul.f32 %v6280_v52, %v6276_v48  ;;  %v6282_v55 = vpop.eup %6281 }
0x1e9c   :  { %v4912_v38 = vmul.f32 %v6282_v55, %v4910_v53 }
0x1e9d   :  { %v6284_v42 = vpop.eup %6283 }
0x1e9e   :  { %v8599_v40 = vadd.f32 %v4913_v54, %v4912_v38 }
0x1ea0   :  { %6285 = vtanh.f32 %v8599_v40 }
0x1eaa   :  { %v6286_v16 = vpop.eup %6285 }
0x1eab   :  { %v4916_v21 = vmul.f32 %v6286_v16, %v6284_v42 }
0x1ead   :  { %v4917_v57 = vpack.c.bf16 %v4916_v21, %v4916_v21 }
0x1eaf   :  { %v4919_v12 = vrot.slane %v4917_v57, 2  ;;  %v5316_v26 = vrot.slane %v4917_v57, 4 }
0x1eb1   :  { %4954 = vmatmul.mubr.bf16.vlgmr.msra.gmra.mrb[124].mxu0 %v4919_v12  ;;  %v8604_v63 = vsel %vm2716_vm15, %v8558_v9, %v5316_v26  ;;  %4995 = vmatmul.mubr.bf16.vlgmr.msra.gmra.mrb[124].mxu1 %v4919_v12  ;;  %v8659_v9 = vld [vmem:[#allocation11 + $0x88] ss:$16 sps:$4 sm:$0xff]   ;;  %v5039_v26 = vrot.slane %v8599_v40, 7 }
0x1eb2   :  { %5053 = vmatpush1.bf16.msra.mxu0 %v8606_v32  ;;  %5094 = vmatpush1.bf16.msra.mxu1 %v8609_v31 }
0x1eb3   :  { %5054 = vmatprep.subr.bf16.mxu0 %v8612_v30  ;;  %5095 = vmatprep.subr.bf16.mxu1 %v8615_v37 }
0x1eb4   :  { %5084 = vmatprep.mubr.bf16.mxu0 %v8800_v27  ;;  %5125 = vmatprep.mubr.bf16.mxu1 %v8800_v27 }
0x1eb6   :  { %5055 = vmatpush1.bf16.msra.mxu0 %v8620_v23  ;;  %5096 = vmatpush1.bf16.msra.mxu1 %v8623_v59 }
0x1eb7   :  { %5056 = vmatprep.subr.bf16.mxu0 %v8626_v29  ;;  %5097 = vmatprep.subr.bf16.mxu1 %v8629_v50 }
0x1eba   :  { %5057 = vmatpush1.bf16.msra.mxu0 %v8632_v6  ;;  %5098 = vmatpush1.bf16.msra.mxu1 %v8635_v7 }
0x1ebb   :  { %5058 = vmatprep.subr.bf16.mxu0 %v8638_v0  ;;  %5099 = vmatprep.subr.bf16.mxu1 %v8641_v1 }
0x1ebe   :  { %5059 = vmatpush1.bf16.msra.mxu0 %v8644_v24  ;;  %5100 = vmatpush1.bf16.msra.mxu1 %v8647_v61 }
0x1ebf   :  { %5060 = vmatprep.subr.bf16.mxu0 %v8650_v22  ;;  %5101 = vmatprep.subr.bf16.mxu1 %v8653_v5 }
0x1ec2   :  { %5061 = vmatpush1.bf16.msra.mxu0 %v8656_v2  ;;  %5102 = vmatpush1.bf16.msra.mxu1 %v8659_v9 }
0x1ec3   :  { %5062 = vmatprep.subr.bf16.mxu0 %v8662_v41  ;;  %5103 = vmatprep.subr.bf16.mxu1 %v8665_v33 }
0x1ec6   :  { %5063 = vmatpush1.bf16.msra.mxu0 %v8668_v20  ;;  %5104 = vmatpush1.bf16.msra.mxu1 %v8671_v28 }
0x1ec7   :  { %5064 = vmatprep.subr.bf16.mxu0 %v8674_v4  ;;  %5105 = vmatprep.subr.bf16.mxu1 %v8677_v3 }
0x1eca   :  { %5065 = vmatpush1.bf16.msra.mxu0 %v8680_v25  ;;  %5106 = vmatpush1.bf16.msra.mxu1 %v8683_v49 }
0x1ecb   :  { %5066 = vmatprep.subr.bf16.mxu0 %v8686_v15  ;;  %5107 = vmatprep.subr.bf16.mxu1 %v8689_v17 }
0x1ece   :  { %5067 = vmatpush1.bf16.msra.mxu0 %v8692_v35  ;;  %5108 = vmatpush1.bf16.msra.mxu1 %v8695_v11 }
0x1ecf   :  { %5181 = vmatprep.subr.bf16.mxu0 %v8541_v58  ;;  %5222 = vmatprep.subr.bf16.mxu1 %v8544_v18 }
0x1f84   :  { %v4955_v19 = vpop.f32.mrb[124].mxu0  ;;  %v4996_v14 = vpop.f32.mrb[124].mxu1 }
0x1f85   :  { %v5007_v10 = vrot.slane %v4955_v19, 3  ;;  %v4957_v13 = vpop.f32.mrb[125].mxu0  ;;  %v4998_v34 = vpop.f32.mrb[125].mxu1  ;;  %v5009_v58 = vrot.slane %v4996_v14, 3 }
0x1f86   :  { %v5008_v36 = vrot.slane %v4957_v13, 3  ;;  %v4959_v43 = vpop.f32.mrb[126].mxu0  ;;  %v5000_v44 = vpop.f32.mrb[126].mxu1  ;;  %v5010_v18 = vrot.slane %v4998_v34, 3 }
0x1f87   :  { %v5015_v45 = vadd.f32 %v5007_v10, %v8389_v8  ;;  %v4960_v46 = vpop.f32.mrb[127].mxu0  ;;  %v5001_v47 = vpop.f32.mrb[127].mxu1  ;;  %v5017_v53 = vadd.f32 %v5009_v58, %v8397_v62 }
0x1f88   :  { %v5016_v48 = vadd.f32 %v5008_v36, %v8392_v60  ;;  %v5018_v54 = vadd.f32 %v5010_v18, %v8401_v39 }
0x1f89   :  { %v5606_v51 = vmul.f32 -1.442695, %v5015_v45  ;;  %v5608_v55 = vmul.f32 -1.442695, %v5017_v53 }
0x1f8a   :  { %v5607_v52 = vmul.f32 -1.442695, %v5016_v48 }
0x1f8b   :  { %6287 = vpow2.f32 %v5606_v51 }
0x1f8c   :  { %6289 = vpow2.f32 %v5607_v52 }
0x1f8d   :  { %6291 = vtanh.f32 %v5018_v54 }
0x1f8e   :  { %6293 = vpow2.f32 %v5608_v55 }
0x1f95   :  { %v6288_v56 = vpop.eup %6287 }
0x1f96   :  { %v5028_v38 = vadd.f32 1.0, %v6288_v56  ;;  %v6290_v42 = vpop.eup %6289 }
0x1f97   :  { %v5029_v16 = vadd.f32 1.0, %v6290_v42  ;;  %v6292_v21 = vpop.eup %6291 }
0x1f98   :  { %6295 = vrcp.f32 %v5028_v38  ;;  %v6294_v57 = vpop.eup %6293 }
0x1f99   :  { %6297 = vrcp.f32 %v5029_v16  ;;  %v5030_v10 = vadd.f32 1.0, %v6294_v57 }
0x1f9b   :  { %6299 = vrcp.f32 %v5030_v10 }
0x1fa2   :  { %v6296_v12 = vpop.eup %6295 }
0x1fa3   :  { %v5042_v19 = vmul.f32 %v6296_v12, %v6292_v21  ;;  %v6298_v14 = vpop.eup %6297 }
0x1fa4   :  { %v5041_v13 = vmul.f32 %v6298_v14, %v5039_v26 }
0x1fa5   :  { %v6300_v36 = vpop.eup %6299 }
0x1fa6   :  { %v8705_v34 = vadd.f32 %v5042_v19, %v5041_v13 }
0x1fa8   :  { %6301 = vtanh.f32 %v8705_v34 }
0x1fb2   :  { %v6302_v43 = vpop.eup %6301 }
0x1fb3   :  { %v5045_v44 = vmul.f32 %v6302_v43, %v6300_v36 }
0x1fb5   :  { %v5046_v45 = vpack.c.bf16 %v5045_v44, %v5045_v44 }
0x1fb7   :  { %v5048_v46 = vshrl.u32 %v5046_v45, 16  ;;  %v5318_v47 = vrot.slane %v5046_v45, 4 }
0x1fb9   :  { %v5050_v48 = vrot.slane %v5048_v46, 2  ;;  %v8711_v40 = vsel %vm7704_vm13, %v8604_v63, %v5318_v47 }
0x1fbb   :  { %5085 = vmatmul.mubr.bf16.vlgmr.msra.gmra.mrb[128].mxu0 %v5050_v48  ;;  %5126 = vmatmul.mubr.bf16.vlgmr.msra.gmra.mrb[128].mxu1 %v5050_v48 }
0x1fbc   :  { %5182 = vmatpush1.bf16.msra.mxu0 %v8606_v32  ;;  %5223 = vmatpush1.bf16.msra.mxu1 %v8609_v31 }
0x1fbd   :  { %5183 = vmatprep.subr.bf16.mxu0 %v8612_v30  ;;  %5224 = vmatprep.subr.bf16.mxu1 %v8615_v37 }
0x1fbe   :  { %5213 = vmatprep.mubr.bf16.mxu0 %v8800_v27  ;;  %5254 = vmatprep.mubr.bf16.mxu1 %v8800_v27 }
0x1fc0   :  { %5184 = vmatpush1.bf16.msra.mxu0 %v8620_v23  ;;  %5225 = vmatpush1.bf16.msra.mxu1 %v8623_v59 }
0x1fc1   :  { %5185 = vmatprep.subr.bf16.mxu0 %v8626_v29  ;;  %5226 = vmatprep.subr.bf16.mxu1 %v8629_v50 }
0x1fc4   :  { %5186 = vmatpush1.bf16.msra.mxu0 %v8632_v6  ;;  %5227 = vmatpush1.bf16.msra.mxu1 %v8635_v7 }
0x1fc5   :  { %5187 = vmatprep.subr.bf16.mxu0 %v8638_v0  ;;  %5228 = vmatprep.subr.bf16.mxu1 %v8641_v1 }
0x1fc8   :  { %5188 = vmatpush1.bf16.msra.mxu0 %v8644_v24  ;;  %5229 = vmatpush1.bf16.msra.mxu1 %v8647_v61 }
0x1fc9   :  { %5189 = vmatprep.subr.bf16.mxu0 %v8650_v22  ;;  %5230 = vmatprep.subr.bf16.mxu1 %v8653_v5 }
0x1fcc   :  { %5190 = vmatpush1.bf16.msra.mxu0 %v8656_v2  ;;  %5231 = vmatpush1.bf16.msra.mxu1 %v8659_v9 }
0x1fcd   :  { %5191 = vmatprep.subr.bf16.mxu0 %v8662_v41  ;;  %5232 = vmatprep.subr.bf16.mxu1 %v8665_v33 }
0x1fd0   :  { %5192 = vmatpush1.bf16.msra.mxu0 %v8668_v20  ;;  %5233 = vmatpush1.bf16.msra.mxu1 %v8671_v28 }
0x1fd1   :  { %5193 = vmatprep.subr.bf16.mxu0 %v8674_v4  ;;  %5234 = vmatprep.subr.bf16.mxu1 %v8677_v3 }
0x1fd4   :  { %5194 = vmatpush1.bf16.msra.mxu0 %v8680_v25  ;;  %5235 = vmatpush1.bf16.msra.mxu1 %v8683_v49  ;;  %v5170_v25 = vrot.slane %v8705_v34, 7 }
0x1fd5   :  { %5195 = vmatprep.subr.bf16.mxu0 %v8686_v15  ;;  %5236 = vmatprep.subr.bf16.mxu1 %v8689_v17 }
0x1fd8   :  { %5196 = vmatpush1.bf16.msra.mxu0 %v8692_v35  ;;  %5237 = vmatpush1.bf16.msra.mxu1 %v8695_v11 }
0x208e   :  { %v5086_v27 = vpop.f32.mrb[128].mxu0  ;;  %v5127_v63 = vpop.f32.mrb[128].mxu1 }
0x208f   :  { %v5138_v32 = vrot.slane %v5086_v27, 2  ;;  %v5088_v31 = vpop.f32.mrb[129].mxu0  ;;  %v5129_v30 = vpop.f32.mrb[129].mxu1  ;;  %v5140_v24 = vrot.slane %v5127_v63, 2 }
0x2090   :  { %v5139_v37 = vrot.slane %v5088_v31, 2  ;;  %v5090_v23 = vpop.f32.mrb[130].mxu0  ;;  %v5131_v59 = vpop.f32.mrb[130].mxu1  ;;  %v5141_v61 = vrot.slane %v5129_v30, 2 }
0x2091   :  { %v5146_v29 = vadd.f32 %v5138_v32, %v8389_v8  ;;  %v5091_v50 = vpop.f32.mrb[131].mxu0  ;;  %v5132_v6 = vpop.f32.mrb[131].mxu1  ;;  %v5148_v22 = vadd.f32 %v5140_v24, %v8397_v62 }
0x2092   :  { %v5147_v7 = vadd.f32 %v5139_v37, %v8392_v60  ;;  %v5149_v5 = vadd.f32 %v5141_v61, %v8401_v39 }
0x2093   :  { %v5609_v0 = vmul.f32 -1.442695, %v5146_v29  ;;  %v5611_v2 = vmul.f32 -1.442695, %v5148_v22 }
0x2094   :  { %v5610_v1 = vmul.f32 -1.442695, %v5147_v7 }
0x2095   :  { %6303 = vpow2.f32 %v5609_v0 }
0x2096   :  { %6305 = vpow2.f32 %v5610_v1 }
0x2097   :  { %6307 = vtanh.f32 %v5149_v5 }
0x2098   :  { %6309 = vpow2.f32 %v5611_v2 }
0x209f   :  { %v6304_v9 = vpop.eup %6303 }
0x20a0   :  { %v5159_v41 = vadd.f32 1.0, %v6304_v9  ;;  %v6306_v33 = vpop.eup %6305 }
0x20a1   :  { %v5160_v20 = vadd.f32 1.0, %v6306_v33  ;;  %v6308_v28 = vpop.eup %6307 }
0x20a2   :  { %6311 = vrcp.f32 %v5159_v41  ;;  %v6310_v4 = vpop.eup %6309 }
0x20a3   :  { %6313 = vrcp.f32 %v5160_v20  ;;  %v5161_v17 = vadd.f32 1.0, %v6310_v4 }
0x20a5   :  { %6315 = vrcp.f32 %v5161_v17 }
0x20ac   :  { %v6312_v3 = vpop.eup %6311 }
0x20ad   :  { %v5173_v49 = vmul.f32 %v6312_v3, %v6308_v28  ;;  %v6314_v15 = vpop.eup %6313 }
0x20ae   :  { %v5172_v35 = vmul.f32 %v6314_v15, %v5170_v25 }
0x20af   :  { %v6316_v52 = vpop.eup %6315 }
0x20b0   :  { %v5174_v11 = vadd.f32 %v5173_v49, %v5172_v35 }
0x20b2   :  { %6317 = vtanh.f32 %v5174_v11  ;;  %v5299_v31 = vrot.slane %v5174_v11, 7 }
0x20bc   :  { %v6318_v58 = vpop.eup %6317 }
0x20bd   :  { %v5176_v18 = vmul.f32 %v6318_v58, %v6316_v52 }
0x20bf   :  { %v5177_v53 = vpack.c.bf16 %v5176_v18, %v5176_v18 }
0x20c1   :  { %v5179_v54 = vrot.slane %v5177_v53, 3  ;;  %v5320_v55 = vrot.slane %v5177_v53, 4 }
0x20c3   :  { %5214 = vmatmul.mubr.bf16.vlgmr.msra.gmra.mrb[132].mxu0 %v5179_v54  ;;  %v5357_v56 = vsel %vm8826_vm0, %v8711_v40, %v5320_v55  ;;  %5255 = vmatmul.mubr.bf16.vlgmr.msra.gmra.mrb[132].mxu1 %v5179_v54 }
0x2196   :  { %v5215_v38 = vpop.f32.mrb[132].mxu0  ;;  %v5256_v42 = vpop.f32.mrb[132].mxu1 }
0x2197   :  { %v5267_v16 = vrot.slane %v5215_v38, 1  ;;  %v5217_v21 = vpop.f32.mrb[133].mxu0  ;;  %v5258_v57 = vpop.f32.mrb[133].mxu1  ;;  %v5269_v44 = vrot.slane %v5256_v42, 1 }
0x2198   :  { %v5268_v12 = vrot.slane %v5217_v21, 1  ;;  %v5219_v26 = vpop.f32.mrb[134].mxu0  ;;  %v5260_v19 = vpop.f32.mrb[134].mxu1  ;;  %v5270_v45 = vrot.slane %v5258_v57, 1 }
0x2199   :  { %v5275_v14 = vadd.f32 %v5267_v16, %v8389_v8  ;;  %v5220_v10 = vpop.f32.mrb[135].mxu0  ;;  %v5261_v13 = vpop.f32.mrb[135].mxu1  ;;  %v5277_v46 = vadd.f32 %v5269_v44, %v8397_v62 }
0x219a   :  { %v5276_v34 = vadd.f32 %v5268_v12, %v8392_v60  ;;  %v5278_v47 = vadd.f32 %v5270_v45, %v8401_v39 }
0x219b   :  { %v5612_v36 = vmul.f32 -1.442695, %v5275_v14  ;;  %v5614_v48 = vmul.f32 -1.442695, %v5277_v46 }
0x219c   :  { %v5613_v43 = vmul.f32 -1.442695, %v5276_v34 }
0x219d   :  { %6319 = vpow2.f32 %v5612_v36 }
0x219e   :  { %6321 = vpow2.f32 %v5613_v43 }
0x219f   :  { %6323 = vtanh.f32 %v5278_v47 }
0x21a0   :  { %6325 = vpow2.f32 %v5614_v48 }
0x21a7   :  { %v6320_v51 = vpop.eup %6319 }
0x21a8   :  { %v5288_v40 = vadd.f32 1.0, %v6320_v51  ;;  %v6322_v27 = vpop.eup %6321 }
0x21a9   :  { %v5289_v8 = vadd.f32 1.0, %v6322_v27  ;;  %v6324_v60 = vpop.eup %6323 }
0x21aa   :  { %6327 = vrcp.f32 %v5288_v40  ;;  %v6326_v63 = vpop.eup %6325 }
0x21ab   :  { %6329 = vrcp.f32 %v5289_v8  ;;  %v5290_v23 = vadd.f32 1.0, %v6326_v63 }
0x21ad   :  { %6331 = vrcp.f32 %v5290_v23 }
0x21b4   :  { %v6328_v32 = vpop.eup %6327 }
0x21b5   :  { %v5302_v30 = vmul.f32 %v6328_v32, %v6324_v60  ;;  %v6330_v37 = vpop.eup %6329 }
0x21b6   :  { %v5301_v59 = vmul.f32 %v6330_v37, %v5299_v31 }
0x21b7   :  { %v6332_v39 = vpop.eup %6331 }
0x21b8   :  { %v5303_v62 = vadd.f32 %v5302_v30, %v5301_v59 }
0x21ba   :  { %6333 = vtanh.f32 %v5303_v62 }
0x21c4   :  { %v6334_v29 = vpop.eup %6333 }
0x21c5   :  { %v5305_v50 = vmul.f32 %v6334_v29, %v6332_v39 }
0x21c7   :  { %v5306_v6 = vpack.c.bf16 %v5305_v50, %v5305_v50 }
0x21c9   :  { %v5322_v7 = vrot.slane %v5306_v6, 4 }
0x21cb   :  { %v5359_v1 = vsel %vm7770_vm7, %v5357_v56, %v5322_v7 }
0x21cc   :  { %v5615_v24 = vcombine.low %v5359_v1, %v5359_v1  ;;  %v5616_v61 = vcombine.high %v5359_v1, %v5359_v1 }
0x21ce   :  { %5367 = vst [vmem:[#allocation12] sm:$0xf] %v5615_v24  ;;  %5368 = vst [vmem:[#allocation12 + $0x4] sm:$0xf] %v5616_v61 }
0x21cf   :  { %6584 = shalt.err (!%p6581_p2)
}
0x21d0   :  { %s6585_s22 = scalar_lea.hbm %s8777_s7, 128 }
0x21d1   :  { %p6586_p3 = scmp.ne.s32.totalorder %s8777_s7, %s6585_s22  ;;  %p6589_p4 = scmp.lt.u32.totalorder %s6585_s22, %s8777_s7 }
0x21d3   :  { %p6591_p5 = pnand %p6589_p4, %p6586_p3 }
0x21d5   :  { %6594 = shalt.err (!%p6591_p5)
}
0x21d6   :  { %s6614_s25 = smov 64   ;;  %s6615_s27 = smov 4  }
0x21d7   :  { %5380 = dma.vmem_to_hbm [thread:$0]  %s5375_s17, 128, %s8777_s7, [#allocation5], %s6614_s25, %s6614_s25, %s6615_s27  }
0x21d8   :  { %6601 = dma.done.wait [#allocation5], 128  }
0x21d9   :  { %6602 = vsyncadd [#allocation5], 4294967168 }
0x21da   :  { %5384 = vsyncpa [#allocation4], 1 }
0x21db   :  { %5385 = vsyncpa [#allocation7], 1 }
0x21dc   :  { %5386 = vsyncpa [#allocation10], 1 }
0x21dd   :  { %5387 = vsyncpa [#allocation5], 1 }

</bundles_post_ra>
